<compile_context>
chip_gen: v7x
topology: tpu7x:2x2x1
jax: 0.10.0
libtpu: 0.0.40
codegen_flags: <defaults>
</compile_context>

<pallas_src>
import functools

import jax
import jax.numpy as jnp
from jax.experimental import pallas as pl
from jax.experimental.pallas import tpu as pltpu

# ----------------------------- configuration --------------------------------
B = 2            # batch
C_IN = 3         # image channels
IMG = 16         # image spatial size
PATCH = 8        # patch size -> 2x2 = 4 patches
NP = (IMG // PATCH) ** 2           # number of image tokens (4)
VDIM = 32        # vision hidden
TDIM = 32        # text / LM hidden
HEADS = 4        # attention heads (head_dim = 8)
T_TXT = 8        # text sequence length
S_LM = NP + T_TXT                  # LM sequence length (12)
VOCAB = 64       # vocabulary size
MLP_RATIO = 4
LN_EPS = 1e-5

BATCHED_INPUTS = ("patches", "txt_emb", "labels")

WEIGHT_ORDER = (
    "patch_w", "patch_b", "vis_pos",
    "v_ln1_g", "v_ln1_b", "v_wqkv", "v_bqkv", "v_wo", "v_bo",
    "v_ln2_g", "v_ln2_b", "v_w_fc1", "v_b_fc1", "v_w_fc2", "v_b_fc2",
    "vis_lnf_g", "vis_lnf_b",
    "proj_w1", "proj_b1", "proj_w2", "proj_b2",
    "lm_pos",
    "l_ln1_g", "l_ln1_b", "l_wqkv", "l_bqkv", "l_wo", "l_bo",
    "l_ln2_g", "l_ln2_b", "l_w_fc1", "l_b_fc1", "l_w_fc2", "l_b_fc2",
    "lm_lnf_g", "lm_lnf_b",
    "lm_head_w", "lm_head_b",
)


# ------------------------ in-kernel compute helpers --------------------------
def _mm(a, b):
    """MXU matmul: bf16 operands, fp32 accumulation."""
    return jnp.dot(a.astype(jnp.bfloat16), b.astype(jnp.bfloat16),
                   preferred_element_type=jnp.float32)


def _mm_t(a, b):
    """a @ b.T via dot_general (no explicit transpose), bf16 in / f32 acc."""
    return jax.lax.dot_general(
        a.astype(jnp.bfloat16), b.astype(jnp.bfloat16),
        (((1,), (1,)), ((), ())),
        preferred_element_type=jnp.float32)


def _layernorm(x, g, b):
    mu = jnp.mean(x, axis=-1, keepdims=True)
    var = jnp.mean(jnp.square(x - mu), axis=-1, keepdims=True)
    return (x - mu) * jax.lax.rsqrt(var + LN_EPS) * g + b


def _attention(x, wqkv, bqkv, wo, bo, mask):
    """x: [S, D].  Fused QKV projection; per-head attention kept in-kernel."""
    s_len, dim = x.shape
    dh = dim // HEADS
    scale = 1.0 / (dh ** 0.5)
    qkv = _mm(x, wqkv) + bqkv                       # [S, 3D]
    head_outs = []
    for h in range(HEADS):                          # static tiny loop
        qh = qkv[:, h * dh:(h + 1) * dh]
        kh = qkv[:, dim + h * dh:dim + (h + 1) * dh]
        vh = qkv[:, 2 * dim + h * dh:2 * dim + (h + 1) * dh]
        s = _mm_t(qh, kh) * scale                   # [S, S], f32
        if mask is not None:
            s = s + mask
        m = jnp.max(s, axis=-1, keepdims=True)
        p = jnp.exp(s - m)
        p = p * pl.reciprocal(jnp.sum(p, axis=-1, keepdims=True), approx=True)
        head_outs.append(_mm(p, vh))                # [S, dh]
    o = jnp.concatenate(head_outs, axis=-1)         # [S, D]
    return _mm(o, wo) + bo


def _transformer_block(x, r, prefix, mask):
    def w(name):
        return r[prefix + name][...]
    h = _layernorm(x, w("ln1_g"), w("ln1_b"))
    x = x + _attention(h, w("wqkv"), w("bqkv"), w("wo"), w("bo"), mask)
    h = _layernorm(x, w("ln2_g"), w("ln2_b"))
    h = jax.nn.gelu(_mm(h, w("w_fc1")) + w("b_fc1"))   # tanh-approx GELU (EUP)
    return x + _mm(h, w("w_fc2")) + w("b_fc2")


# ------------------------------ fused kernel ---------------------------------
def _fused_llava_kernel(*refs, input_names):
    n_in = len(input_names)
    r = dict(zip(input_names, refs[:n_in]))
    nll_ref, valid_ref = refs[n_in], refs[n_in + 1]

    # ---- vision tower (bidirectional attention) ----
    vis = _mm(r["patches"][...], r["patch_w"][...]) + r["patch_b"][...]  # [NP, VDIM]
    vis = vis + r["vis_pos"][...]
    vis = _transformer_block(vis, r, "v_", mask=None)
    vis = _layernorm(vis, r["vis_lnf_g"][...], r["vis_lnf_b"][...])

    # ---- multimodal projector ----
    img = jax.nn.gelu(_mm(vis, r["proj_w1"][...]) + r["proj_b1"][...])
    img = _mm(img, r["proj_w2"][...]) + r["proj_b2"][...]                # [NP, TDIM]

    # ---- language model over [image tokens ; text tokens] ----
    h = jnp.concatenate([img, r["txt_emb"][...]], axis=0)                # [S_LM, TDIM]
    h = h + r["lm_pos"][...]
    # causal mask built once (hoisted); kept in fp32 regardless of MXU dtype
    qi = jax.lax.broadcasted_iota(jnp.int32, (S_LM, S_LM), 0)
    ki = jax.lax.broadcasted_iota(jnp.int32, (S_LM, S_LM), 1)
    causal_mask = jnp.where(ki <= qi, 0.0, -1e30).astype(jnp.float32)
    h = _transformer_block(h, r, "l_", mask=causal_mask)
    h = _layernorm(h, r["lm_lnf_g"][...], r["lm_lnf_b"][...])

    # ---- LM head + shifted masked cross-entropy (logits never leave VMEM) ----
    logits = _mm(h, r["lm_head_w"][...]) + r["lm_head_b"][...]           # [S_LM, V]
    shift_logits = logits[:-1, :]                                        # [S_LM-1, V]
    labels = r["labels"][...]                                            # [S_LM-1, 1] i32
    m = jnp.max(shift_logits, axis=-1, keepdims=True)
    e = jnp.exp(shift_logits - m)
    lse = m + jnp.log(jnp.sum(e, axis=-1, keepdims=True))
    col = jax.lax.broadcasted_iota(jnp.int32, shift_logits.shape, 1)
    onehot = (col == labels).astype(jnp.float32)
    tgt = jnp.sum(shift_logits * onehot, axis=-1, keepdims=True)
    valid = (labels >= 0).astype(jnp.float32)
    nll_sum = jnp.sum((lse - tgt) * valid)
    valid_sum = jnp.sum(valid)

    # lane-dense full-tile stores (no masked partial stores)
    nll_ref[...] = jnp.full((8, 128), nll_sum, jnp.float32)
    valid_ref[...] = jnp.full((8, 128), valid_sum, jnp.float32)


# --------------------------- parameter construction --------------------------
def _dense_init(key, fan_in, fan_out):
    k1, k2 = jax.random.split(key)
    w = jax.random.normal(k1, (fan_in, fan_out), jnp.float32) / jnp.sqrt(fan_in)
    b = 0.01 * jax.random.normal(k2, (1, fan_out), jnp.float32)
    return w, b


def _block_init(key, dim, prefix):
    keys = jax.random.split(key, 6)
    wq, bq = _dense_init(keys[0], dim, dim)
    wk, bk = _dense_init(keys[1], dim, dim)
    wv, bv = _dense_init(keys[2], dim, dim)
    p = {
        prefix + "wqkv": jnp.concatenate([wq, wk, wv], axis=1),   # [D, 3D] fused QKV
        prefix + "bqkv": jnp.concatenate([bq, bk, bv], axis=1),   # [1, 3D]
    }
    p[prefix + "wo"], p[prefix + "bo"] = _dense_init(keys[3], dim, dim)
    p[prefix + "w_fc1"], p[prefix + "b_fc1"] = _dense_init(keys[4], dim, dim * MLP_RATIO)
    p[prefix + "w_fc2"], p[prefix + "b_fc2"] = _dense_init(keys[5], dim * MLP_RATIO, dim)
    p[prefix + "ln1_g"] = jnp.ones((1, dim), jnp.float32)
    p[prefix + "ln1_b"] = jnp.zeros((1, dim), jnp.float32)
    p[prefix + "ln2_g"] = jnp.ones((1, dim), jnp.float32)
    p[prefix + "ln2_b"] = jnp.zeros((1, dim), jnp.float32)
    return p


def init_params(seed=42):
    key = jax.random.PRNGKey(seed)
    ks = jax.random.split(key, 10)
    p = {}
    patch_dim = C_IN * PATCH * PATCH
    # vision tower
    p["patch_w"], p["patch_b"] = _dense_init(ks[0], patch_dim, VDIM)
    p["vis_pos"] = 0.02 * jax.random.normal(ks[1], (NP, VDIM), jnp.float32)
    p.update(_block_init(ks[2], VDIM, "v_"))
    p["vis_lnf_g"] = jnp.ones((1, VDIM), jnp.float32)
    p["vis_lnf_b"] = jnp.zeros((1, VDIM), jnp.float32)
    # multimodal projector
    p["proj_w1"], p["proj_b1"] = _dense_init(ks[3], VDIM, TDIM)
    p["proj_w2"], p["proj_b2"] = _dense_init(ks[4], TDIM, TDIM)
    # language model
    p["tok_emb"] = 0.02 * jax.random.normal(ks[5], (VOCAB, TDIM), jnp.float32)
    p["lm_pos"] = 0.02 * jax.random.normal(ks[6], (S_LM, TDIM), jnp.float32)
    p.update(_block_init(ks[7], TDIM, "l_"))
    p["lm_lnf_g"] = jnp.ones((1, TDIM), jnp.float32)
    p["lm_lnf_b"] = jnp.zeros((1, TDIM), jnp.float32)
    p["lm_head_w"], p["lm_head_b"] = _dense_init(ks[8], TDIM, VOCAB)
    return p


# ------------------------------ host-side glue --------------------------------
def patchify(images):
    """NCHW [B,C,H,W] -> [B, NP, C*PATCH*PATCH] (conv-equivalent flatten order)."""
    b, c, h, w = images.shape
    hp, wp = h // PATCH, w // PATCH
    x = images.reshape(b, c, hp, PATCH, wp, PATCH)
    x = x.transpose(0, 2, 4, 1, 3, 5)            # [B, hp, wp, C, p, p]
    return x.reshape(b, hp * wp, c * PATCH * PATCH)


def _batched_spec(arr):
    """Per-batch block (batch dim squeezed)."""
    nrest = arr.ndim - 1
    return pl.BlockSpec((None,) + arr.shape[1:],
                        lambda i, nrest=nrest: (i,) + (0,) * nrest)


def _resident_spec(arr):
    """Whole array, same block for every grid step (weights stay in VMEM)."""
    nd = arr.ndim
    return pl.BlockSpec(arr.shape, lambda i, nd=nd: (0,) * nd)


def llava_forward(params, images, input_ids):
    """Returns the masked causal-LM loss (scalar), like LLaVA.forward -> loss."""
    b = images.shape[0]

    # glue: patchify, embedding gather, label shift
    patches = patchify(images)                                        # [B, NP, PD]
    txt_emb = jnp.take(params["tok_emb"], input_ids, axis=0)          # [B, T, TDIM]
    labels = jnp.concatenate(
        [jnp.full((b, NP), -100, jnp.int32), input_ids.astype(jnp.int32)], axis=1)
    shift_labels = labels[:, 1:].reshape(b, S_LM - 1, 1)              # [B, S_LM-1, 1]

    inputs = [("patches", patches), ("txt_emb", txt_emb), ("labels", shift_labels)]
    inputs += [(name, params[name]) for name in WEIGHT_ORDER]
    names = tuple(n for n, _ in inputs)
    arrays = [a for _, a in inputs]
    in_specs = [_batched_spec(a) if n in BATCHED_INPUTS else _resident_spec(a)
                for n, a in inputs]

    stat_spec = pl.BlockSpec((None, 8, 128), lambda i: (i, 0, 0))
    nll, valid = pl.pallas_call(
        functools.partial(_fused_llava_kernel, input_names=names),
        grid=(b,),
        in_specs=in_specs,
        out_specs=(stat_spec, stat_spec),
        out_shape=(jax.ShapeDtypeStruct((b, 8, 128), jnp.float32),
                   jax.ShapeDtypeStruct((b, 8, 128), jnp.float32)),
        compiler_params=pltpu.CompilerParams(
            dimension_semantics=("parallel",)),      # v7x: one batch elem per TC
    )(*arrays)

    total_nll = jnp.sum(nll[:, 0, 0])
    total_valid = jnp.sum(valid[:, 0, 0])
    return total_nll / jnp.maximum(total_valid, 1.0)


# ---------------------------------- main --------------------------------------
if __name__ == "__main__":
    params = init_params(seed=42)

    key = jax.random.PRNGKey(0)
    k_img, k_ids = jax.random.split(key)
    images = jax.random.normal(k_img, (B, C_IN, IMG, IMG), jnp.float32)   # NCHW
    input_ids = jax.random.randint(k_ids, (B, T_TXT), 0, VOCAB, jnp.int32)

    fwd = jax.jit(llava_forward)
    loss = fwd(params, images, input_ids)
    jax.block_until_ready(loss)

    assert loss.shape == () and jnp.isfinite(loss), "bad loss"
    # TODO(synk): text generation / beam-search paths (generate, ask, caption,
    # get_answer_confidence) have no Pallas equivalent; only forward-pass loss.
    print("KERNEL_OK")
</pallas_src>

<mosaic_0001>
module attributes {stable_mosaic.version = 11 : i64} {
  func.func @_fused_llava_kernel(%arg0: i32, %arg1: memref<1x4x192xf32, #tpu.memory_space<vmem>>, %arg2: memref<1x8x32xf32, #tpu.memory_space<vmem>>, %arg3: memref<1x11x1xi32, #tpu.memory_space<vmem>>, %arg4: memref<192x32xf32, #tpu.memory_space<vmem>>, %arg5: memref<1x32xf32, #tpu.memory_space<vmem>>, %arg6: memref<4x32xf32, #tpu.memory_space<vmem>>, %arg7: memref<1x32xf32, #tpu.memory_space<vmem>>, %arg8: memref<1x32xf32, #tpu.memory_space<vmem>>, %arg9: memref<32x96xf32, #tpu.memory_space<vmem>>, %arg10: memref<1x96xf32, #tpu.memory_space<vmem>>, %arg11: memref<32x32xf32, #tpu.memory_space<vmem>>, %arg12: memref<1x32xf32, #tpu.memory_space<vmem>>, %arg13: memref<1x32xf32, #tpu.memory_space<vmem>>, %arg14: memref<1x32xf32, #tpu.memory_space<vmem>>, %arg15: memref<32x128xf32, #tpu.memory_space<vmem>>, %arg16: memref<1x128xf32, #tpu.memory_space<vmem>>, %arg17: memref<128x32xf32, #tpu.memory_space<vmem>>, %arg18: memref<1x32xf32, #tpu.memory_space<vmem>>, %arg19: memref<1x32xf32, #tpu.memory_space<vmem>>, %arg20: memref<1x32xf32, #tpu.memory_space<vmem>>, %arg21: memref<32x32xf32, #tpu.memory_space<vmem>>, %arg22: memref<1x32xf32, #tpu.memory_space<vmem>>, %arg23: memref<32x32xf32, #tpu.memory_space<vmem>>, %arg24: memref<1x32xf32, #tpu.memory_space<vmem>>, %arg25: memref<12x32xf32, #tpu.memory_space<vmem>>, %arg26: memref<1x32xf32, #tpu.memory_space<vmem>>, %arg27: memref<1x32xf32, #tpu.memory_space<vmem>>, %arg28: memref<32x96xf32, #tpu.memory_space<vmem>>, %arg29: memref<1x96xf32, #tpu.memory_space<vmem>>, %arg30: memref<32x32xf32, #tpu.memory_space<vmem>>, %arg31: memref<1x32xf32, #tpu.memory_space<vmem>>, %arg32: memref<1x32xf32, #tpu.memory_space<vmem>>, %arg33: memref<1x32xf32, #tpu.memory_space<vmem>>, %arg34: memref<32x128xf32, #tpu.memory_space<vmem>>, %arg35: memref<1x128xf32, #tpu.memory_space<vmem>>, %arg36: memref<128x32xf32, #tpu.memory_space<vmem>>, %arg37: memref<1x32xf32, #tpu.memory_space<vmem>>, %arg38: memref<1x32xf32, #tpu.memory_space<vmem>>, %arg39: memref<1x32xf32, #tpu.memory_space<vmem>>, %arg40: memref<32x64xf32, #tpu.memory_space<vmem>>, %arg41: memref<1x64xf32, #tpu.memory_space<vmem>>, %arg42: memref<1x8x128xf32, #tpu.memory_space<vmem>>, %arg43: memref<1x8x128xf32, #tpu.memory_space<vmem>>) attributes {dimension_semantics = [#tpu.dimension_semantics<parallel>], iteration_bounds = array<i64: 2>, scalar_prefetch = 0 : i64, scratch_operands = 0 : i64, tpu.core_type = #tpu.core_type<tc>, window_params = [{transform_indices = @transform_0, window_bounds = array<i64: 1, 4, 192>}, {transform_indices = @transform_1, window_bounds = array<i64: 1, 8, 32>}, {transform_indices = @transform_2, window_bounds = array<i64: 1, 11, 1>}, {pipeline_mode = #tpu.pipeline_mode<synchronous>, transform_indices = @transform_3, window_bounds = array<i64: 192, 32>}, {pipeline_mode = #tpu.pipeline_mode<synchronous>, transform_indices = @transform_4, window_bounds = array<i64: 1, 32>}, {pipeline_mode = #tpu.pipeline_mode<synchronous>, transform_indices = @transform_5, window_bounds = array<i64: 4, 32>}, {pipeline_mode = #tpu.pipeline_mode<synchronous>, transform_indices = @transform_6, window_bounds = array<i64: 1, 32>}, {pipeline_mode = #tpu.pipeline_mode<synchronous>, transform_indices = @transform_7, window_bounds = array<i64: 1, 32>}, {pipeline_mode = #tpu.pipeline_mode<synchronous>, transform_indices = @transform_8, window_bounds = array<i64: 32, 96>}, {pipeline_mode = #tpu.pipeline_mode<synchronous>, transform_indices = @transform_9, window_bounds = array<i64: 1, 96>}, {pipeline_mode = #tpu.pipeline_mode<synchronous>, transform_indices = @transform_10, window_bounds = array<i64: 32, 32>}, {pipeline_mode = #tpu.pipeline_mode<synchronous>, transform_indices = @transform_11, window_bounds = array<i64: 1, 32>}, {pipeline_mode = #tpu.pipeline_mode<synchronous>, transform_indices = @transform_12, window_bounds = array<i64: 1, 32>}, {pipeline_mode = #tpu.pipeline_mode<synchronous>, transform_indices = @transform_13, window_bounds = array<i64: 1, 32>}, {pipeline_mode = #tpu.pipeline_mode<synchronous>, transform_indices = @transform_14, window_bounds = array<i64: 32, 128>}, {pipeline_mode = #tpu.pipeline_mode<synchronous>, transform_indices = @transform_15, window_bounds = array<i64: 1, 128>}, {pipeline_mode = #tpu.pipeline_mode<synchronous>, transform_indices = @transform_16, window_bounds = array<i64: 128, 32>}, {pipeline_mode = #tpu.pipeline_mode<synchronous>, transform_indices = @transform_17, window_bounds = array<i64: 1, 32>}, {pipeline_mode = #tpu.pipeline_mode<synchronous>, transform_indices = @transform_18, window_bounds = array<i64: 1, 32>}, {pipeline_mode = #tpu.pipeline_mode<synchronous>, transform_indices = @transform_19, window_bounds = array<i64: 1, 32>}, {pipeline_mode = #tpu.pipeline_mode<synchronous>, transform_indices = @transform_20, window_bounds = array<i64: 32, 32>}, {pipeline_mode = #tpu.pipeline_mode<synchronous>, transform_indices = @transform_21, window_bounds = array<i64: 1, 32>}, {pipeline_mode = #tpu.pipeline_mode<synchronous>, transform_indices = @transform_22, window_bounds = array<i64: 32, 32>}, {pipeline_mode = #tpu.pipeline_mode<synchronous>, transform_indices = @transform_23, window_bounds = array<i64: 1, 32>}, {pipeline_mode = #tpu.pipeline_mode<synchronous>, transform_indices = @transform_24, window_bounds = array<i64: 12, 32>}, {pipeline_mode = #tpu.pipeline_mode<synchronous>, transform_indices = @transform_25, window_bounds = array<i64: 1, 32>}, {pipeline_mode = #tpu.pipeline_mode<synchronous>, transform_indices = @transform_26, window_bounds = array<i64: 1, 32>}, {pipeline_mode = #tpu.pipeline_mode<synchronous>, transform_indices = @transform_27, window_bounds = array<i64: 32, 96>}, {pipeline_mode = #tpu.pipeline_mode<synchronous>, transform_indices = @transform_28, window_bounds = array<i64: 1, 96>}, {pipeline_mode = #tpu.pipeline_mode<synchronous>, transform_indices = @transform_29, window_bounds = array<i64: 32, 32>}, {pipeline_mode = #tpu.pipeline_mode<synchronous>, transform_indices = @transform_30, window_bounds = array<i64: 1, 32>}, {pipeline_mode = #tpu.pipeline_mode<synchronous>, transform_indices = @transform_31, window_bounds = array<i64: 1, 32>}, {pipeline_mode = #tpu.pipeline_mode<synchronous>, transform_indices = @transform_32, window_bounds = array<i64: 1, 32>}, {pipeline_mode = #tpu.pipeline_mode<synchronous>, transform_indices = @transform_33, window_bounds = array<i64: 32, 128>}, {pipeline_mode = #tpu.pipeline_mode<synchronous>, transform_indices = @transform_34, window_bounds = array<i64: 1, 128>}, {pipeline_mode = #tpu.pipeline_mode<synchronous>, transform_indices = @transform_35, window_bounds = array<i64: 128, 32>}, {pipeline_mode = #tpu.pipeline_mode<synchronous>, transform_indices = @transform_36, window_bounds = array<i64: 1, 32>}, {pipeline_mode = #tpu.pipeline_mode<synchronous>, transform_indices = @transform_37, window_bounds = array<i64: 1, 32>}, {pipeline_mode = #tpu.pipeline_mode<synchronous>, transform_indices = @transform_38, window_bounds = array<i64: 1, 32>}, {pipeline_mode = #tpu.pipeline_mode<synchronous>, transform_indices = @transform_39, window_bounds = array<i64: 32, 64>}, {pipeline_mode = #tpu.pipeline_mode<synchronous>, transform_indices = @transform_40, window_bounds = array<i64: 1, 64>}, {transform_indices = @transform_41, window_bounds = array<i64: 1, 8, 128>}, {transform_indices = @transform_42, window_bounds = array<i64: 1, 8, 128>}]} {
    %c0 = arith.constant 0 : index
    %c0_0 = arith.constant 0 : index
    %c0_1 = arith.constant 0 : index
    %0 = vector.load %arg1[%c0, %c0_0, %c0_1] : memref<1x4x192xf32, #tpu.memory_space<vmem>>, vector<1x4x192xf32>
    %1 = vector.shape_cast %0 : vector<1x4x192xf32> to vector<4x192xf32>
    %c0_2 = arith.constant 0 : index
    %c0_3 = arith.constant 0 : index
    %2 = vector.load %arg4[%c0_2, %c0_3] : memref<192x32xf32, #tpu.memory_space<vmem>>, vector<192x32xf32>
    %3 = arith.truncf %1 : vector<4x192xf32> to vector<4x192xbf16>
    %4 = arith.truncf %2 : vector<192x32xf32> to vector<192x32xbf16>
    %cst = arith.constant dense<0.000000e+00> : vector<4x32xf32>
    %5 = tpu.matmul %3, %4, %cst {dimension_numbers = #tpu.dot_dimension_numbers<[1], [0], [0], [1], [0, 0, 1, 1], [], []>} : vector<4x192xbf16>, vector<192x32xbf16>, vector<4x32xf32> -> vector<4x32xf32>
    %c0_4 = arith.constant 0 : index
    %c0_5 = arith.constant 0 : index
    %6 = vector.load %arg5[%c0_4, %c0_5] : memref<1x32xf32, #tpu.memory_space<vmem>>, vector<1x32xf32>
    %7 = vector.broadcast %6 : vector<1x32xf32> to vector<4x32xf32>
    %8 = arith.addf %5, %7 : vector<4x32xf32>
    %c0_6 = arith.constant 0 : index
    %c0_7 = arith.constant 0 : index
    %9 = vector.load %arg6[%c0_6, %c0_7] : memref<4x32xf32, #tpu.memory_space<vmem>>, vector<4x32xf32>
    %10 = arith.addf %8, %9 : vector<4x32xf32>
    %c0_8 = arith.constant 0 : index
    %c0_9 = arith.constant 0 : index
    %11 = vector.load %arg7[%c0_8, %c0_9] : memref<1x32xf32, #tpu.memory_space<vmem>>, vector<1x32xf32>
    %c0_10 = arith.constant 0 : index
    %c0_11 = arith.constant 0 : index
    %12 = vector.load %arg8[%c0_10, %c0_11] : memref<1x32xf32, #tpu.memory_space<vmem>>, vector<1x32xf32>
    %cst_12 = arith.constant dense<0.000000e+00> : vector<4xf32>
    %13 = vector.multi_reduction <add>, %10, %cst_12 [1] : vector<4x32xf32> to vector<4xf32>
    %14 = vector.shape_cast %13 : vector<4xf32> to vector<4x1xf32>
    %cst_13 = arith.constant 3.200000e+01 : f32
    %15 = vector.broadcast %cst_13 : f32 to vector<4x1xf32>
    %16 = arith.divf %14, %15 : vector<4x1xf32>
    %17 = vector.broadcast %16 : vector<4x1xf32> to vector<4x32xf32>
    %18 = arith.subf %10, %17 : vector<4x32xf32>
    %19 = arith.mulf %18, %18 : vector<4x32xf32>
    %cst_14 = arith.constant dense<0.000000e+00> : vector<4xf32>
    %20 = vector.multi_reduction <add>, %19, %cst_14 [1] : vector<4x32xf32> to vector<4xf32>
    %21 = vector.shape_cast %20 : vector<4xf32> to vector<4x1xf32>
    %cst_15 = arith.constant 3.200000e+01 : f32
    %22 = vector.broadcast %cst_15 : f32 to vector<4x1xf32>
    %23 = arith.divf %21, %22 : vector<4x1xf32>
    %24 = vector.broadcast %16 : vector<4x1xf32> to vector<4x32xf32>
    %25 = arith.subf %10, %24 : vector<4x32xf32>
    %cst_16 = arith.constant 9.99999974E-6 : f32
    %26 = vector.broadcast %cst_16 : f32 to vector<4x1xf32>
    %27 = arith.addf %23, %26 : vector<4x1xf32>
    %28 = math.rsqrt %27 : vector<4x1xf32>
    %29 = vector.broadcast %28 : vector<4x1xf32> to vector<4x32xf32>
    %30 = arith.mulf %25, %29 : vector<4x32xf32>
    %31 = vector.broadcast %11 : vector<1x32xf32> to vector<4x32xf32>
    %32 = arith.mulf %30, %31 : vector<4x32xf32>
    %33 = vector.broadcast %12 : vector<1x32xf32> to vector<4x32xf32>
    %34 = arith.addf %32, %33 : vector<4x32xf32>
    %c0_17 = arith.constant 0 : index
    %c0_18 = arith.constant 0 : index
    %35 = vector.load %arg9[%c0_17, %c0_18] : memref<32x96xf32, #tpu.memory_space<vmem>>, vector<32x96xf32>
    %c0_19 = arith.constant 0 : index
    %c0_20 = arith.constant 0 : index
    %36 = vector.load %arg10[%c0_19, %c0_20] : memref<1x96xf32, #tpu.memory_space<vmem>>, vector<1x96xf32>
    %c0_21 = arith.constant 0 : index
    %c0_22 = arith.constant 0 : index
    %37 = vector.load %arg11[%c0_21, %c0_22] : memref<32x32xf32, #tpu.memory_space<vmem>>, vector<32x32xf32>
    %c0_23 = arith.constant 0 : index
    %c0_24 = arith.constant 0 : index
    %38 = vector.load %arg12[%c0_23, %c0_24] : memref<1x32xf32, #tpu.memory_space<vmem>>, vector<1x32xf32>
    %39 = arith.truncf %34 : vector<4x32xf32> to vector<4x32xbf16>
    %40 = arith.truncf %35 : vector<32x96xf32> to vector<32x96xbf16>
    %cst_25 = arith.constant dense<0.000000e+00> : vector<4x96xf32>
    %41 = tpu.matmul %39, %40, %cst_25 {dimension_numbers = #tpu.dot_dimension_numbers<[1], [0], [0], [1], [0, 0, 1, 1], [], []>} : vector<4x32xbf16>, vector<32x96xbf16>, vector<4x96xf32> -> vector<4x96xf32>
    %42 = vector.broadcast %36 : vector<1x96xf32> to vector<4x96xf32>
    %43 = arith.addf %41, %42 : vector<4x96xf32>
    %44 = vector.extract_strided_slice %43 {offsets = [0, 0], sizes = [4, 8], strides = [1, 1]} : vector<4x96xf32> to vector<4x8xf32>
    %45 = vector.extract_strided_slice %43 {offsets = [0, 32], sizes = [4, 8], strides = [1, 1]} : vector<4x96xf32> to vector<4x8xf32>
    %46 = vector.extract_strided_slice %43 {offsets = [0, 64], sizes = [4, 8], strides = [1, 1]} : vector<4x96xf32> to vector<4x8xf32>
    %47 = arith.truncf %44 : vector<4x8xf32> to vector<4x8xbf16>
    %48 = arith.truncf %45 : vector<4x8xf32> to vector<4x8xbf16>
    %cst_26 = arith.constant dense<0.000000e+00> : vector<4x4xf32>
    %49 = tpu.matmul %47, %48, %cst_26 {dimension_numbers = #tpu.dot_dimension_numbers<[1], [1], [0], [0], [0, 0, 1, 0], [], []>} : vector<4x8xbf16>, vector<4x8xbf16>, vector<4x4xf32> -> vector<4x4xf32>
    %cst_27 = arith.constant 0.353553385 : f32
    %50 = vector.broadcast %cst_27 : f32 to vector<4x4xf32>
    %51 = arith.mulf %49, %50 : vector<4x4xf32>
    %cst_28 = arith.constant dense<0xFF800000> : vector<4xf32>
    %52 = vector.multi_reduction <maximumf>, %51, %cst_28 [1] : vector<4x4xf32> to vector<4xf32>
    %53 = vector.shape_cast %52 : vector<4xf32> to vector<4x1xf32>
    %54 = vector.broadcast %53 : vector<4x1xf32> to vector<4x4xf32>
    %55 = arith.subf %51, %54 : vector<4x4xf32>
    %56 = math.exp %55 : vector<4x4xf32>
    %cst_29 = arith.constant dense<0.000000e+00> : vector<4xf32>
    %57 = vector.multi_reduction <add>, %56, %cst_29 [1] : vector<4x4xf32> to vector<4xf32>
    %58 = vector.shape_cast %57 : vector<4xf32> to vector<4x1xf32>
    %59 = tpu.reciprocal %58 {approx = true} : vector<4x1xf32> -> vector<4x1xf32>
    %60 = vector.broadcast %59 : vector<4x1xf32> to vector<4x4xf32>
    %61 = arith.mulf %56, %60 : vector<4x4xf32>
    %62 = arith.truncf %61 : vector<4x4xf32> to vector<4x4xbf16>
    %63 = arith.truncf %46 : vector<4x8xf32> to vector<4x8xbf16>
    %cst_30 = arith.constant dense<0.000000e+00> : vector<4x8xf32>
    %64 = tpu.matmul %62, %63, %cst_30 {dimension_numbers = #tpu.dot_dimension_numbers<[1], [0], [0], [1], [0, 0, 1, 1], [], []>} : vector<4x4xbf16>, vector<4x8xbf16>, vector<4x8xf32> -> vector<4x8xf32>
    %65 = vector.extract_strided_slice %43 {offsets = [0, 8], sizes = [4, 8], strides = [1, 1]} : vector<4x96xf32> to vector<4x8xf32>
    %66 = vector.extract_strided_slice %43 {offsets = [0, 40], sizes = [4, 8], strides = [1, 1]} : vector<4x96xf32> to vector<4x8xf32>
    %67 = vector.extract_strided_slice %43 {offsets = [0, 72], sizes = [4, 8], strides = [1, 1]} : vector<4x96xf32> to vector<4x8xf32>
    %68 = arith.truncf %65 : vector<4x8xf32> to vector<4x8xbf16>
    %69 = arith.truncf %66 : vector<4x8xf32> to vector<4x8xbf16>
    %cst_31 = arith.constant dense<0.000000e+00> : vector<4x4xf32>
    %70 = tpu.matmul %68, %69, %cst_31 {dimension_numbers = #tpu.dot_dimension_numbers<[1], [1], [0], [0], [0, 0, 1, 0], [], []>} : vector<4x8xbf16>, vector<4x8xbf16>, vector<4x4xf32> -> vector<4x4xf32>
    %cst_32 = arith.constant 0.353553385 : f32
    %71 = vector.broadcast %cst_32 : f32 to vector<4x4xf32>
    %72 = arith.mulf %70, %71 : vector<4x4xf32>
    %cst_33 = arith.constant dense<0xFF800000> : vector<4xf32>
    %73 = vector.multi_reduction <maximumf>, %72, %cst_33 [1] : vector<4x4xf32> to vector<4xf32>
    %74 = vector.shape_cast %73 : vector<4xf32> to vector<4x1xf32>
    %75 = vector.broadcast %74 : vector<4x1xf32> to vector<4x4xf32>
    %76 = arith.subf %72, %75 : vector<4x4xf32>
    %77 = math.exp %76 : vector<4x4xf32>
    %cst_34 = arith.constant dense<0.000000e+00> : vector<4xf32>
    %78 = vector.multi_reduction <add>, %77, %cst_34 [1] : vector<4x4xf32> to vector<4xf32>
    %79 = vector.shape_cast %78 : vector<4xf32> to vector<4x1xf32>
    %80 = tpu.reciprocal %79 {approx = true} : vector<4x1xf32> -> vector<4x1xf32>
    %81 = vector.broadcast %80 : vector<4x1xf32> to vector<4x4xf32>
    %82 = arith.mulf %77, %81 : vector<4x4xf32>
    %83 = arith.truncf %82 : vector<4x4xf32> to vector<4x4xbf16>
    %84 = arith.truncf %67 : vector<4x8xf32> to vector<4x8xbf16>
    %cst_35 = arith.constant dense<0.000000e+00> : vector<4x8xf32>
    %85 = tpu.matmul %83, %84, %cst_35 {dimension_numbers = #tpu.dot_dimension_numbers<[1], [0], [0], [1], [0, 0, 1, 1], [], []>} : vector<4x4xbf16>, vector<4x8xbf16>, vector<4x8xf32> -> vector<4x8xf32>
    %86 = vector.extract_strided_slice %43 {offsets = [0, 16], sizes = [4, 8], strides = [1, 1]} : vector<4x96xf32> to vector<4x8xf32>
    %87 = vector.extract_strided_slice %43 {offsets = [0, 48], sizes = [4, 8], strides = [1, 1]} : vector<4x96xf32> to vector<4x8xf32>
    %88 = vector.extract_strided_slice %43 {offsets = [0, 80], sizes = [4, 8], strides = [1, 1]} : vector<4x96xf32> to vector<4x8xf32>
    %89 = arith.truncf %86 : vector<4x8xf32> to vector<4x8xbf16>
    %90 = arith.truncf %87 : vector<4x8xf32> to vector<4x8xbf16>
    %cst_36 = arith.constant dense<0.000000e+00> : vector<4x4xf32>
    %91 = tpu.matmul %89, %90, %cst_36 {dimension_numbers = #tpu.dot_dimension_numbers<[1], [1], [0], [0], [0, 0, 1, 0], [], []>} : vector<4x8xbf16>, vector<4x8xbf16>, vector<4x4xf32> -> vector<4x4xf32>
    %cst_37 = arith.constant 0.353553385 : f32
    %92 = vector.broadcast %cst_37 : f32 to vector<4x4xf32>
    %93 = arith.mulf %91, %92 : vector<4x4xf32>
    %cst_38 = arith.constant dense<0xFF800000> : vector<4xf32>
    %94 = vector.multi_reduction <maximumf>, %93, %cst_38 [1] : vector<4x4xf32> to vector<4xf32>
    %95 = vector.shape_cast %94 : vector<4xf32> to vector<4x1xf32>
    %96 = vector.broadcast %95 : vector<4x1xf32> to vector<4x4xf32>
    %97 = arith.subf %93, %96 : vector<4x4xf32>
    %98 = math.exp %97 : vector<4x4xf32>
    %cst_39 = arith.constant dense<0.000000e+00> : vector<4xf32>
    %99 = vector.multi_reduction <add>, %98, %cst_39 [1] : vector<4x4xf32> to vector<4xf32>
    %100 = vector.shape_cast %99 : vector<4xf32> to vector<4x1xf32>
    %101 = tpu.reciprocal %100 {approx = true} : vector<4x1xf32> -> vector<4x1xf32>
    %102 = vector.broadcast %101 : vector<4x1xf32> to vector<4x4xf32>
    %103 = arith.mulf %98, %102 : vector<4x4xf32>
    %104 = arith.truncf %103 : vector<4x4xf32> to vector<4x4xbf16>
    %105 = arith.truncf %88 : vector<4x8xf32> to vector<4x8xbf16>
    %cst_40 = arith.constant dense<0.000000e+00> : vector<4x8xf32>
    %106 = tpu.matmul %104, %105, %cst_40 {dimension_numbers = #tpu.dot_dimension_numbers<[1], [0], [0], [1], [0, 0, 1, 1], [], []>} : vector<4x4xbf16>, vector<4x8xbf16>, vector<4x8xf32> -> vector<4x8xf32>
    %107 = vector.extract_strided_slice %43 {offsets = [0, 24], sizes = [4, 8], strides = [1, 1]} : vector<4x96xf32> to vector<4x8xf32>
    %108 = vector.extract_strided_slice %43 {offsets = [0, 56], sizes = [4, 8], strides = [1, 1]} : vector<4x96xf32> to vector<4x8xf32>
    %109 = vector.extract_strided_slice %43 {offsets = [0, 88], sizes = [4, 8], strides = [1, 1]} : vector<4x96xf32> to vector<4x8xf32>
    %110 = arith.truncf %107 : vector<4x8xf32> to vector<4x8xbf16>
    %111 = arith.truncf %108 : vector<4x8xf32> to vector<4x8xbf16>
    %cst_41 = arith.constant dense<0.000000e+00> : vector<4x4xf32>
    %112 = tpu.matmul %110, %111, %cst_41 {dimension_numbers = #tpu.dot_dimension_numbers<[1], [1], [0], [0], [0, 0, 1, 0], [], []>} : vector<4x8xbf16>, vector<4x8xbf16>, vector<4x4xf32> -> vector<4x4xf32>
    %cst_42 = arith.constant 0.353553385 : f32
    %113 = vector.broadcast %cst_42 : f32 to vector<4x4xf32>
    %114 = arith.mulf %112, %113 : vector<4x4xf32>
    %cst_43 = arith.constant dense<0xFF800000> : vector<4xf32>
    %115 = vector.multi_reduction <maximumf>, %114, %cst_43 [1] : vector<4x4xf32> to vector<4xf32>
    %116 = vector.shape_cast %115 : vector<4xf32> to vector<4x1xf32>
    %117 = vector.broadcast %116 : vector<4x1xf32> to vector<4x4xf32>
    %118 = arith.subf %114, %117 : vector<4x4xf32>
    %119 = math.exp %118 : vector<4x4xf32>
    %cst_44 = arith.constant dense<0.000000e+00> : vector<4xf32>
    %120 = vector.multi_reduction <add>, %119, %cst_44 [1] : vector<4x4xf32> to vector<4xf32>
    %121 = vector.shape_cast %120 : vector<4xf32> to vector<4x1xf32>
    %122 = tpu.reciprocal %121 {approx = true} : vector<4x1xf32> -> vector<4x1xf32>
    %123 = vector.broadcast %122 : vector<4x1xf32> to vector<4x4xf32>
    %124 = arith.mulf %119, %123 : vector<4x4xf32>
    %125 = arith.truncf %124 : vector<4x4xf32> to vector<4x4xbf16>
    %126 = arith.truncf %109 : vector<4x8xf32> to vector<4x8xbf16>
    %cst_45 = arith.constant dense<0.000000e+00> : vector<4x8xf32>
    %127 = tpu.matmul %125, %126, %cst_45 {dimension_numbers = #tpu.dot_dimension_numbers<[1], [0], [0], [1], [0, 0, 1, 1], [], []>} : vector<4x4xbf16>, vector<4x8xbf16>, vector<4x8xf32> -> vector<4x8xf32>
    %128 = tpu.concatenate %64, %85, %106, %127 in 1 : vector<4x8xf32>, vector<4x8xf32>, vector<4x8xf32>, vector<4x8xf32> -> vector<4x32xf32>
    %129 = arith.truncf %128 : vector<4x32xf32> to vector<4x32xbf16>
    %130 = arith.truncf %37 : vector<32x32xf32> to vector<32x32xbf16>
    %cst_46 = arith.constant dense<0.000000e+00> : vector<4x32xf32>
    %131 = tpu.matmul %129, %130, %cst_46 {dimension_numbers = #tpu.dot_dimension_numbers<[1], [0], [0], [1], [0, 0, 1, 1], [], []>} : vector<4x32xbf16>, vector<32x32xbf16>, vector<4x32xf32> -> vector<4x32xf32>
    %132 = vector.broadcast %38 : vector<1x32xf32> to vector<4x32xf32>
    %133 = arith.addf %131, %132 : vector<4x32xf32>
    %134 = arith.addf %10, %133 : vector<4x32xf32>
    %c0_47 = arith.constant 0 : index
    %c0_48 = arith.constant 0 : index
    %135 = vector.load %arg13[%c0_47, %c0_48] : memref<1x32xf32, #tpu.memory_space<vmem>>, vector<1x32xf32>
    %c0_49 = arith.constant 0 : index
    %c0_50 = arith.constant 0 : index
    %136 = vector.load %arg14[%c0_49, %c0_50] : memref<1x32xf32, #tpu.memory_space<vmem>>, vector<1x32xf32>
    %cst_51 = arith.constant dense<0.000000e+00> : vector<4xf32>
    %137 = vector.multi_reduction <add>, %134, %cst_51 [1] : vector<4x32xf32> to vector<4xf32>
    %138 = vector.shape_cast %137 : vector<4xf32> to vector<4x1xf32>
    %cst_52 = arith.constant 3.200000e+01 : f32
    %139 = vector.broadcast %cst_52 : f32 to vector<4x1xf32>
    %140 = arith.divf %138, %139 : vector<4x1xf32>
    %141 = vector.broadcast %140 : vector<4x1xf32> to vector<4x32xf32>
    %142 = arith.subf %134, %141 : vector<4x32xf32>
    %143 = arith.mulf %142, %142 : vector<4x32xf32>
    %cst_53 = arith.constant dense<0.000000e+00> : vector<4xf32>
    %144 = vector.multi_reduction <add>, %143, %cst_53 [1] : vector<4x32xf32> to vector<4xf32>
    %145 = vector.shape_cast %144 : vector<4xf32> to vector<4x1xf32>
    %cst_54 = arith.constant 3.200000e+01 : f32
    %146 = vector.broadcast %cst_54 : f32 to vector<4x1xf32>
    %147 = arith.divf %145, %146 : vector<4x1xf32>
    %148 = vector.broadcast %140 : vector<4x1xf32> to vector<4x32xf32>
    %149 = arith.subf %134, %148 : vector<4x32xf32>
    %cst_55 = arith.constant 9.99999974E-6 : f32
    %150 = vector.broadcast %cst_55 : f32 to vector<4x1xf32>
    %151 = arith.addf %147, %150 : vector<4x1xf32>
    %152 = math.rsqrt %151 : vector<4x1xf32>
    %153 = vector.broadcast %152 : vector<4x1xf32> to vector<4x32xf32>
    %154 = arith.mulf %149, %153 : vector<4x32xf32>
    %155 = vector.broadcast %135 : vector<1x32xf32> to vector<4x32xf32>
    %156 = arith.mulf %154, %155 : vector<4x32xf32>
    %157 = vector.broadcast %136 : vector<1x32xf32> to vector<4x32xf32>
    %158 = arith.addf %156, %157 : vector<4x32xf32>
    %c0_56 = arith.constant 0 : index
    %c0_57 = arith.constant 0 : index
    %159 = vector.load %arg15[%c0_56, %c0_57] : memref<32x128xf32, #tpu.memory_space<vmem>>, vector<32x128xf32>
    %160 = arith.truncf %158 : vector<4x32xf32> to vector<4x32xbf16>
    %161 = arith.truncf %159 : vector<32x128xf32> to vector<32x128xbf16>
    %cst_58 = arith.constant dense<0.000000e+00> : vector<4x128xf32>
    %162 = tpu.matmul %160, %161, %cst_58 {dimension_numbers = #tpu.dot_dimension_numbers<[1], [0], [0], [1], [0, 0, 1, 1], [], []>} : vector<4x32xbf16>, vector<32x128xbf16>, vector<4x128xf32> -> vector<4x128xf32>
    %c0_59 = arith.constant 0 : index
    %c0_60 = arith.constant 0 : index
    %163 = vector.load %arg16[%c0_59, %c0_60] : memref<1x128xf32, #tpu.memory_space<vmem>>, vector<1x128xf32>
    %164 = vector.broadcast %163 : vector<1x128xf32> to vector<4x128xf32>
    %165 = arith.addf %162, %164 : vector<4x128xf32>
    %166 = arith.mulf %165, %165 : vector<4x128xf32>
    %167 = arith.mulf %165, %166 : vector<4x128xf32>
    %cst_61 = arith.constant 4.471500e-02 : f32
    %168 = vector.broadcast %cst_61 : f32 to vector<4x128xf32>
    %169 = arith.mulf %168, %167 : vector<4x128xf32>
    %170 = arith.addf %165, %169 : vector<4x128xf32>
    %cst_62 = arith.constant 0.797884583 : f32
    %171 = vector.broadcast %cst_62 : f32 to vector<4x128xf32>
    %172 = arith.mulf %171, %170 : vector<4x128xf32>
    %173 = math.tanh %172 : vector<4x128xf32>
    %cst_63 = arith.constant 1.000000e+00 : f32
    %174 = vector.broadcast %cst_63 : f32 to vector<4x128xf32>
    %175 = arith.addf %174, %173 : vector<4x128xf32>
    %cst_64 = arith.constant 5.000000e-01 : f32
    %176 = vector.broadcast %cst_64 : f32 to vector<4x128xf32>
    %177 = arith.mulf %176, %175 : vector<4x128xf32>
    %178 = arith.mulf %165, %177 : vector<4x128xf32>
    %c0_65 = arith.constant 0 : index
    %c0_66 = arith.constant 0 : index
    %179 = vector.load %arg17[%c0_65, %c0_66] : memref<128x32xf32, #tpu.memory_space<vmem>>, vector<128x32xf32>
    %180 = arith.truncf %178 : vector<4x128xf32> to vector<4x128xbf16>
    %181 = arith.truncf %179 : vector<128x32xf32> to vector<128x32xbf16>
    %cst_67 = arith.constant dense<0.000000e+00> : vector<4x32xf32>
    %182 = tpu.matmul %180, %181, %cst_67 {dimension_numbers = #tpu.dot_dimension_numbers<[1], [0], [0], [1], [0, 0, 1, 1], [], []>} : vector<4x128xbf16>, vector<128x32xbf16>, vector<4x32xf32> -> vector<4x32xf32>
    %183 = arith.addf %134, %182 : vector<4x32xf32>
    %c0_68 = arith.constant 0 : index
    %c0_69 = arith.constant 0 : index
    %184 = vector.load %arg18[%c0_68, %c0_69] : memref<1x32xf32, #tpu.memory_space<vmem>>, vector<1x32xf32>
    %185 = vector.broadcast %184 : vector<1x32xf32> to vector<4x32xf32>
    %186 = arith.addf %183, %185 : vector<4x32xf32>
    %c0_70 = arith.constant 0 : index
    %c0_71 = arith.constant 0 : index
    %187 = vector.load %arg19[%c0_70, %c0_71] : memref<1x32xf32, #tpu.memory_space<vmem>>, vector<1x32xf32>
    %c0_72 = arith.constant 0 : index
    %c0_73 = arith.constant 0 : index
    %188 = vector.load %arg20[%c0_72, %c0_73] : memref<1x32xf32, #tpu.memory_space<vmem>>, vector<1x32xf32>
    %cst_74 = arith.constant dense<0.000000e+00> : vector<4xf32>
    %189 = vector.multi_reduction <add>, %186, %cst_74 [1] : vector<4x32xf32> to vector<4xf32>
    %190 = vector.shape_cast %189 : vector<4xf32> to vector<4x1xf32>
    %cst_75 = arith.constant 3.200000e+01 : f32
    %191 = vector.broadcast %cst_75 : f32 to vector<4x1xf32>
    %192 = arith.divf %190, %191 : vector<4x1xf32>
    %193 = vector.broadcast %192 : vector<4x1xf32> to vector<4x32xf32>
    %194 = arith.subf %186, %193 : vector<4x32xf32>
    %195 = arith.mulf %194, %194 : vector<4x32xf32>
    %cst_76 = arith.constant dense<0.000000e+00> : vector<4xf32>
    %196 = vector.multi_reduction <add>, %195, %cst_76 [1] : vector<4x32xf32> to vector<4xf32>
    %197 = vector.shape_cast %196 : vector<4xf32> to vector<4x1xf32>
    %cst_77 = arith.constant 3.200000e+01 : f32
    %198 = vector.broadcast %cst_77 : f32 to vector<4x1xf32>
    %199 = arith.divf %197, %198 : vector<4x1xf32>
    %200 = vector.broadcast %192 : vector<4x1xf32> to vector<4x32xf32>
    %201 = arith.subf %186, %200 : vector<4x32xf32>
    %cst_78 = arith.constant 9.99999974E-6 : f32
    %202 = vector.broadcast %cst_78 : f32 to vector<4x1xf32>
    %203 = arith.addf %199, %202 : vector<4x1xf32>
    %204 = math.rsqrt %203 : vector<4x1xf32>
    %205 = vector.broadcast %204 : vector<4x1xf32> to vector<4x32xf32>
    %206 = arith.mulf %201, %205 : vector<4x32xf32>
    %207 = vector.broadcast %187 : vector<1x32xf32> to vector<4x32xf32>
    %208 = arith.mulf %206, %207 : vector<4x32xf32>
    %209 = vector.broadcast %188 : vector<1x32xf32> to vector<4x32xf32>
    %210 = arith.addf %208, %209 : vector<4x32xf32>
    %c0_79 = arith.constant 0 : index
    %c0_80 = arith.constant 0 : index
    %211 = vector.load %arg21[%c0_79, %c0_80] : memref<32x32xf32, #tpu.memory_space<vmem>>, vector<32x32xf32>
    %212 = arith.truncf %210 : vector<4x32xf32> to vector<4x32xbf16>
    %213 = arith.truncf %211 : vector<32x32xf32> to vector<32x32xbf16>
    %cst_81 = arith.constant dense<0.000000e+00> : vector<4x32xf32>
    %214 = tpu.matmul %212, %213, %cst_81 {dimension_numbers = #tpu.dot_dimension_numbers<[1], [0], [0], [1], [0, 0, 1, 1], [], []>} : vector<4x32xbf16>, vector<32x32xbf16>, vector<4x32xf32> -> vector<4x32xf32>
    %c0_82 = arith.constant 0 : index
    %c0_83 = arith.constant 0 : index
    %215 = vector.load %arg22[%c0_82, %c0_83] : memref<1x32xf32, #tpu.memory_space<vmem>>, vector<1x32xf32>
    %216 = vector.broadcast %215 : vector<1x32xf32> to vector<4x32xf32>
    %217 = arith.addf %214, %216 : vector<4x32xf32>
    %218 = arith.mulf %217, %217 : vector<4x32xf32>
    %219 = arith.mulf %217, %218 : vector<4x32xf32>
    %cst_84 = arith.constant 4.471500e-02 : f32
    %220 = vector.broadcast %cst_84 : f32 to vector<4x32xf32>
    %221 = arith.mulf %220, %219 : vector<4x32xf32>
    %222 = arith.addf %217, %221 : vector<4x32xf32>
    %cst_85 = arith.constant 0.797884583 : f32
    %223 = vector.broadcast %cst_85 : f32 to vector<4x32xf32>
    %224 = arith.mulf %223, %222 : vector<4x32xf32>
    %225 = math.tanh %224 : vector<4x32xf32>
    %cst_86 = arith.constant 1.000000e+00 : f32
    %226 = vector.broadcast %cst_86 : f32 to vector<4x32xf32>
    %227 = arith.addf %226, %225 : vector<4x32xf32>
    %cst_87 = arith.constant 5.000000e-01 : f32
    %228 = vector.broadcast %cst_87 : f32 to vector<4x32xf32>
    %229 = arith.mulf %228, %227 : vector<4x32xf32>
    %230 = arith.mulf %217, %229 : vector<4x32xf32>
    %c0_88 = arith.constant 0 : index
    %c0_89 = arith.constant 0 : index
    %231 = vector.load %arg23[%c0_88, %c0_89] : memref<32x32xf32, #tpu.memory_space<vmem>>, vector<32x32xf32>
    %232 = arith.truncf %230 : vector<4x32xf32> to vector<4x32xbf16>
    %233 = arith.truncf %231 : vector<32x32xf32> to vector<32x32xbf16>
    %cst_90 = arith.constant dense<0.000000e+00> : vector<4x32xf32>
    %234 = tpu.matmul %232, %233, %cst_90 {dimension_numbers = #tpu.dot_dimension_numbers<[1], [0], [0], [1], [0, 0, 1, 1], [], []>} : vector<4x32xbf16>, vector<32x32xbf16>, vector<4x32xf32> -> vector<4x32xf32>
    %c0_91 = arith.constant 0 : index
    %c0_92 = arith.constant 0 : index
    %235 = vector.load %arg24[%c0_91, %c0_92] : memref<1x32xf32, #tpu.memory_space<vmem>>, vector<1x32xf32>
    %236 = vector.broadcast %235 : vector<1x32xf32> to vector<4x32xf32>
    %237 = arith.addf %234, %236 : vector<4x32xf32>
    %c0_93 = arith.constant 0 : index
    %c0_94 = arith.constant 0 : index
    %c0_95 = arith.constant 0 : index
    %238 = vector.load %arg2[%c0_93, %c0_94, %c0_95] : memref<1x8x32xf32, #tpu.memory_space<vmem>>, vector<1x8x32xf32>
    %239 = vector.shape_cast %238 : vector<1x8x32xf32> to vector<8x32xf32>
    %240 = tpu.concatenate %237, %239 in 0 : vector<4x32xf32>, vector<8x32xf32> -> vector<12x32xf32>
    %c0_96 = arith.constant 0 : index
    %c0_97 = arith.constant 0 : index
    %241 = vector.load %arg25[%c0_96, %c0_97] : memref<12x32xf32, #tpu.memory_space<vmem>>, vector<12x32xf32>
    %242 = arith.addf %240, %241 : vector<12x32xf32>
    %243 = tpu.iota {dimensions = array<i32: 0>} : vector<12x12xi32>
    %244 = tpu.iota {dimensions = array<i32: 1>} : vector<12x12xi32>
    %245 = arith.cmpi sle, %244, %243 : vector<12x12xi32>
    %cst_98 = arith.constant 0.000000e+00 : f32
    %cst_99 = arith.constant -1.000000e+30 : f32
    %246 = vector.broadcast %cst_98 : f32 to vector<12x12xf32>
    %247 = vector.broadcast %cst_99 : f32 to vector<12x12xf32>
    %248 = arith.select %245, %246, %247 : vector<12x12xi1>, vector<12x12xf32>
    %c0_100 = arith.constant 0 : index
    %c0_101 = arith.constant 0 : index
    %249 = vector.load %arg26[%c0_100, %c0_101] : memref<1x32xf32, #tpu.memory_space<vmem>>, vector<1x32xf32>
    %c0_102 = arith.constant 0 : index
    %c0_103 = arith.constant 0 : index
    %250 = vector.load %arg27[%c0_102, %c0_103] : memref<1x32xf32, #tpu.memory_space<vmem>>, vector<1x32xf32>
    %cst_104 = arith.constant dense<0.000000e+00> : vector<12xf32>
    %251 = vector.multi_reduction <add>, %242, %cst_104 [1] : vector<12x32xf32> to vector<12xf32>
    %252 = vector.shape_cast %251 : vector<12xf32> to vector<12x1xf32>
    %cst_105 = arith.constant 3.200000e+01 : f32
    %253 = vector.broadcast %cst_105 : f32 to vector<12x1xf32>
    %254 = arith.divf %252, %253 : vector<12x1xf32>
    %255 = vector.broadcast %254 : vector<12x1xf32> to vector<12x32xf32>
    %256 = arith.subf %242, %255 : vector<12x32xf32>
    %257 = arith.mulf %256, %256 : vector<12x32xf32>
    %cst_106 = arith.constant dense<0.000000e+00> : vector<12xf32>
    %258 = vector.multi_reduction <add>, %257, %cst_106 [1] : vector<12x32xf32> to vector<12xf32>
    %259 = vector.shape_cast %258 : vector<12xf32> to vector<12x1xf32>
    %cst_107 = arith.constant 3.200000e+01 : f32
    %260 = vector.broadcast %cst_107 : f32 to vector<12x1xf32>
    %261 = arith.divf %259, %260 : vector<12x1xf32>
    %262 = vector.broadcast %254 : vector<12x1xf32> to vector<12x32xf32>
    %263 = arith.subf %242, %262 : vector<12x32xf32>
    %cst_108 = arith.constant 9.99999974E-6 : f32
    %264 = vector.broadcast %cst_108 : f32 to vector<12x1xf32>
    %265 = arith.addf %261, %264 : vector<12x1xf32>
    %266 = math.rsqrt %265 : vector<12x1xf32>
    %267 = vector.broadcast %266 : vector<12x1xf32> to vector<12x32xf32>
    %268 = arith.mulf %263, %267 : vector<12x32xf32>
    %269 = vector.broadcast %249 : vector<1x32xf32> to vector<12x32xf32>
    %270 = arith.mulf %268, %269 : vector<12x32xf32>
    %271 = vector.broadcast %250 : vector<1x32xf32> to vector<12x32xf32>
    %272 = arith.addf %270, %271 : vector<12x32xf32>
    %c0_109 = arith.constant 0 : index
    %c0_110 = arith.constant 0 : index
    %273 = vector.load %arg28[%c0_109, %c0_110] : memref<32x96xf32, #tpu.memory_space<vmem>>, vector<32x96xf32>
    %c0_111 = arith.constant 0 : index
    %c0_112 = arith.constant 0 : index
    %274 = vector.load %arg29[%c0_111, %c0_112] : memref<1x96xf32, #tpu.memory_space<vmem>>, vector<1x96xf32>
    %c0_113 = arith.constant 0 : index
    %c0_114 = arith.constant 0 : index
    %275 = vector.load %arg30[%c0_113, %c0_114] : memref<32x32xf32, #tpu.memory_space<vmem>>, vector<32x32xf32>
    %c0_115 = arith.constant 0 : index
    %c0_116 = arith.constant 0 : index
    %276 = vector.load %arg31[%c0_115, %c0_116] : memref<1x32xf32, #tpu.memory_space<vmem>>, vector<1x32xf32>
    %277 = arith.truncf %272 : vector<12x32xf32> to vector<12x32xbf16>
    %278 = arith.truncf %273 : vector<32x96xf32> to vector<32x96xbf16>
    %cst_117 = arith.constant dense<0.000000e+00> : vector<12x96xf32>
    %279 = tpu.matmul %277, %278, %cst_117 {dimension_numbers = #tpu.dot_dimension_numbers<[1], [0], [0], [1], [0, 0, 1, 1], [], []>} : vector<12x32xbf16>, vector<32x96xbf16>, vector<12x96xf32> -> vector<12x96xf32>
    %280 = vector.broadcast %274 : vector<1x96xf32> to vector<12x96xf32>
    %281 = arith.addf %279, %280 : vector<12x96xf32>
    %282 = vector.extract_strided_slice %281 {offsets = [0, 0], sizes = [12, 8], strides = [1, 1]} : vector<12x96xf32> to vector<12x8xf32>
    %283 = vector.extract_strided_slice %281 {offsets = [0, 32], sizes = [12, 8], strides = [1, 1]} : vector<12x96xf32> to vector<12x8xf32>
    %284 = vector.extract_strided_slice %281 {offsets = [0, 64], sizes = [12, 8], strides = [1, 1]} : vector<12x96xf32> to vector<12x8xf32>
    %285 = arith.truncf %282 : vector<12x8xf32> to vector<12x8xbf16>
    %286 = arith.truncf %283 : vector<12x8xf32> to vector<12x8xbf16>
    %cst_118 = arith.constant dense<0.000000e+00> : vector<12x12xf32>
    %287 = tpu.matmul %285, %286, %cst_118 {dimension_numbers = #tpu.dot_dimension_numbers<[1], [1], [0], [0], [0, 0, 1, 0], [], []>} : vector<12x8xbf16>, vector<12x8xbf16>, vector<12x12xf32> -> vector<12x12xf32>
    %cst_119 = arith.constant 0.353553385 : f32
    %288 = vector.broadcast %cst_119 : f32 to vector<12x12xf32>
    %289 = arith.mulf %287, %288 : vector<12x12xf32>
    %290 = arith.addf %289, %248 : vector<12x12xf32>
    %cst_120 = arith.constant dense<0xFF800000> : vector<12xf32>
    %291 = vector.multi_reduction <maximumf>, %290, %cst_120 [1] : vector<12x12xf32> to vector<12xf32>
    %292 = vector.shape_cast %291 : vector<12xf32> to vector<12x1xf32>
    %293 = vector.broadcast %292 : vector<12x1xf32> to vector<12x12xf32>
    %294 = arith.subf %290, %293 : vector<12x12xf32>
    %295 = math.exp %294 : vector<12x12xf32>
    %cst_121 = arith.constant dense<0.000000e+00> : vector<12xf32>
    %296 = vector.multi_reduction <add>, %295, %cst_121 [1] : vector<12x12xf32> to vector<12xf32>
    %297 = vector.shape_cast %296 : vector<12xf32> to vector<12x1xf32>
    %298 = tpu.reciprocal %297 {approx = true} : vector<12x1xf32> -> vector<12x1xf32>
    %299 = vector.broadcast %298 : vector<12x1xf32> to vector<12x12xf32>
    %300 = arith.mulf %295, %299 : vector<12x12xf32>
    %301 = arith.truncf %300 : vector<12x12xf32> to vector<12x12xbf16>
    %302 = arith.truncf %284 : vector<12x8xf32> to vector<12x8xbf16>
    %cst_122 = arith.constant dense<0.000000e+00> : vector<12x8xf32>
    %303 = tpu.matmul %301, %302, %cst_122 {dimension_numbers = #tpu.dot_dimension_numbers<[1], [0], [0], [1], [0, 0, 1, 1], [], []>} : vector<12x12xbf16>, vector<12x8xbf16>, vector<12x8xf32> -> vector<12x8xf32>
    %304 = vector.extract_strided_slice %281 {offsets = [0, 8], sizes = [12, 8], strides = [1, 1]} : vector<12x96xf32> to vector<12x8xf32>
    %305 = vector.extract_strided_slice %281 {offsets = [0, 40], sizes = [12, 8], strides = [1, 1]} : vector<12x96xf32> to vector<12x8xf32>
    %306 = vector.extract_strided_slice %281 {offsets = [0, 72], sizes = [12, 8], strides = [1, 1]} : vector<12x96xf32> to vector<12x8xf32>
    %307 = arith.truncf %304 : vector<12x8xf32> to vector<12x8xbf16>
    %308 = arith.truncf %305 : vector<12x8xf32> to vector<12x8xbf16>
    %cst_123 = arith.constant dense<0.000000e+00> : vector<12x12xf32>
    %309 = tpu.matmul %307, %308, %cst_123 {dimension_numbers = #tpu.dot_dimension_numbers<[1], [1], [0], [0], [0, 0, 1, 0], [], []>} : vector<12x8xbf16>, vector<12x8xbf16>, vector<12x12xf32> -> vector<12x12xf32>
    %cst_124 = arith.constant 0.353553385 : f32
    %310 = vector.broadcast %cst_124 : f32 to vector<12x12xf32>
    %311 = arith.mulf %309, %310 : vector<12x12xf32>
    %312 = arith.addf %311, %248 : vector<12x12xf32>
    %cst_125 = arith.constant dense<0xFF800000> : vector<12xf32>
    %313 = vector.multi_reduction <maximumf>, %312, %cst_125 [1] : vector<12x12xf32> to vector<12xf32>
    %314 = vector.shape_cast %313 : vector<12xf32> to vector<12x1xf32>
    %315 = vector.broadcast %314 : vector<12x1xf32> to vector<12x12xf32>
    %316 = arith.subf %312, %315 : vector<12x12xf32>
    %317 = math.exp %316 : vector<12x12xf32>
    %cst_126 = arith.constant dense<0.000000e+00> : vector<12xf32>
    %318 = vector.multi_reduction <add>, %317, %cst_126 [1] : vector<12x12xf32> to vector<12xf32>
    %319 = vector.shape_cast %318 : vector<12xf32> to vector<12x1xf32>
    %320 = tpu.reciprocal %319 {approx = true} : vector<12x1xf32> -> vector<12x1xf32>
    %321 = vector.broadcast %320 : vector<12x1xf32> to vector<12x12xf32>
    %322 = arith.mulf %317, %321 : vector<12x12xf32>
    %323 = arith.truncf %322 : vector<12x12xf32> to vector<12x12xbf16>
    %324 = arith.truncf %306 : vector<12x8xf32> to vector<12x8xbf16>
    %cst_127 = arith.constant dense<0.000000e+00> : vector<12x8xf32>
    %325 = tpu.matmul %323, %324, %cst_127 {dimension_numbers = #tpu.dot_dimension_numbers<[1], [0], [0], [1], [0, 0, 1, 1], [], []>} : vector<12x12xbf16>, vector<12x8xbf16>, vector<12x8xf32> -> vector<12x8xf32>
    %326 = vector.extract_strided_slice %281 {offsets = [0, 16], sizes = [12, 8], strides = [1, 1]} : vector<12x96xf32> to vector<12x8xf32>
    %327 = vector.extract_strided_slice %281 {offsets = [0, 48], sizes = [12, 8], strides = [1, 1]} : vector<12x96xf32> to vector<12x8xf32>
    %328 = vector.extract_strided_slice %281 {offsets = [0, 80], sizes = [12, 8], strides = [1, 1]} : vector<12x96xf32> to vector<12x8xf32>
    %329 = arith.truncf %326 : vector<12x8xf32> to vector<12x8xbf16>
    %330 = arith.truncf %327 : vector<12x8xf32> to vector<12x8xbf16>
    %cst_128 = arith.constant dense<0.000000e+00> : vector<12x12xf32>
    %331 = tpu.matmul %329, %330, %cst_128 {dimension_numbers = #tpu.dot_dimension_numbers<[1], [1], [0], [0], [0, 0, 1, 0], [], []>} : vector<12x8xbf16>, vector<12x8xbf16>, vector<12x12xf32> -> vector<12x12xf32>
    %cst_129 = arith.constant 0.353553385 : f32
    %332 = vector.broadcast %cst_129 : f32 to vector<12x12xf32>
    %333 = arith.mulf %331, %332 : vector<12x12xf32>
    %334 = arith.addf %333, %248 : vector<12x12xf32>
    %cst_130 = arith.constant dense<0xFF800000> : vector<12xf32>
    %335 = vector.multi_reduction <maximumf>, %334, %cst_130 [1] : vector<12x12xf32> to vector<12xf32>
    %336 = vector.shape_cast %335 : vector<12xf32> to vector<12x1xf32>
    %337 = vector.broadcast %336 : vector<12x1xf32> to vector<12x12xf32>
    %338 = arith.subf %334, %337 : vector<12x12xf32>
    %339 = math.exp %338 : vector<12x12xf32>
    %cst_131 = arith.constant dense<0.000000e+00> : vector<12xf32>
    %340 = vector.multi_reduction <add>, %339, %cst_131 [1] : vector<12x12xf32> to vector<12xf32>
    %341 = vector.shape_cast %340 : vector<12xf32> to vector<12x1xf32>
    %342 = tpu.reciprocal %341 {approx = true} : vector<12x1xf32> -> vector<12x1xf32>
    %343 = vector.broadcast %342 : vector<12x1xf32> to vector<12x12xf32>
    %344 = arith.mulf %339, %343 : vector<12x12xf32>
    %345 = arith.truncf %344 : vector<12x12xf32> to vector<12x12xbf16>
    %346 = arith.truncf %328 : vector<12x8xf32> to vector<12x8xbf16>
    %cst_132 = arith.constant dense<0.000000e+00> : vector<12x8xf32>
    %347 = tpu.matmul %345, %346, %cst_132 {dimension_numbers = #tpu.dot_dimension_numbers<[1], [0], [0], [1], [0, 0, 1, 1], [], []>} : vector<12x12xbf16>, vector<12x8xbf16>, vector<12x8xf32> -> vector<12x8xf32>
    %348 = vector.extract_strided_slice %281 {offsets = [0, 24], sizes = [12, 8], strides = [1, 1]} : vector<12x96xf32> to vector<12x8xf32>
    %349 = vector.extract_strided_slice %281 {offsets = [0, 56], sizes = [12, 8], strides = [1, 1]} : vector<12x96xf32> to vector<12x8xf32>
    %350 = vector.extract_strided_slice %281 {offsets = [0, 88], sizes = [12, 8], strides = [1, 1]} : vector<12x96xf32> to vector<12x8xf32>
    %351 = arith.truncf %348 : vector<12x8xf32> to vector<12x8xbf16>
    %352 = arith.truncf %349 : vector<12x8xf32> to vector<12x8xbf16>
    %cst_133 = arith.constant dense<0.000000e+00> : vector<12x12xf32>
    %353 = tpu.matmul %351, %352, %cst_133 {dimension_numbers = #tpu.dot_dimension_numbers<[1], [1], [0], [0], [0, 0, 1, 0], [], []>} : vector<12x8xbf16>, vector<12x8xbf16>, vector<12x12xf32> -> vector<12x12xf32>
    %cst_134 = arith.constant 0.353553385 : f32
    %354 = vector.broadcast %cst_134 : f32 to vector<12x12xf32>
    %355 = arith.mulf %353, %354 : vector<12x12xf32>
    %356 = arith.addf %355, %248 : vector<12x12xf32>
    %cst_135 = arith.constant dense<0xFF800000> : vector<12xf32>
    %357 = vector.multi_reduction <maximumf>, %356, %cst_135 [1] : vector<12x12xf32> to vector<12xf32>
    %358 = vector.shape_cast %357 : vector<12xf32> to vector<12x1xf32>
    %359 = vector.broadcast %358 : vector<12x1xf32> to vector<12x12xf32>
    %360 = arith.subf %356, %359 : vector<12x12xf32>
    %361 = math.exp %360 : vector<12x12xf32>
    %cst_136 = arith.constant dense<0.000000e+00> : vector<12xf32>
    %362 = vector.multi_reduction <add>, %361, %cst_136 [1] : vector<12x12xf32> to vector<12xf32>
    %363 = vector.shape_cast %362 : vector<12xf32> to vector<12x1xf32>
    %364 = tpu.reciprocal %363 {approx = true} : vector<12x1xf32> -> vector<12x1xf32>
    %365 = vector.broadcast %364 : vector<12x1xf32> to vector<12x12xf32>
    %366 = arith.mulf %361, %365 : vector<12x12xf32>
    %367 = arith.truncf %366 : vector<12x12xf32> to vector<12x12xbf16>
    %368 = arith.truncf %350 : vector<12x8xf32> to vector<12x8xbf16>
    %cst_137 = arith.constant dense<0.000000e+00> : vector<12x8xf32>
    %369 = tpu.matmul %367, %368, %cst_137 {dimension_numbers = #tpu.dot_dimension_numbers<[1], [0], [0], [1], [0, 0, 1, 1], [], []>} : vector<12x12xbf16>, vector<12x8xbf16>, vector<12x8xf32> -> vector<12x8xf32>
    %370 = tpu.concatenate %303, %325, %347, %369 in 1 : vector<12x8xf32>, vector<12x8xf32>, vector<12x8xf32>, vector<12x8xf32> -> vector<12x32xf32>
    %371 = arith.truncf %370 : vector<12x32xf32> to vector<12x32xbf16>
    %372 = arith.truncf %275 : vector<32x32xf32> to vector<32x32xbf16>
    %cst_138 = arith.constant dense<0.000000e+00> : vector<12x32xf32>
    %373 = tpu.matmul %371, %372, %cst_138 {dimension_numbers = #tpu.dot_dimension_numbers<[1], [0], [0], [1], [0, 0, 1, 1], [], []>} : vector<12x32xbf16>, vector<32x32xbf16>, vector<12x32xf32> -> vector<12x32xf32>
    %374 = vector.broadcast %276 : vector<1x32xf32> to vector<12x32xf32>
    %375 = arith.addf %373, %374 : vector<12x32xf32>
    %376 = arith.addf %242, %375 : vector<12x32xf32>
    %c0_139 = arith.constant 0 : index
    %c0_140 = arith.constant 0 : index
    %377 = vector.load %arg32[%c0_139, %c0_140] : memref<1x32xf32, #tpu.memory_space<vmem>>, vector<1x32xf32>
    %c0_141 = arith.constant 0 : index
    %c0_142 = arith.constant 0 : index
    %378 = vector.load %arg33[%c0_141, %c0_142] : memref<1x32xf32, #tpu.memory_space<vmem>>, vector<1x32xf32>
    %cst_143 = arith.constant dense<0.000000e+00> : vector<12xf32>
    %379 = vector.multi_reduction <add>, %376, %cst_143 [1] : vector<12x32xf32> to vector<12xf32>
    %380 = vector.shape_cast %379 : vector<12xf32> to vector<12x1xf32>
    %cst_144 = arith.constant 3.200000e+01 : f32
    %381 = vector.broadcast %cst_144 : f32 to vector<12x1xf32>
    %382 = arith.divf %380, %381 : vector<12x1xf32>
    %383 = vector.broadcast %382 : vector<12x1xf32> to vector<12x32xf32>
    %384 = arith.subf %376, %383 : vector<12x32xf32>
    %385 = arith.mulf %384, %384 : vector<12x32xf32>
    %cst_145 = arith.constant dense<0.000000e+00> : vector<12xf32>
    %386 = vector.multi_reduction <add>, %385, %cst_145 [1] : vector<12x32xf32> to vector<12xf32>
    %387 = vector.shape_cast %386 : vector<12xf32> to vector<12x1xf32>
    %cst_146 = arith.constant 3.200000e+01 : f32
    %388 = vector.broadcast %cst_146 : f32 to vector<12x1xf32>
    %389 = arith.divf %387, %388 : vector<12x1xf32>
    %390 = vector.broadcast %382 : vector<12x1xf32> to vector<12x32xf32>
    %391 = arith.subf %376, %390 : vector<12x32xf32>
    %cst_147 = arith.constant 9.99999974E-6 : f32
    %392 = vector.broadcast %cst_147 : f32 to vector<12x1xf32>
    %393 = arith.addf %389, %392 : vector<12x1xf32>
    %394 = math.rsqrt %393 : vector<12x1xf32>
    %395 = vector.broadcast %394 : vector<12x1xf32> to vector<12x32xf32>
    %396 = arith.mulf %391, %395 : vector<12x32xf32>
    %397 = vector.broadcast %377 : vector<1x32xf32> to vector<12x32xf32>
    %398 = arith.mulf %396, %397 : vector<12x32xf32>
    %399 = vector.broadcast %378 : vector<1x32xf32> to vector<12x32xf32>
    %400 = arith.addf %398, %399 : vector<12x32xf32>
    %c0_148 = arith.constant 0 : index
    %c0_149 = arith.constant 0 : index
    %401 = vector.load %arg34[%c0_148, %c0_149] : memref<32x128xf32, #tpu.memory_space<vmem>>, vector<32x128xf32>
    %402 = arith.truncf %400 : vector<12x32xf32> to vector<12x32xbf16>
    %403 = arith.truncf %401 : vector<32x128xf32> to vector<32x128xbf16>
    %cst_150 = arith.constant dense<0.000000e+00> : vector<12x128xf32>
    %404 = tpu.matmul %402, %403, %cst_150 {dimension_numbers = #tpu.dot_dimension_numbers<[1], [0], [0], [1], [0, 0, 1, 1], [], []>} : vector<12x32xbf16>, vector<32x128xbf16>, vector<12x128xf32> -> vector<12x128xf32>
    %c0_151 = arith.constant 0 : index
    %c0_152 = arith.constant 0 : index
    %405 = vector.load %arg35[%c0_151, %c0_152] : memref<1x128xf32, #tpu.memory_space<vmem>>, vector<1x128xf32>
    %406 = vector.broadcast %405 : vector<1x128xf32> to vector<12x128xf32>
    %407 = arith.addf %404, %406 : vector<12x128xf32>
    %408 = arith.mulf %407, %407 : vector<12x128xf32>
    %409 = arith.mulf %407, %408 : vector<12x128xf32>
    %cst_153 = arith.constant 4.471500e-02 : f32
    %410 = vector.broadcast %cst_153 : f32 to vector<12x128xf32>
    %411 = arith.mulf %410, %409 : vector<12x128xf32>
    %412 = arith.addf %407, %411 : vector<12x128xf32>
    %cst_154 = arith.constant 0.797884583 : f32
    %413 = vector.broadcast %cst_154 : f32 to vector<12x128xf32>
    %414 = arith.mulf %413, %412 : vector<12x128xf32>
    %415 = math.tanh %414 : vector<12x128xf32>
    %cst_155 = arith.constant 1.000000e+00 : f32
    %416 = vector.broadcast %cst_155 : f32 to vector<12x128xf32>
    %417 = arith.addf %416, %415 : vector<12x128xf32>
    %cst_156 = arith.constant 5.000000e-01 : f32
    %418 = vector.broadcast %cst_156 : f32 to vector<12x128xf32>
    %419 = arith.mulf %418, %417 : vector<12x128xf32>
    %420 = arith.mulf %407, %419 : vector<12x128xf32>
    %c0_157 = arith.constant 0 : index
    %c0_158 = arith.constant 0 : index
    %421 = vector.load %arg36[%c0_157, %c0_158] : memref<128x32xf32, #tpu.memory_space<vmem>>, vector<128x32xf32>
    %422 = arith.truncf %420 : vector<12x128xf32> to vector<12x128xbf16>
    %423 = arith.truncf %421 : vector<128x32xf32> to vector<128x32xbf16>
    %cst_159 = arith.constant dense<0.000000e+00> : vector<12x32xf32>
    %424 = tpu.matmul %422, %423, %cst_159 {dimension_numbers = #tpu.dot_dimension_numbers<[1], [0], [0], [1], [0, 0, 1, 1], [], []>} : vector<12x128xbf16>, vector<128x32xbf16>, vector<12x32xf32> -> vector<12x32xf32>
    %425 = arith.addf %376, %424 : vector<12x32xf32>
    %c0_160 = arith.constant 0 : index
    %c0_161 = arith.constant 0 : index
    %426 = vector.load %arg37[%c0_160, %c0_161] : memref<1x32xf32, #tpu.memory_space<vmem>>, vector<1x32xf32>
    %427 = vector.broadcast %426 : vector<1x32xf32> to vector<12x32xf32>
    %428 = arith.addf %425, %427 : vector<12x32xf32>
    %c0_162 = arith.constant 0 : index
    %c0_163 = arith.constant 0 : index
    %429 = vector.load %arg38[%c0_162, %c0_163] : memref<1x32xf32, #tpu.memory_space<vmem>>, vector<1x32xf32>
    %c0_164 = arith.constant 0 : index
    %c0_165 = arith.constant 0 : index
    %430 = vector.load %arg39[%c0_164, %c0_165] : memref<1x32xf32, #tpu.memory_space<vmem>>, vector<1x32xf32>
    %cst_166 = arith.constant dense<0.000000e+00> : vector<12xf32>
    %431 = vector.multi_reduction <add>, %428, %cst_166 [1] : vector<12x32xf32> to vector<12xf32>
    %432 = vector.shape_cast %431 : vector<12xf32> to vector<12x1xf32>
    %cst_167 = arith.constant 3.200000e+01 : f32
    %433 = vector.broadcast %cst_167 : f32 to vector<12x1xf32>
    %434 = arith.divf %432, %433 : vector<12x1xf32>
    %435 = vector.broadcast %434 : vector<12x1xf32> to vector<12x32xf32>
    %436 = arith.subf %428, %435 : vector<12x32xf32>
    %437 = arith.mulf %436, %436 : vector<12x32xf32>
    %cst_168 = arith.constant dense<0.000000e+00> : vector<12xf32>
    %438 = vector.multi_reduction <add>, %437, %cst_168 [1] : vector<12x32xf32> to vector<12xf32>
    %439 = vector.shape_cast %438 : vector<12xf32> to vector<12x1xf32>
    %cst_169 = arith.constant 3.200000e+01 : f32
    %440 = vector.broadcast %cst_169 : f32 to vector<12x1xf32>
    %441 = arith.divf %439, %440 : vector<12x1xf32>
    %442 = vector.broadcast %434 : vector<12x1xf32> to vector<12x32xf32>
    %443 = arith.subf %428, %442 : vector<12x32xf32>
    %cst_170 = arith.constant 9.99999974E-6 : f32
    %444 = vector.broadcast %cst_170 : f32 to vector<12x1xf32>
    %445 = arith.addf %441, %444 : vector<12x1xf32>
    %446 = math.rsqrt %445 : vector<12x1xf32>
    %447 = vector.broadcast %446 : vector<12x1xf32> to vector<12x32xf32>
    %448 = arith.mulf %443, %447 : vector<12x32xf32>
    %449 = vector.broadcast %429 : vector<1x32xf32> to vector<12x32xf32>
    %450 = arith.mulf %448, %449 : vector<12x32xf32>
    %451 = vector.broadcast %430 : vector<1x32xf32> to vector<12x32xf32>
    %452 = arith.addf %450, %451 : vector<12x32xf32>
    %c0_171 = arith.constant 0 : index
    %c0_172 = arith.constant 0 : index
    %453 = vector.load %arg40[%c0_171, %c0_172] : memref<32x64xf32, #tpu.memory_space<vmem>>, vector<32x64xf32>
    %454 = arith.truncf %452 : vector<12x32xf32> to vector<12x32xbf16>
    %455 = arith.truncf %453 : vector<32x64xf32> to vector<32x64xbf16>
    %cst_173 = arith.constant dense<0.000000e+00> : vector<12x64xf32>
    %456 = tpu.matmul %454, %455, %cst_173 {dimension_numbers = #tpu.dot_dimension_numbers<[1], [0], [0], [1], [0, 0, 1, 1], [], []>} : vector<12x32xbf16>, vector<32x64xbf16>, vector<12x64xf32> -> vector<12x64xf32>
    %c0_174 = arith.constant 0 : index
    %c0_175 = arith.constant 0 : index
    %457 = vector.load %arg41[%c0_174, %c0_175] : memref<1x64xf32, #tpu.memory_space<vmem>>, vector<1x64xf32>
    %458 = vector.broadcast %457 : vector<1x64xf32> to vector<12x64xf32>
    %459 = arith.addf %456, %458 : vector<12x64xf32>
    %460 = vector.extract_strided_slice %459 {offsets = [0, 0], sizes = [11, 64], strides = [1, 1]} : vector<12x64xf32> to vector<11x64xf32>
    %c0_176 = arith.constant 0 : index
    %c0_177 = arith.constant 0 : index
    %c0_178 = arith.constant 0 : index
    %461 = vector.load %arg3[%c0_176, %c0_177, %c0_178] : memref<1x11x1xi32, #tpu.memory_space<vmem>>, vector<1x11x1xi32>
    %462 = vector.shape_cast %461 : vector<1x11x1xi32> to vector<11x1xi32>
    %cst_179 = arith.constant dense<0xFF800000> : vector<11xf32>
    %463 = vector.multi_reduction <maximumf>, %460, %cst_179 [1] : vector<11x64xf32> to vector<11xf32>
    %464 = vector.shape_cast %463 : vector<11xf32> to vector<11x1xf32>
    %465 = vector.broadcast %464 : vector<11x1xf32> to vector<11x64xf32>
    %466 = arith.subf %460, %465 : vector<11x64xf32>
    %467 = math.exp %466 : vector<11x64xf32>
    %cst_180 = arith.constant dense<0.000000e+00> : vector<11xf32>
    %468 = vector.multi_reduction <add>, %467, %cst_180 [1] : vector<11x64xf32> to vector<11xf32>
    %469 = vector.shape_cast %468 : vector<11xf32> to vector<11x1xf32>
    %470 = math.log %469 : vector<11x1xf32>
    %471 = arith.addf %464, %470 : vector<11x1xf32>
    %472 = tpu.iota {dimensions = array<i32: 1>} : vector<11x64xi32>
    %473 = vector.broadcast %462 : vector<11x1xi32> to vector<11x64xi32>
    %474 = arith.cmpi eq, %472, %473 : vector<11x64xi32>
    %475 = arith.extui %474 : vector<11x64xi1> to vector<11x64xi32>
    %476 = arith.sitofp %475 : vector<11x64xi32> to vector<11x64xf32>
    %477 = arith.mulf %460, %476 : vector<11x64xf32>
    %cst_181 = arith.constant dense<0.000000e+00> : vector<11xf32>
    %478 = vector.multi_reduction <add>, %477, %cst_181 [1] : vector<11x64xf32> to vector<11xf32>
    %479 = vector.shape_cast %478 : vector<11xf32> to vector<11x1xf32>
    %c0_i32 = arith.constant 0 : i32
    %480 = vector.broadcast %c0_i32 : i32 to vector<11x1xi32>
    %481 = arith.cmpi sge, %462, %480 : vector<11x1xi32>
    %482 = arith.extui %481 : vector<11x1xi1> to vector<11x1xi32>
    %483 = arith.sitofp %482 : vector<11x1xi32> to vector<11x1xf32>
    %484 = arith.subf %471, %479 : vector<11x1xf32>
    %485 = arith.mulf %484, %483 : vector<11x1xf32>
    %486 = vector.shape_cast %485 : vector<11x1xf32> to vector<1x11x1xf32>
    %cst_182 = arith.constant dense<0.000000e+00> : vector<1xf32>
    %487 = vector.multi_reduction <add>, %486, %cst_182 [1, 2] : vector<1x11x1xf32> to vector<1xf32>
    %488 = vector.shape_cast %487 : vector<1xf32> to vector<1x1x1xf32>
    %489 = vector.extract %488[0, 0, 0] : f32 from vector<1x1x1xf32>
    %490 = vector.shape_cast %483 : vector<11x1xf32> to vector<1x11x1xf32>
    %cst_183 = arith.constant dense<0.000000e+00> : vector<1xf32>
    %491 = vector.multi_reduction <add>, %490, %cst_183 [1, 2] : vector<1x11x1xf32> to vector<1xf32>
    %492 = vector.shape_cast %491 : vector<1xf32> to vector<1x1x1xf32>
    %493 = vector.extract %492[0, 0, 0] : f32 from vector<1x1x1xf32>
    %494 = vector.broadcast %489 : f32 to vector<8x128xf32>
    %c0_184 = arith.constant 0 : index
    %c0_185 = arith.constant 0 : index
    %c0_186 = arith.constant 0 : index
    %495 = vector.load %arg42[%c0_184, %c0_185, %c0_186] : memref<1x8x128xf32, #tpu.memory_space<vmem>>, vector<1x8x128xf32>
    %496 = vector.shape_cast %495 : vector<1x8x128xf32> to vector<8x128xf32>
    %497 = vector.shape_cast %494 : vector<8x128xf32> to vector<1x8x128xf32>
    tpu.vector_store %arg42[%c0_184, %c0_185, %c0_186], %497 {strides = array<i32>} : memref<1x8x128xf32, #tpu.memory_space<vmem>>, vector<1x8x128xf32>,
    %498 = vector.broadcast %493 : f32 to vector<8x128xf32>
    %c0_187 = arith.constant 0 : index
    %c0_188 = arith.constant 0 : index
    %c0_189 = arith.constant 0 : index
    %499 = vector.load %arg43[%c0_187, %c0_188, %c0_189] : memref<1x8x128xf32, #tpu.memory_space<vmem>>, vector<1x8x128xf32>
    %500 = vector.shape_cast %499 : vector<1x8x128xf32> to vector<8x128xf32>
    %501 = vector.shape_cast %498 : vector<8x128xf32> to vector<1x8x128xf32>
    tpu.vector_store %arg43[%c0_187, %c0_188, %c0_189], %501 {strides = array<i32>} : memref<1x8x128xf32, #tpu.memory_space<vmem>>, vector<1x8x128xf32>,
    return
  }
  func.func @transform_0(%arg0: i32) -> (i32, i32, i32) {
    %c0_i32 = arith.constant 0 : i32
    %c0_i32_0 = arith.constant 0 : i32
    %c0_i32_1 = arith.constant 0 : i32
    return %arg0, %c0_i32, %c0_i32_0 : i32, i32, i32
  }
  func.func @transform_1(%arg0: i32) -> (i32, i32, i32) {
    %c0_i32 = arith.constant 0 : i32
    %c0_i32_0 = arith.constant 0 : i32
    %c0_i32_1 = arith.constant 0 : i32
    return %arg0, %c0_i32, %c0_i32_0 : i32, i32, i32
  }
  func.func @transform_2(%arg0: i32) -> (i32, i32, i32) {
    %c0_i32 = arith.constant 0 : i32
    %c0_i32_0 = arith.constant 0 : i32
    %c0_i32_1 = arith.constant 0 : i32
    return %arg0, %c0_i32, %c0_i32_0 : i32, i32, i32
  }
  func.func @transform_3(%arg0: i32) -> (i32, i32) {
    %c0_i32 = arith.constant 0 : i32
    %c0_i32_0 = arith.constant 0 : i32
    %c0_i32_1 = arith.constant 0 : i32
    return %c0_i32, %c0_i32_0 : i32, i32
  }
  func.func @transform_4(%arg0: i32) -> (i32, i32) {
    %c0_i32 = arith.constant 0 : i32
    %c0_i32_0 = arith.constant 0 : i32
    %c0_i32_1 = arith.constant 0 : i32
    return %c0_i32, %c0_i32_0 : i32, i32
  }
  func.func @transform_5(%arg0: i32) -> (i32, i32) {
    %c0_i32 = arith.constant 0 : i32
    %c0_i32_0 = arith.constant 0 : i32
    %c0_i32_1 = arith.constant 0 : i32
    return %c0_i32, %c0_i32_0 : i32, i32
  }
  func.func @transform_6(%arg0: i32) -> (i32, i32) {
    %c0_i32 = arith.constant 0 : i32
    %c0_i32_0 = arith.constant 0 : i32
    %c0_i32_1 = arith.constant 0 : i32
    return %c0_i32, %c0_i32_0 : i32, i32
  }
  func.func @transform_7(%arg0: i32) -> (i32, i32) {
    %c0_i32 = arith.constant 0 : i32
    %c0_i32_0 = arith.constant 0 : i32
    %c0_i32_1 = arith.constant 0 : i32
    return %c0_i32, %c0_i32_0 : i32, i32
  }
  func.func @transform_8(%arg0: i32) -> (i32, i32) {
    %c0_i32 = arith.constant 0 : i32
    %c0_i32_0 = arith.constant 0 : i32
    %c0_i32_1 = arith.constant 0 : i32
    return %c0_i32, %c0_i32_0 : i32, i32
  }
  func.func @transform_9(%arg0: i32) -> (i32, i32) {
    %c0_i32 = arith.constant 0 : i32
    %c0_i32_0 = arith.constant 0 : i32
    %c0_i32_1 = arith.constant 0 : i32
    return %c0_i32, %c0_i32_0 : i32, i32
  }
  func.func @transform_10(%arg0: i32) -> (i32, i32) {
    %c0_i32 = arith.constant 0 : i32
    %c0_i32_0 = arith.constant 0 : i32
    %c0_i32_1 = arith.constant 0 : i32
    return %c0_i32, %c0_i32_0 : i32, i32
  }
  func.func @transform_11(%arg0: i32) -> (i32, i32) {
    %c0_i32 = arith.constant 0 : i32
    %c0_i32_0 = arith.constant 0 : i32
    %c0_i32_1 = arith.constant 0 : i32
    return %c0_i32, %c0_i32_0 : i32, i32
  }
  func.func @transform_12(%arg0: i32) -> (i32, i32) {
    %c0_i32 = arith.constant 0 : i32
    %c0_i32_0 = arith.constant 0 : i32
    %c0_i32_1 = arith.constant 0 : i32
    return %c0_i32, %c0_i32_0 : i32, i32
  }
  func.func @transform_13(%arg0: i32) -> (i32, i32) {
    %c0_i32 = arith.constant 0 : i32
    %c0_i32_0 = arith.constant 0 : i32
    %c0_i32_1 = arith.constant 0 : i32
    return %c0_i32, %c0_i32_0 : i32, i32
  }
  func.func @transform_14(%arg0: i32) -> (i32, i32) {
    %c0_i32 = arith.constant 0 : i32
    %c0_i32_0 = arith.constant 0 : i32
    %c0_i32_1 = arith.constant 0 : i32
    return %c0_i32, %c0_i32_0 : i32, i32
  }
  func.func @transform_15(%arg0: i32) -> (i32, i32) {
    %c0_i32 = arith.constant 0 : i32
    %c0_i32_0 = arith.constant 0 : i32
    %c0_i32_1 = arith.constant 0 : i32
    return %c0_i32, %c0_i32_0 : i32, i32
  }
  func.func @transform_16(%arg0: i32) -> (i32, i32) {
    %c0_i32 = arith.constant 0 : i32
    %c0_i32_0 = arith.constant 0 : i32
    %c0_i32_1 = arith.constant 0 : i32
    return %c0_i32, %c0_i32_0 : i32, i32
  }
  func.func @transform_17(%arg0: i32) -> (i32, i32) {
    %c0_i32 = arith.constant 0 : i32
    %c0_i32_0 = arith.constant 0 : i32
    %c0_i32_1 = arith.constant 0 : i32
    return %c0_i32, %c0_i32_0 : i32, i32
  }
  func.func @transform_18(%arg0: i32) -> (i32, i32) {
    %c0_i32 = arith.constant 0 : i32
    %c0_i32_0 = arith.constant 0 : i32
    %c0_i32_1 = arith.constant 0 : i32
    return %c0_i32, %c0_i32_0 : i32, i32
  }
  func.func @transform_19(%arg0: i32) -> (i32, i32) {
    %c0_i32 = arith.constant 0 : i32
    %c0_i32_0 = arith.constant 0 : i32
    %c0_i32_1 = arith.constant 0 : i32
    return %c0_i32, %c0_i32_0 : i32, i32
  }
  func.func @transform_20(%arg0: i32) -> (i32, i32) {
    %c0_i32 = arith.constant 0 : i32
    %c0_i32_0 = arith.constant 0 : i32
    %c0_i32_1 = arith.constant 0 : i32
    return %c0_i32, %c0_i32_0 : i32, i32
  }
  func.func @transform_21(%arg0: i32) -> (i32, i32) {
    %c0_i32 = arith.constant 0 : i32
    %c0_i32_0 = arith.constant 0 : i32
    %c0_i32_1 = arith.constant 0 : i32
    return %c0_i32, %c0_i32_0 : i32, i32
  }
  func.func @transform_22(%arg0: i32) -> (i32, i32) {
    %c0_i32 = arith.constant 0 : i32
    %c0_i32_0 = arith.constant 0 : i32
    %c0_i32_1 = arith.constant 0 : i32
    return %c0_i32, %c0_i32_0 : i32, i32
  }
  func.func @transform_23(%arg0: i32) -> (i32, i32) {
    %c0_i32 = arith.constant 0 : i32
    %c0_i32_0 = arith.constant 0 : i32
    %c0_i32_1 = arith.constant 0 : i32
    return %c0_i32, %c0_i32_0 : i32, i32
  }
  func.func @transform_24(%arg0: i32) -> (i32, i32) {
    %c0_i32 = arith.constant 0 : i32
    %c0_i32_0 = arith.constant 0 : i32
    %c0_i32_1 = arith.constant 0 : i32
    return %c0_i32, %c0_i32_0 : i32, i32
  }
  func.func @transform_25(%arg0: i32) -> (i32, i32) {
    %c0_i32 = arith.constant 0 : i32
    %c0_i32_0 = arith.constant 0 : i32
    %c0_i32_1 = arith.constant 0 : i32
    return %c0_i32, %c0_i32_0 : i32, i32
  }
  func.func @transform_26(%arg0: i32) -> (i32, i32) {
    %c0_i32 = arith.constant 0 : i32
    %c0_i32_0 = arith.constant 0 : i32
    %c0_i32_1 = arith.constant 0 : i32
    return %c0_i32, %c0_i32_0 : i32, i32
  }
  func.func @transform_27(%arg0: i32) -> (i32, i32) {
    %c0_i32 = arith.constant 0 : i32
    %c0_i32_0 = arith.constant 0 : i32
    %c0_i32_1 = arith.constant 0 : i32
    return %c0_i32, %c0_i32_0 : i32, i32
  }
  func.func @transform_28(%arg0: i32) -> (i32, i32) {
    %c0_i32 = arith.constant 0 : i32
    %c0_i32_0 = arith.constant 0 : i32
    %c0_i32_1 = arith.constant 0 : i32
    return %c0_i32, %c0_i32_0 : i32, i32
  }
  func.func @transform_29(%arg0: i32) -> (i32, i32) {
    %c0_i32 = arith.constant 0 : i32
    %c0_i32_0 = arith.constant 0 : i32
    %c0_i32_1 = arith.constant 0 : i32
    return %c0_i32, %c0_i32_0 : i32, i32
  }
  func.func @transform_30(%arg0: i32) -> (i32, i32) {
    %c0_i32 = arith.constant 0 : i32
    %c0_i32_0 = arith.constant 0 : i32
    %c0_i32_1 = arith.constant 0 : i32
    return %c0_i32, %c0_i32_0 : i32, i32
  }
  func.func @transform_31(%arg0: i32) -> (i32, i32) {
    %c0_i32 = arith.constant 0 : i32
    %c0_i32_0 = arith.constant 0 : i32
    %c0_i32_1 = arith.constant 0 : i32
    return %c0_i32, %c0_i32_0 : i32, i32
  }
  func.func @transform_32(%arg0: i32) -> (i32, i32) {
    %c0_i32 = arith.constant 0 : i32
    %c0_i32_0 = arith.constant 0 : i32
    %c0_i32_1 = arith.constant 0 : i32
    return %c0_i32, %c0_i32_0 : i32, i32
  }
  func.func @transform_33(%arg0: i32) -> (i32, i32) {
    %c0_i32 = arith.constant 0 : i32
    %c0_i32_0 = arith.constant 0 : i32
    %c0_i32_1 = arith.constant 0 : i32
    return %c0_i32, %c0_i32_0 : i32, i32
  }
  func.func @transform_34(%arg0: i32) -> (i32, i32) {
    %c0_i32 = arith.constant 0 : i32
    %c0_i32_0 = arith.constant 0 : i32
    %c0_i32_1 = arith.constant 0 : i32
    return %c0_i32, %c0_i32_0 : i32, i32
  }
  func.func @transform_35(%arg0: i32) -> (i32, i32) {
    %c0_i32 = arith.constant 0 : i32
    %c0_i32_0 = arith.constant 0 : i32
    %c0_i32_1 = arith.constant 0 : i32
    return %c0_i32, %c0_i32_0 : i32, i32
  }
  func.func @transform_36(%arg0: i32) -> (i32, i32) {
    %c0_i32 = arith.constant 0 : i32
    %c0_i32_0 = arith.constant 0 : i32
    %c0_i32_1 = arith.constant 0 : i32
    return %c0_i32, %c0_i32_0 : i32, i32
  }
  func.func @transform_37(%arg0: i32) -> (i32, i32) {
    %c0_i32 = arith.constant 0 : i32
    %c0_i32_0 = arith.constant 0 : i32
    %c0_i32_1 = arith.constant 0 : i32
    return %c0_i32, %c0_i32_0 : i32, i32
  }
  func.func @transform_38(%arg0: i32) -> (i32, i32) {
    %c0_i32 = arith.constant 0 : i32
    %c0_i32_0 = arith.constant 0 : i32
    %c0_i32_1 = arith.constant 0 : i32
    return %c0_i32, %c0_i32_0 : i32, i32
  }
  func.func @transform_39(%arg0: i32) -> (i32, i32) {
    %c0_i32 = arith.constant 0 : i32
    %c0_i32_0 = arith.constant 0 : i32
    %c0_i32_1 = arith.constant 0 : i32
    return %c0_i32, %c0_i32_0 : i32, i32
  }
  func.func @transform_40(%arg0: i32) -> (i32, i32) {
    %c0_i32 = arith.constant 0 : i32
    %c0_i32_0 = arith.constant 0 : i32
    %c0_i32_1 = arith.constant 0 : i32
    return %c0_i32, %c0_i32_0 : i32, i32
  }
  func.func @transform_41(%arg0: i32) -> (i32, i32, i32) {
    %c0_i32 = arith.constant 0 : i32
    %c0_i32_0 = arith.constant 0 : i32
    %c0_i32_1 = arith.constant 0 : i32
    return %arg0, %c0_i32, %c0_i32_0 : i32, i32, i32
  }
  func.func @transform_42(%arg0: i32) -> (i32, i32, i32) {
    %c0_i32 = arith.constant 0 : i32
    %c0_i32_0 = arith.constant 0 : i32
    %c0_i32_1 = arith.constant 0 : i32
    return %arg0, %c0_i32, %c0_i32_0 : i32, i32, i32
  }
}

</mosaic_0001>

<bundles_post_ra>
// kernel: llava_forward.1
= control target key start
LH: loop header
LB: loop body
LE: loop exit
PB: predicated region body
PF: predicated region fallthrough
CT: control target
= control target key end

     0   :  { %s4135_s6 = smov 1   ;;  %s4136_s10 = smov 2   ;;  %s4876_s0 = inlined_call_operand.smem [shape: u32[43], index: -1, kind: input, shape index: {}] }
   0x1   :  { %s4203_s5 = sld [smem:[%s4876_s0]]   ;;  %s4137_s14 = smov 3  }
   0x2   :  { %s4208_s9 = sld [smem:[%s4876_s0 + %s4135_s6]]   ;;  %s4138_s18 = smov 4  }
   0x3   :  { %s4213_s13 = sld [smem:[%s4876_s0 + %s4136_s10]]   ;;  %s4139_s22 = smov 5  }
   0x4   :  { %s4218_s17 = sld [smem:[%s4876_s0 + %s4137_s14]]   ;;  %s4140_s26 = smov 6  }
   0x5   :  { %s4223_s21 = sld [smem:[%s4876_s0 + %s4138_s18]]   ;;  %s4141_s30 = smov 7  }
   0x6   :  { %s4228_s25 = sld [smem:[%s4876_s0 + %s4139_s22]]   ;;  %s4142_s4 = smov 8  }
   0x7   :  { %s4233_s29 = sld [smem:[%s4876_s0 + %s4140_s26]]   ;;  %s4143_s10 = smov 9  }
   0x8   :  { %4896 = sst [smem:[#allocation2_spill]] %s4208_s9  ;;  %s4144_s15 = smov 10  }
   0x9   :  { %4897 = sst [smem:[#allocation3_spill]] %s4213_s13  ;;  %s4145_s20 = smov 11  }
   0xa   :  { %s4238_s3 = sld [smem:[%s4876_s0 + %s4141_s30]]   ;;  %s4146_s26 = smov 12  }
   0xb   :  { %s4243_s8 = sld [smem:[%s4876_s0 + %s4142_s4]]   ;;  %s4147_s1 = smov 13  }
   0xc   :  { %s4248_s14 = sld [smem:[%s4876_s0 + %s4143_s10]]   ;;  %s4148_s7 = smov 14  }
   0xd   :  { %s4253_s19 = sld [smem:[%s4876_s0 + %s4144_s15]]   ;;  %s4149_s15 = smov 15  }
   0xe   :  { %s4258_s24 = sld [smem:[%s4876_s0 + %s4145_s20]]   ;;  %s4150_s22 = smov 16  }
   0xf   :  { %s4263_s30 = sld [smem:[%s4876_s0 + %s4146_s26]]   ;;  %s4151_s28 = smov 17  }
  0x10   :  { %s4268_s6 = sld [smem:[%s4876_s0 + %s4147_s1]]  }
  0x11   :  { %s4273_s12 = sld [smem:[%s4876_s0 + %s4148_s7]]   ;;  %s4152_s7 = smov 18  }
  0x12   :  { %s4278_s20 = sld [smem:[%s4876_s0 + %s4149_s15]]   ;;  %s4153_s15 = smov 19  }
  0x13   :  { %s4283_s27 = sld [smem:[%s4876_s0 + %s4150_s22]]   ;;  %s4154_s22 = smov 20  }
  0x14   :  { %s4288_s4 = sld [smem:[%s4876_s0 + %s4151_s28]]   ;;  %s4155_s28 = smov 21  }
  0x15   :  { %s4293_s13 = sld [smem:[%s4876_s0 + %s4152_s7]]   ;;  %s4156_s7 = smov 22  }
  0x16   :  { %s4298_s9 = sld [smem:[%s4876_s0 + %s4153_s15]]   ;;  %s4157_s15 = smov 23  }
  0x18   :  { %4898 = sst [smem:[#allocation4_spill]] %s4278_s20 }
  0x19   :  { %s4303_s20 = sld [smem:[%s4876_s0 + %s4154_s22]]   ;;  %s4158_s22 = smov 24  }
  0x1a   :  { %4899 = sst [smem:[#allocation5_spill]] %s4288_s4 }
  0x1b   :  { %4900 = sst [smem:[#allocation6_spill]] %s4293_s13 }
  0x1c   :  { %4901 = sst [smem:[#allocation7_spill]] %s4298_s9 }
  0x1d   :  { %s4308_s4 = sld [smem:[%s4876_s0 + %s4155_s28]]   ;;  %s4159_s28 = smov 25  }
  0x1e   :  { %s4313_s13 = sld [smem:[%s4876_s0 + %s4156_s7]]   ;;  %s4160_s7 = smov 26  }
  0x1f   :  { %4902 = sst [smem:[#allocation8_spill]] %s4303_s20 }
  0x20   :  { %s4318_s9 = sld [smem:[%s4876_s0 + %s4157_s15]]   ;;  %s4161_s15 = smov 27  }
  0x21   :  { %s4323_s20 = sld [smem:[%s4876_s0 + %s4158_s22]]   ;;  %s4162_s22 = smov 28  }
  0x23   :  { %4903 = sst [smem:[#allocation9_spill]] %s4308_s4 }
  0x24   :  { %4904 = sst [smem:[#allocation10_spill]] %s4313_s13 }
  0x25   :  { %s4328_s4 = sld [smem:[%s4876_s0 + %s4159_s28]]   ;;  %s4163_s28 = smov 29  }
  0x26   :  { %4905 = sst [smem:[#allocation11_spill]] %s4318_s9 }
  0x27   :  { %4906 = sst [smem:[#allocation12_spill]] %s4323_s20 }
  0x28   :  { %s4333_s13 = sld [smem:[%s4876_s0 + %s4160_s7]]   ;;  %s4164_s7 = smov 30  }
  0x29   :  { %s4338_s9 = sld [smem:[%s4876_s0 + %s4161_s15]]   ;;  %s4165_s15 = smov 31  }
  0x2a   :  { %s4343_s20 = sld [smem:[%s4876_s0 + %s4162_s22]]   ;;  %s4166_s22 = smov 32  }
  0x2b   :  { %4907 = sst [smem:[#allocation13_spill]] %s4328_s4 }
  0x2c   :  { %s4348_s4 = sld [smem:[%s4876_s0 + %s4163_s28]]   ;;  %s4167_s28 = smov 33  }
  0x2e   :  { %4908 = sst [smem:[#allocation14_spill]] %s4333_s13 }
  0x2f   :  { %4909 = sst [smem:[#allocation15_spill]] %s4338_s9 }
  0x30   :  { %4910 = sst [smem:[#allocation16_spill]] %s4343_s20 }
  0x31   :  { %s4353_s13 = sld [smem:[%s4876_s0 + %s4164_s7]]   ;;  %s4168_s7 = smov 34  }
  0x32   :  { %4911 = sst [smem:[#allocation17_spill]] %s4348_s4 }
  0x33   :  { %s4358_s9 = sld [smem:[%s4876_s0 + %s4165_s15]]   ;;  %s4169_s15 = smov 35  }
  0x34   :  { %s4363_s20 = sld [smem:[%s4876_s0 + %s4166_s22]]   ;;  %s4170_s22 = smov 36  }
  0x35   :  { %s4368_s4 = sld [smem:[%s4876_s0 + %s4167_s28]]   ;;  %s4171_s28 = smov 37  }
  0x37   :  { %4912 = sst [smem:[#allocation18_spill]] %s4353_s13 }
  0x38   :  { %s4373_s13 = sld [smem:[%s4876_s0 + %s4168_s7]]   ;;  %s4172_s7 = smov 38  }
  0x39   :  { %4913 = sst [smem:[#allocation19_spill]] %s4358_s9 }
  0x3a   :  { %4914 = sst [smem:[#allocation20_spill]] %s4363_s20 }
  0x3b   :  { %4915 = sst [smem:[#allocation21_spill]] %s4368_s4 }
  0x3c   :  { %s4378_s9 = sld [smem:[%s4876_s0 + %s4169_s15]]   ;;  %s4173_s15 = smov 39  }
  0x3d   :  { %s4383_s20 = sld [smem:[%s4876_s0 + %s4170_s22]]   ;;  %s4174_s22 = smov 40  }
  0x3e   :  { %4916 = sst [smem:[#allocation22_spill]] %s4373_s13 }
  0x3f   :  { %s4388_s4 = sld [smem:[%s4876_s0 + %s4171_s28]]   ;;  %s4175_s28 = smov 41  }
  0x40   :  { %s4393_s13 = sld [smem:[%s4876_s0 + %s4172_s7]]   ;;  %s4176_s7 = smov 42  }
  0x42   :  { %4917 = sst [smem:[#allocation23_spill]] %s4378_s9 }
  0x43   :  { %4918 = sst [smem:[#allocation24_spill]] %s4383_s20 }
  0x44   :  { %s4398_s9 = sld [smem:[%s4876_s0 + %s4173_s15]]   ;;  %s4415_s15 = smov 0  }
  0x45   :  { %4919 = sst [smem:[#allocation25_spill]] %s4388_s4 }
  0x46   :  { %4920 = sst [smem:[#allocation26_spill]] %s4393_s13 }
  0x47   :  { %s4403_s20 = sld [smem:[%s4876_s0 + %s4174_s22]]  }
  0x48   :  { %s4408_s4 = sld [smem:[%s4876_s0 + %s4175_s28]]  }
  0x49   :  { %s4413_s13 = sld [smem:[%s4876_s0 + %s4176_s7]]  }
  0x4a LB: > { %s3600_s16 = sadd.s32 4294967295, %s4133_s15   ;;  %p3604_p0 = scmp.ge.s32.totalorder %s4133_s15, 1  ;;  %s4133_s15 = sphi %s4415_s15, %s96_s15  }
  0x4b   : > { %p1177_p1 = scmp.lt.s32.totalorder %s4133_s15, 3 }
  0x4d   : > { %p1178_p2 = pnand %p3604_p0, %p1177_p1 }
  0x4e   : > { %v1315_v0 = vld [vmem:[%s4218_s17] sm:$0xff] (!%p1178_p2)  ;;  %v1316_v1 = vld [vmem:[%s4218_s17 + $0x8] sm:$0xff] (!%p1178_p2)  ;;  %v1317_v2 = vld [vmem:[%s4218_s17 + $0x10] sm:$0xff] (!%p1178_p2)  ;;  %p1291_p3 = scmp.lt.s32.totalorder (!%p1178_p2), %s3600_s16, 1  ;;  %v4177_v3 = vmov (!%p1178_p2), 0   ;;  %vm1363_vm0 = vcmask (!%p1178_p2), 523264  }
  0x4f   : > { %1181 = sbr.rel (%p1178_p2) target bundleno = 8862 (0x229e), region = 184  ;;  %1367 = vmatprep.subr.bf16.mxu0 (!%p1178_p2), %v4177_v3  ;;  %v1344_v4 = vpack.c.bf16 (!%p1178_p2), %v1316_v1, %v1315_v0  ;;  %v1318_v5 = vld [vmem:[%s4218_s17 + $0x18] sm:$0xff] (!%p1178_p2)  ;;  %4043 = vset.pattern.permute.xlu1 (!%p1178_p2), %v4177_v3  ;;  %v1319_v7 = vld [vmem:[%s4218_s17 + $0x20] sm:$0xff] (!%p1178_p2)  ;;  %v1320_v8 = vld [vmem:[%s4218_s17 + $0x28] sm:$0xff] (!%p1178_p2)  ;;  %vm1411_vm1 = vcmask (!%p1178_p2), 257024   ;;  %v4178_v58 = vmov (!%p1178_p2), 0.0  }
  0x50   : > { %4042 = vset.pattern.permute.xlu0 (!%p1178_p2), %v4177_v3  ;;  %v1345_v6 = vpack.c.bf16 (!%p1178_p2), %v1318_v5, %v1317_v2  ;;  %v1346_v9 = vpack.c.bf16 (!%p1178_p2), %v1320_v8, %v1319_v7  ;;  %v1321_v10 = vld [vmem:[%s4218_s17 + $0x30] sm:$0xff] (!%p1178_p2)  ;;  %v1322_v11 = vld [vmem:[%s4218_s17 + $0x38] sm:$0xff] (!%p1178_p2)  ;;  %v1323_v16 = vld [vmem:[%s4218_s17 + $0x40] sm:$0xff] (!%p1178_p2)  ;;  %3747 = vmatprep.subr.bf16.mxu1 (!%p1178_p2), %v4178_v58  ;;  %vm4179_vm2 = vmmov (!%p1178_p2), 0   ;;  %vm1459_vm3 = vcmask (!%p1178_p2), 261120   ;;  %s4886_s22 = smov (!%p1178_p2), 64  }
  0x51   : > { %1368 = vmatpush1.bf16.msra.mxu0 (!%p1178_p2), %v1344_v4  ;;  %v1347_v14 = vpack.c.bf16 (!%p1178_p2), %v1322_v11, %v1321_v10  ;;  %v1324_v17 = vld [vmem:[%s4218_s17 + $0x48] sm:$0xff] (!%p1178_p2)  ;;  %v1325_v19 = vld [vmem:[%s4218_s17 + $0x50] sm:$0xff] (!%p1178_p2)  ;;  %v1326_v20 = vld [vmem:[%s4218_s17 + $0x58] sm:$0xff] (!%p1178_p2)  ;;  %3751 = vmatprep.mubr.msk.bf16.mxu1 (!%p1178_p2), %vm4179_vm2, %v4178_v58  ;;  %s4181_s23 = smov (!%p1178_p2), 96   ;;  %vm1507_vm4 = vcmask (!%p1178_p2), 64512   ;;  %vm1574_vm5 = vcmask (!%p1178_p2), 1041408  }
  0x52   : > { %1369 = vmatprep.subr.bf16.mxu0 (!%p1178_p2), %v4177_v3  ;;  %v1348_v18 = vpack.c.bf16 (!%p1178_p2), %v1324_v17, %v1323_v16  ;;  %v1349_v21 = vpack.c.bf16 (!%p1178_p2), %v1326_v20, %v1325_v19  ;;  %v1327_v22 = vld [vmem:[%s4218_s17 + $0x60] sm:$0xff] (!%p1178_p2)  ;;  %v1328_v23 = vld [vmem:[%s4218_s17 + $0x68] sm:$0xff] (!%p1178_p2)  ;;  %v1329_v25 = vld [vmem:[%s4218_s17 + $0x70] sm:$0xff] (!%p1178_p2)  ;;  %vm1555_vm6 = vcmask (!%p1178_p2), 27648   ;;  %s4182_s26 = smov (!%p1178_p2), 88   ;;  %s4894_s28 = smov (!%p1178_p2), 120  }
  0x53   : > { %v1350_v24 = vpack.c.bf16 (!%p1178_p2), %v1328_v23, %v1327_v22  ;;  %v1330_v26 = vld [vmem:[%s4218_s17 + $0x78] sm:$0xff] (!%p1178_p2)  ;;  %v1331_v28 = vld [vmem:[%s4218_s17 + $0x80] sm:$0xff] (!%p1178_p2)  ;;  %v1332_v29 = vld [vmem:[%s4218_s17 + $0x88] sm:$0xff] (!%p1178_p2)  ;;  %vm1570_vm7 = vcmask (!%p1178_p2), 31744   ;;  %s4884_s1 = smov (!%p1178_p2), 56   ;;  %s4185_s2 = smov (!%p1178_p2), 80  }
  0x54   : > { %v1351_v27 = vpack.c.bf16 (!%p1178_p2), %v1330_v26, %v1329_v25  ;;  %v1352_v30 = vpack.c.bf16 (!%p1178_p2), %v1332_v29, %v1331_v28  ;;  %v1333_v31 = vld [vmem:[%s4218_s17 + $0x90] sm:$0xff] (!%p1178_p2)  ;;  %v1334_v32 = vld [vmem:[%s4218_s17 + $0x98] sm:$0xff] (!%p1178_p2)  ;;  %v1335_v34 = vld [vmem:[%s4218_s17 + $0xa0] sm:$0xff] (!%p1178_p2)  ;;  %s4892_s7 = smov (!%p1178_p2), 112   ;;  %s4885_s10 = smov (!%p1178_p2), 48   ;;  %vm1964_vm8 = vcmask (!%p1178_p2), 130048  }
  0x55   : > { %1370 = vmatpush1.bf16.msra.mxu0 (!%p1178_p2), %v1345_v6  ;;  %v1353_v33 = vpack.c.bf16 (!%p1178_p2), %v1334_v32, %v1333_v31  ;;  %v1336_v35 = vld [vmem:[%s4218_s17 + $0xa8] sm:$0xff] (!%p1178_p2)  ;;  %v1337_v37 = vld [vmem:[%s4218_s17 + $0xb0] sm:$0xff] (!%p1178_p2)  ;;  %v1338_v38 = vld [vmem:[%s4218_s17 + $0xb8] sm:$0xff] (!%p1178_p2)  ;;  %s4893_s11 = smov (!%p1178_p2), 72   ;;  %vm1966_vm9 = vcmask (!%p1178_p2), 195584   ;;  %vm2346_vm10 = vcmask (!%p1178_p2), 1043456  }
  0x56   : > { %s4958_s16 = smov (!%p1291_p3, %s3600_s16), 1  ;;  %1371 = vmatprep.subr.bf16.mxu0 %v4177_v3  ;;  %v1354_v36 = vpack.c.bf16 %v1336_v35, %v1335_v34  ;;  %v1355_v39 = vpack.c.bf16 %v1338_v38, %v1337_v37  ;;  %v3612_v41 = vld [vmem:[%s4223_s21] ss:$0 sm:$0xff]  ;;  %v1441_v56 = vld [vmem:[%s4243_s8 + $0x8] sm:$0xff]  ;;  %v1442_v57 = vld [vmem:[%s4243_s8 + $0x10] sm:$0xff]  ;;  %vm2523_vm13 = vcmask 97280  }
  0x57   : > { %s4436_s0 = sshll.u32 %s4958_s16, 3  ;;  %v1407_v43 = vld [vmem:[%s4228_s25] sm:$0xf]  ;;  %v1443_v60 = vld [vmem:[%s4243_s8 + $0x18] sm:$0xff]  ;;  %vm2527_vm14 = vcmask 93184   ;;  %vm2553_vm15 = vcmask 1045504  }
  0x58   : > { %s1295_s18 = scalar_lea.vmem %s4203_s5, %s4436_s0  ;;  %v1440_v55 = vld [vmem:[%s4243_s8] sm:$0xff]  ;;  %v1452_v61 = vpack.c.bf16 %v1443_v60, %v1442_v57 }
  0x59   : > { %v1314_v12 = vld [vmem:[%s1295_s18] sm:$0xff]  ;;  %1372 = vmatpush1.bf16.msra.mxu0 %v1346_v9  ;;  %v1451_v59 = vpack.c.bf16 %v1441_v56, %v1440_v55  ;;  %s4891_s18 = smov 104  }
  0x5a   : > { %v1340_v13 = vcombine.high %v1314_v12, %v1314_v12  ;;  %1373 = vmatprep.subr.bf16.mxu0 %v4177_v3  ;;  %v1342_v40 = vpack.c.bf16 %v1314_v12, %v1314_v12  ;;  %v3614_v2 = vld [vmem:[%s4233_s29] ss:$0 sm:$0xff] }
  0x5b   : > { %3748 = vmatpush3.bf16.msra.mxu1 %v1451_v59  ;;  %v3615_v4 = vld [vmem:[%s4238_s3] ss:$0 sm:$0xff] }
  0x5c   : > { %v1343_v15 = vpack.c.bf16 %v1340_v13, %v1340_v13  ;;  %3749 = vmatprep.subr.bf16.mxu1 %v4178_v58  ;;  %v3616_v8 = vld [vmem:[%s4248_s14] ss:$0 sm:$0xff] }
  0x5d   : > { %1374 = vmatpush1.bf16.msra.mxu0 %v1347_v14 }
  0x5e   : > { %3613 = vmatprep.mubr.msk.bf16.mxu0 %vm1363_vm0, %v1343_v15  ;;  %1375 = vmatprep.subr.bf16.mxu0 %v4177_v3 }
  0x5f   : > { %3750 = vmatpush3.bf16.msra.mxu1 %v1452_v61 }
  0x60   : > { %3755 = vmatprep.subr.bf16.mxu1 %v4178_v58 }
  0x61   : > { %1376 = vmatpush1.bf16.msra.mxu0 %v1348_v18 }
  0x62   : > { %1377 = vmatprep.subr.bf16.mxu0 %v4177_v3 }
  0x65   : > { %1378 = vmatpush1.bf16.msra.mxu0 %v1349_v21 }
  0x66   : > { %1379 = vmatprep.subr.bf16.mxu0 %v4177_v3 }
  0x69   : > { %1380 = vmatpush1.bf16.msra.mxu0 %v1350_v24 }
  0x6a   : > { %1381 = vmatprep.subr.bf16.mxu0 %v4177_v3 }
  0x6d   : > { %1382 = vmatpush1.bf16.msra.mxu0 %v1351_v27 }
  0x6e   : > { %1383 = vmatprep.subr.bf16.mxu0 %v4177_v3 }
  0x71   : > { %1384 = vmatpush1.bf16.msra.mxu0 %v1352_v30 }
  0x72   : > { %1385 = vmatprep.subr.bf16.mxu0 %v4177_v3 }
  0x75   : > { %1386 = vmatpush1.bf16.msra.mxu0 %v1353_v33 }
  0x76   : > { %1387 = vmatprep.subr.bf16.mxu0 %v4177_v3 }
  0x79   : > { %1388 = vmatpush1.bf16.msra.mxu0 %v1354_v36 }
  0x7a   : > { %1389 = vmatprep.subr.bf16.mxu0 %v4177_v3 }
  0x7d   : > { %1390 = vmatpush1.bf16.msra.mxu0 %v1355_v39 }
  0x7e   : > { %3797 = vmatprep.subr.bf16.mxu0 %v4178_v58 }
  0x80   : > { %1400 = vmatmul.mubr.bf16.vlgmr.msra.gmra.mrb[0].mxu0 %v1342_v40 }
  0x81   : > { %3799 = vmatprep.mubr.msk.bf16.mxu0 %vm4179_vm2, %v4178_v58 }
 0x153   : > { %v1401_v42 = vpop.f32.mrb[0].mxu0 }
 0x154   : > { %v1402_v44 = vadd.f32 %v3612_v41, %v1401_v42  ;;  %v1403_v45 = vpop.f32.mrb[1].mxu0 }
 0x155   : > { %v1404_v46 = vpop.f32.mrb[2].mxu0 }
 0x156   : > { %v4471_v47 = vadd.f32 %v1407_v43, %v1402_v44  ;;  %v1405_v48 = vpop.f32.mrb[3].mxu0 }
 0x158   : > { %v1412_v49 = vsel %vm1411_vm1, %v4471_v47, 0.0 }
 0x159   : > { %1413 = vadd.xlane.f32.xlu0 %v1412_v49 }
 0x1e6   : > { %v1414_v50 = vpop.xlane.xlu0 %1413 }
 0x1e7   : > { %v1416_v51 = vmul.f32 0.03125, %v1414_v50 }
 0x1e9   : > { %v1417_v52 = vsub.f32 %v4471_v47, %v1416_v51 }
 0x1eb   : > { %v1418_v53 = vmul.f32 %v1417_v52, %v1417_v52 }
 0x1ed   : > { %v1419_v54 = vsel %vm1411_vm1, %v1418_v53, 0.0 }
 0x1ee   : > { %1420 = vadd.xlane.f32.xlu0 %v1419_v54 }
 0x27b   : > { %v1421_v62 = vpop.xlane.xlu0 %1420 }
 0x27c   : > { %v1422_v63 = vmul.f32 0.03125, %v1421_v62 }
 0x27e   : > { %v1423_v0 = vadd.f32 1e-05, %v1422_v63 }
 0x280   : > { %4045 = vrsqrt.f32 %v1423_v0 }
 0x28a   : > { %v4046_v1 = vpop.eup %4045 }
 0x28b   : > { %v1425_v3 = vmul.f32 %v4046_v1, %v1417_v52 }
 0x28d   : > { %v1432_v5 = vmul.f32 %v3614_v2, %v1425_v3 }
 0x28f   : > { %v1439_v6 = vadd.f32 %v3615_v4, %v1432_v5 }
 0x291   : > { %v1450_v7 = vpack.c.bf16 %v1439_v6, %v1439_v6 }
 0x293   : > { %3752 = vmatmul.mubr.msk.bf16.vlgmr.msra.gmra.mrb[0].mxu1 %vm1459_vm3, %v1450_v7 }
 0x294   : > { %3757 = vmatprep.mubr.msk.bf16.mxu1 %vm4179_vm2, %v4178_v58 }
 0x366   : > { %v1497_v9 = vpop.f32.mrb[0].mxu1 }
 0x367   : > { %v1498_v10 = vadd.f32 %v3616_v8, %v1497_v9  ;;  %v3753_v11 = vpop.f32.mrb[1].mxu1 }
 0x368   : > { %v1500_v12 = vpop.f32.mrb[2].mxu1 }
 0x369   : > { %v4495_v13 = vpack.c.bf16 %v1498_v10, %v1498_v10  ;;  %v3754_v14 = vpop.f32.mrb[3].mxu1 }
 0x36b   : > { %1568 = vrot.lane.b32.xlu0 %v4495_v13, %s4886_s22  ;;  %1505 = vrot.lane.b32.xlu1 %v4495_v13, %s4181_s23  ;;  %s4887_s22 = smov 16  }
 0x3dd   : > { %v1506_v15 = vpop.permute.xlu1 %1505  ;;  %v1569_v17 = vpop.permute.xlu0 %1568 }
 0x3de   : > { %v1512_v16 = vsel %vm1507_vm4, %v1506_v15, 0  ;;  %v1576_v18 = vsel %vm1574_vm5, %v1569_v17, 0 }
 0x3df   : > { %3756 = vmatpush3.bf16.xpose.msra.mxu1 %v1512_v16 }
 0x3e0   : > { %3761 = vmatprep.subr.bf16.mxu1 %v4178_v58 }
 0x3e6   : > { %3758 = vmatmul.mubr.msk.bf16.vlgmr.msra.gmra.mrb[4].mxu1 %vm1507_vm4, %v4495_v13 }
 0x3e7   : > { %3762 = vmatpush3.bf16.msra.mxu1 %v1576_v18  ;;  %3763 = vmatprep.mubr.msk.bf16.mxu1 %vm4179_vm2, %v4178_v58 }
 0x3e8   : > { %3767 = vmatprep.subr.bf16.mxu1 %v4178_v58 }
 0x4b9   : > { %v1548_v19 = vpop.f32.mrb[4].mxu1 }
 0x4ba   : > { %v1554_v20 = vmul.f32 0.35355338, %v1548_v19  ;;  %v3759_v21 = vpop.f32.mrb[5].mxu1 }
 0x4bb   : > { %v1551_v22 = vpop.f32.mrb[6].mxu1 }
 0x4bc   : > { %v3760_v23 = vpop.f32.mrb[7].mxu1  ;;  %v1556_v24 = vsel %vm1555_vm6, %v1554_v20, -inf }
 0x4bd   : > { %1557 = vmax.xlane.f32.xlu1 %v1556_v24 }
 0x54a   : > { %v1558_v25 = vpop.xlane.xlu1 %1557 }
 0x54b   : > { %v1559_v26 = vsub.f32 %v1554_v20, %v1558_v25 }
 0x54d   : > { %v1560_v27 = vmul.f32 1.442695, %v1559_v26 }
 0x54f   : > { %4047 = vpow2.f32 %v1560_v27 }
 0x559   : > { %v4048_v28 = vpop.eup %4047 }
 0x55a   : > { %v1562_v29 = vsel %vm1555_vm6, %v4048_v28, 0.0 }
 0x55b   : > { %1563 = vadd.xlane.f32.xlu0 %v1562_v29 }
 0x571   : > { %1620 = vrot.lane.b32.xlu0 %v4495_v13, %s4182_s26 }
 0x575   : > { %1618 = vrot.lane.b32.xlu0 %v4495_v13, %s4894_s28  ;;  %s4934_s28 = sld [smem:[#allocation16_spill]] }
 0x5e8   : > { %v1564_v30 = vpop.xlane.xlu0 %1563 }
 0x5e9   : > { %4049 = vrcp.f32 %v1564_v30 }
 0x5ec   : > { %v1621_v33 = vpop.permute.xlu0 %1620 }
 0x5ed   : > { %v1626_v35 = vsel %vm1507_vm4, %v1621_v33, 0 }
 0x5f0   : > { %v1619_v36 = vpop.permute.xlu0 %1618 }
 0x5f3   : > { %v4050_v31 = vpop.eup %4049 }
 0x5f4   : > { %v1566_v32 = vmul.f32 %v4050_v31, %v4048_v28 }
 0x5f6   : > { %v1567_v34 = vpack.c.bf16 %v1566_v32, %v1566_v32 }
 0x5f8   : > { %3764 = vmatmul.mubr.msk.bf16.vlgmr.msra.gmra.mrb[8].mxu1 %vm1570_vm7, %v1567_v34 }
 0x5f9   : > { %3768 = vmatpush3.bf16.xpose.msra.mxu1 %v1626_v35  ;;  %3769 = vmatprep.mubr.msk.bf16.mxu1 %vm4179_vm2, %v4178_v58 }
 0x5fa   : > { %3773 = vmatprep.subr.bf16.mxu1 %v4178_v58 }
 0x600   : > { %3770 = vmatmul.mubr.msk.bf16.vlgmr.msra.gmra.mrb[12].mxu1 %vm1507_vm4, %v1619_v36 }
 0x601   : > { %3775 = vmatprep.mubr.msk.bf16.mxu1 %vm4179_vm2, %v4178_v58 }
 0x6cb   : > { %v4523_v37 = vpop.f32.mrb[8].mxu1 }
 0x6cc   : > { %v3765_v38 = vpop.f32.mrb[9].mxu1 }
 0x6cd   : > { %v1615_v39 = vpop.f32.mrb[10].mxu1 }
 0x6ce   : > { %v3766_v40 = vpop.f32.mrb[11].mxu1 }
 0x6d3   : > { %v1662_v41 = vpop.f32.mrb[12].mxu1 }
 0x6d4   : > { %v1668_v42 = vmul.f32 0.35355338, %v1662_v41  ;;  %v3771_v43 = vpop.f32.mrb[13].mxu1 }
 0x6d5   : > { %v1665_v44 = vpop.f32.mrb[14].mxu1 }
 0x6d6   : > { %v3772_v45 = vpop.f32.mrb[15].mxu1  ;;  %v1669_v46 = vsel %vm1555_vm6, %v1668_v42, -inf }
 0x6d7   : > { %1670 = vmax.xlane.f32.xlu1 %v1669_v46  ;;  %v1445_v45 = vld [vmem:[%s4253_s19] sm:$0xff]  ;;  %v1446_v46 = vld [vmem:[%s4253_s19 + $0x8] sm:$0xff] }
 0x6e8   : > { %1681 = vrot.lane.b32.xlu1 %v4495_v13, %s4884_s1  ;;  %s4890_s1 = smov 40  }
 0x6ec   : > { %1731 = vrot.lane.b32.xlu1 %v4495_v13, %s4185_s2 }
 0x6f0   : > { %1729 = vrot.lane.b32.xlu1 %v4495_v13, %s4892_s7  ;;  %s4927_s7 = sld [smem:[#allocation9_spill]] }
 0x764   : > { %v1671_v48 = vpop.xlane.xlu1 %1670 }
 0x765   : > { %v1672_v49 = vsub.f32 %v1668_v42, %v1671_v48  ;;  %v1969_v48 = vpack.c.bf16 %v1446_v46, %v1445_v45  ;;  %v2128_v46 = vld [vmem:[%s4283_s27 + $0x60] sm:$0xff] }
 0x767   : > { %v1673_v50 = vmul.f32 1.442695, %v1672_v49  ;;  %v1447_v49 = vld [vmem:[%s4253_s19 + $0x10] sm:$0xff] }
 0x768   : > { %v1682_v51 = vpop.permute.xlu1 %1681 }
 0x769   : > { %4051 = vpow2.f32 %v1673_v50  ;;  %v1687_v52 = vsel %vm1574_vm5, %v1682_v51, 0  ;;  %v1448_v50 = vld [vmem:[%s4253_s19 + $0x18] sm:$0xff] }
 0x76a   : > { %3774 = vmatpush3.bf16.msra.mxu1 %v1687_v52  ;;  %v1970_v51 = vpack.c.bf16 %v1448_v50, %v1447_v49  ;;  %v2130_v50 = vld [vmem:[%s4283_s27 + $0x70] sm:$0xff] }
 0x76b   : > { %3779 = vmatprep.subr.bf16.mxu1 %v4178_v58 }
 0x76c   : > { %v1732_v59 = vpop.permute.xlu1 %1731 }
 0x76d   : > { %v1737_v61 = vsel %vm1507_vm4, %v1732_v59, 0 }
 0x770   : > { %v1730_v63 = vpop.permute.xlu1 %1729 }
 0x773   : > { %v4052_v53 = vpop.eup %4051 }
 0x774   : > { %v1675_v54 = vsel %vm1555_vm6, %v4052_v53, 0.0 }
 0x775   : > { %1676 = vadd.xlane.f32.xlu0 %v1675_v54 }
 0x78b   : > { %1792 = vrot.lane.b32.xlu0 %v4495_v13, %s4885_s10  ;;  %s4889_s10 = smov 8  }
 0x802   : > { %v1677_v55 = vpop.xlane.xlu0 %1676 }
 0x803   : > { %4053 = vrcp.f32 %v1677_v55 }
 0x806   : > { %v1793_v62 = vpop.permute.xlu0 %1792 }
 0x807   : > { %v1798_v0 = vsel %vm1574_vm5, %v1793_v62, 0 }
 0x80d   : > { %v4054_v56 = vpop.eup %4053 }
 0x80e   : > { %v1679_v57 = vmul.f32 %v4054_v56, %v4052_v53 }
 0x810   : > { %v1680_v60 = vpack.c.bf16 %v1679_v57, %v1679_v57 }
 0x812   : > { %3776 = vmatmul.mubr.msk.bf16.vlgmr.msra.gmra.mrb[16].mxu1 %vm1570_vm7, %v1680_v60 }
 0x813   : > { %3780 = vmatpush3.bf16.xpose.msra.mxu1 %v1737_v61  ;;  %3781 = vmatprep.mubr.msk.bf16.mxu1 %vm4179_vm2, %v4178_v58 }
 0x814   : > { %3785 = vmatprep.subr.bf16.mxu1 %v4178_v58 }
 0x81a   : > { %3782 = vmatmul.mubr.msk.bf16.vlgmr.msra.gmra.mrb[20].mxu1 %vm1507_vm4, %v1730_v63 }
 0x81b   : > { %3786 = vmatpush3.bf16.msra.mxu1 %v1798_v0  ;;  %3787 = vmatprep.mubr.msk.bf16.mxu1 %vm4179_vm2, %v4178_v58  ;;  %v3626_v0 = vld [vmem:[%s4258_s24] ss:$0 sm:$0xff] }
 0x81c   : > { %3791 = vmatprep.subr.bf16.mxu1 %v4178_v58 }
 0x8e5   : > { %v1723_v1 = vpop.f32.mrb[16].mxu1 }
 0x8e6   : > { %v3777_v2 = vpop.f32.mrb[17].mxu1 }
 0x8e7   : > { %v1726_v3 = vpop.f32.mrb[18].mxu1 }
 0x8e8   : > { %v3778_v4 = vpop.f32.mrb[19].mxu1 }
 0x8ed   : > { %v1773_v5 = vpop.f32.mrb[20].mxu1 }
 0x8ee   : > { %v1779_v6 = vmul.f32 0.35355338, %v1773_v5  ;;  %v3783_v7 = vpop.f32.mrb[21].mxu1 }
 0x8ef   : > { %v1776_v8 = vpop.f32.mrb[22].mxu1 }
 0x8f0   : > { %v3784_v9 = vpop.f32.mrb[23].mxu1  ;;  %v1780_v10 = vsel %vm1555_vm6, %v1779_v6, -inf }
 0x8f1   : > { %1781 = vmax.xlane.f32.xlu1 %v1780_v10 }
 0x97e   : > { %v1782_v11 = vpop.xlane.xlu1 %1781 }
 0x97f   : > { %v1783_v12 = vsub.f32 %v1779_v6, %v1782_v11 }
 0x981   : > { %v1784_v14 = vmul.f32 1.442695, %v1783_v12  ;;  %v2050_v12 = vld [vmem:[%s4273_s12] sm:$0xff] }
 0x983   : > { %4055 = vpow2.f32 %v1784_v14  ;;  %v2051_v14 = vld [vmem:[%s4273_s12 + $0x8] sm:$0xff] }
 0x98d   : > { %v4056_v15 = vpop.eup %4055 }
 0x98e   : > { %v1786_v16 = vsel %vm1555_vm6, %v4056_v15, 0.0 }
 0x98f   : > { %1787 = vadd.xlane.f32.xlu0 %v1786_v16  ;;  %v2053_v16 = vld [vmem:[%s4273_s12 + $0x18] sm:$0xff] }
 0x9a5   : > { %1842 = vrot.lane.b32.xlu0 %v4495_v13, %s4893_s11  ;;  %s4930_s11 = sld [smem:[#allocation12_spill]] }
 0x9a9   : > { %1840 = vrot.lane.b32.xlu0 %v4495_v13, %s4891_s18  ;;  %s4926_s18 = sld [smem:[#allocation10_spill]] }
 0xa1c   : > { %v1788_v17 = vpop.xlane.xlu0 %1787 }
 0xa1d   : > { %4057 = vrcp.f32 %v1788_v17 }
 0xa20   : > { %v1843_v20 = vpop.permute.xlu0 %1842 }
 0xa21   : > { %v1848_v22 = vsel %vm1507_vm4, %v1843_v20, 0 }
 0xa24   : > { %v1841_v23 = vpop.permute.xlu0 %1840 }
 0xa27   : > { %v4058_v18 = vpop.eup %4057 }
 0xa28   : > { %v1790_v19 = vmul.f32 %v4058_v18, %v4056_v15  ;;  %v2055_v15 = vpack.c.bf16 %v2051_v14, %v2050_v12 }
 0xa2a   : > { %v1791_v21 = vpack.c.bf16 %v1790_v19, %v1790_v19 }
 0xa2c   : > { %3788 = vmatmul.mubr.msk.bf16.vlgmr.msra.gmra.mrb[24].mxu1 %vm1570_vm7, %v1791_v21 }
 0xa2d   : > { %3792 = vmatpush3.bf16.xpose.msra.mxu1 %v1848_v22  ;;  %3793 = vmatprep.mubr.msk.bf16.mxu1 %vm4179_vm2, %v4178_v58  ;;  %v3628_v22 = vld [vmem:[%s4263_s30] ss:$0 sm:$0xff] }
 0xa2e   : > { %3803 = vmatprep.subr.bf16.mxu1 %v4178_v58 }
 0xa34   : > { %3794 = vmatmul.mubr.msk.bf16.vlgmr.msra.gmra.mrb[28].mxu1 %vm1507_vm4, %v1841_v23 }
 0xa35   : > { %3807 = vmatprep.mubr.msk.bf16.mxu1 %vm4179_vm2, %v4178_v58  ;;  %3804 = vmatpush3.bf16.msra.mxu1 %v1969_v48  ;;  %v2129_v48 = vld [vmem:[%s4283_s27 + $0x68] sm:$0xff] }
 0xa36   : > { %3805 = vmatprep.subr.bf16.mxu1 %v4178_v58  ;;  %v2139_v49 = vpack.c.bf16 %v2129_v48, %v2128_v46 }
 0xa39   : > { %3806 = vmatpush3.bf16.msra.mxu1 %v1970_v51  ;;  %v2131_v51 = vld [vmem:[%s4283_s27 + $0x78] sm:$0xff] }
 0xa3a   : > { %3819 = vmatprep.subr.bf16.mxu1 %v4178_v58 }
 0xaff   : > { %v1834_v24 = vpop.f32.mrb[24].mxu1 }
 0xb00   : > { %v3789_v25 = vpop.f32.mrb[25].mxu1 }
 0xb01   : > { %v1837_v26 = vpop.f32.mrb[26].mxu1 }
 0xb02   : > { %v3790_v27 = vpop.f32.mrb[27].mxu1 }
 0xb07   : > { %v1884_v28 = vpop.f32.mrb[28].mxu1 }
 0xb08   : > { %v1890_v29 = vmul.f32 0.35355338, %v1884_v28  ;;  %v3795_v30 = vpop.f32.mrb[29].mxu1  ;;  %v2116_v28 = vld [vmem:[%s4283_s27] sm:$0xff] }
 0xb09   : > { %v1887_v31 = vpop.f32.mrb[30].mxu1 }
 0xb0a   : > { %v3796_v32 = vpop.f32.mrb[31].mxu1  ;;  %v1891_v33 = vsel %vm1555_vm6, %v1890_v29, -inf  ;;  %v2118_v31 = vld [vmem:[%s4283_s27 + $0x10] sm:$0xff] }
 0xb0b   : > { %1892 = vmax.xlane.f32.xlu1 %v1891_v33  ;;  %v2119_v32 = vld [vmem:[%s4283_s27 + $0x18] sm:$0xff] }
 0xb0c   : > { %v2134_v33 = vpack.c.bf16 %v2119_v32, %v2118_v31 }
 0xb1c   : > { %1903 = vrot.lane.b32.xlu1 %v4495_v13, %s4890_s1  ;;  %s4924_s1 = sld [smem:[#allocation6_spill]] }
 0xb20   : > { %1952 = vrot.lane.b32.xlu1 %v1723_v1, %s4889_s10  ;;  %s4922_s10 = sld [smem:[#allocation5_spill]] }
 0xb24   : > { %1956 = vrot.lane.b32.xlu1 %v1834_v24, %s4887_s22  ;;  %s4888_s22 = smov 24   ;;  %v3629_v24 = vld [vmem:[%s4268_s6] ss:$0 sm:$0xff] }
 0xb98   : > { %v1893_v34 = vpop.xlane.xlu1 %1892 }
 0xb99   : > { %v1894_v35 = vsub.f32 %v1890_v29, %v1893_v34  ;;  %v2117_v29 = vld [vmem:[%s4283_s27 + $0x8] sm:$0xff]  ;;  %v2120_v34 = vld [vmem:[%s4283_s27 + $0x20] sm:$0xff] }
 0xb9a   : > { %v2133_v30 = vpack.c.bf16 %v2117_v29, %v2116_v28  ;;  %v3633_v28 = vld [vmem:[%s4924_s1] ss:$0 sm:$0xff]  ;;  %s4928_s1 = sld [smem:[#allocation2_spill]] }
 0xb9b   : > { %v1895_v36 = vmul.f32 1.442695, %v1894_v35  ;;  %v2121_v35 = vld [vmem:[%s4283_s27 + $0x28] sm:$0xff] }
 0xb9c   : > { %v1904_v38 = vpop.permute.xlu1 %1903 }
 0xb9d   : > { %4059 = vpow2.f32 %v1895_v36  ;;  %v1909_v39 = vsel %vm1574_vm5, %v1904_v38, 0  ;;  %v2135_v36 = vpack.c.bf16 %v2121_v35, %v2120_v34  ;;  %v2122_v38 = vld [vmem:[%s4283_s27 + $0x30] sm:$0xff]  ;;  %v2285_v34 = vld [vmem:[%s4926_s18] sm:$0xff]  ;;  %v2286_v35 = vld [vmem:[%s4926_s18 + $0x8] sm:$0xff] }
 0xb9e   : > { %3798 = vmatpush3.bf16.msra.mxu0 %v1909_v39  ;;  %v2123_v39 = vld [vmem:[%s4283_s27 + $0x38] sm:$0xff] }
 0xb9f   : > { %3811 = vmatprep.subr.bf16.mxu0 %v4178_v58 }
 0xba0   : > { %v1953_v56 = vpop.permute.xlu1 %1952 }
 0xba1   : > { %v1963_v59 = vsel %vm1507_vm4, %v4523_v37, %v1953_v56 }
 0xba4   : > { %v1957_v57 = vpop.permute.xlu1 %1956 }
 0xba5   : > { %v1965_v60 = vsel %vm1964_vm8, %v1963_v59, %v1957_v57 }
 0xba7   : > { %v4060_v13 = vpop.eup %4059 }
 0xba8   : > { %v1897_v40 = vsel %vm1555_vm6, %v4060_v13, 0.0  ;;  %vm3422_vm6 = vcmask 2048  }
 0xba9   : > { %1898 = vadd.xlane.f32.xlu0 %v1897_v40  ;;  %v2124_v40 = vld [vmem:[%s4283_s27 + $0x40] sm:$0xff] }
 0xc36   : > { %v1899_v41 = vpop.xlane.xlu0 %1898 }
 0xc37   : > { %4061 = vrcp.f32 %v1899_v41  ;;  %v2125_v41 = vld [vmem:[%s4283_s27 + $0x48] sm:$0xff] }
 0xc41   : > { %v4062_v42 = vpop.eup %4061 }
 0xc42   : > { %v1901_v43 = vmul.f32 %v4062_v42, %v4060_v13  ;;  %v2136_v13 = vpack.c.bf16 %v2123_v39, %v2122_v38  ;;  %v2137_v42 = vpack.c.bf16 %v2125_v41, %v2124_v40  ;;  %v2287_v38 = vld [vmem:[%s4926_s18 + $0x10] sm:$0xff]  ;;  %v2288_v39 = vld [vmem:[%s4926_s18 + $0x18] sm:$0xff]  ;;  %v3635_v40 = vld [vmem:[%s4927_s7] ss:$0 sm:$0xff]  ;;  %s1299_s7 = scalar_lea.vmem %s4928_s1, %s4436_s0  ;;  %s4931_s1 = sld [smem:[#allocation15_spill]] }
 0xc44   : > { %v1902_v44 = vpack.c.bf16 %v1901_v43, %v1901_v43  ;;  %v2126_v43 = vld [vmem:[%s4283_s27 + $0x50] sm:$0xff] }
 0xc46   : > { %3800 = vmatmul.mubr.msk.bf16.vlgmr.msra.gmra.mrb[4].mxu0 %vm1570_vm7, %v1902_v44  ;;  %v2127_v44 = vld [vmem:[%s4283_s27 + $0x58] sm:$0xff] }
 0xc47   : > { %3815 = vmatprep.mubr.msk.bf16.mxu0 %vm4179_vm2, %v4178_v58  ;;  %3812 = vmatpush3.bf16.msra.mxu0 %v2055_v15  ;;  %v2138_v45 = vpack.c.bf16 %v2127_v44, %v2126_v43 }
 0xc48   : > { %3813 = vmatprep.subr.bf16.mxu0 %v4178_v58 }
 0xd19   : > { %v1945_v52 = vpop.f32.mrb[4].mxu0 }
 0xd1a   : > { %1960 = vrot.lane.b32.xlu1 %v1945_v52, %s4888_s22  ;;  %v3801_v53 = vpop.f32.mrb[5].mxu0  ;;  %s4921_s22 = sld [smem:[#allocation4_spill]]  ;;  %v2140_v52 = vpack.c.bf16 %v2131_v51, %v2130_v50 }
 0xd1b   : > { %v1948_v54 = vpop.f32.mrb[6].mxu0 }
 0xd1c   : > { %v3802_v55 = vpop.f32.mrb[7].mxu0 }
 0xd20   : > { %v3630_v53 = vld [vmem:[%s4921_s22] ss:$0 sm:$0xff]  ;;  %s4923_s22 = sld [smem:[#allocation8_spill]] }
 0xd8c   : > { %v1961_v61 = vpop.permute.xlu1 %1960 }
 0xd8d   : > { %v1967_v62 = vsel %vm1966_vm9, %v1965_v60, %v1961_v61 }
 0xd8e   : > { %v1968_v63 = vpack.c.bf16 %v1967_v62, %v1967_v62 }
 0xd90   : > { %3808 = vmatmul.mubr.msk.bf16.vlgmr.msra.gmra.mrb[32].mxu1 %vm1459_vm3, %v1968_v63 }
 0xd91   : > { %3835 = vmatprep.mubr.msk.bf16.mxu1 %vm4179_vm2, %v4178_v58  ;;  %3820 = vmatpush3.bf16.msra.mxu1 %v2133_v30 }
 0xd92   : > { %3821 = vmatprep.subr.bf16.mxu1 %v4178_v58 }
 0xd95   : > { %3822 = vmatpush3.bf16.msra.mxu1 %v2134_v33 }
 0xd96   : > { %3823 = vmatprep.subr.bf16.mxu1 %v4178_v58 }
 0xd99   : > { %3824 = vmatpush3.bf16.msra.mxu1 %v2135_v36  ;;  %v2290_v36 = vpack.c.bf16 %v2286_v35, %v2285_v34 }
 0xd9a   : > { %3825 = vmatprep.subr.bf16.mxu1 %v4178_v58 }
 0xd9d   : > { %3826 = vmatpush3.bf16.msra.mxu1 %v2136_v13  ;;  %v2291_v13 = vpack.c.bf16 %v2288_v39, %v2287_v38 }
 0xd9e   : > { %3827 = vmatprep.subr.bf16.mxu1 %v4178_v58 }
 0xda1   : > { %3828 = vmatpush3.bf16.msra.mxu1 %v2137_v42 }
 0xda2   : > { %3829 = vmatprep.subr.bf16.mxu1 %v4178_v58 }
 0xda5   : > { %3830 = vmatpush3.bf16.msra.mxu1 %v2138_v45 }
 0xda6   : > { %3831 = vmatprep.subr.bf16.mxu1 %v4178_v58 }
 0xda9   : > { %3832 = vmatpush3.bf16.msra.mxu1 %v2139_v49 }
 0xdaa   : > { %3833 = vmatprep.subr.bf16.mxu1 %v4178_v58 }
 0xdad   : > { %3834 = vmatpush3.bf16.msra.mxu1 %v2140_v52 }
 0xdae   : > { %3869 = vmatprep.subr.bf16.mxu1 %v4178_v58 }
 0xe63   : > { %v2014_v1 = vpop.f32.mrb[32].mxu1 }
 0xe64   : > { %v2015_v2 = vadd.f32 %v3626_v0, %v2014_v1  ;;  %v3809_v3 = vpop.f32.mrb[33].mxu1 }
 0xe65   : > { %v2017_v37 = vpop.f32.mrb[34].mxu1 }
 0xe66   : > { %v4588_v4 = vadd.f32 %v2015_v2, %v4471_v47  ;;  %v3810_v5 = vpop.f32.mrb[35].mxu1  ;;  %v2052_v47 = vld [vmem:[%s4273_s12 + $0x10] sm:$0xff] }
 0xe67   : > { %v2056_v17 = vpack.c.bf16 %v2053_v16, %v2052_v47 }
 0xe68   : > { %v2023_v6 = vsel %vm1411_vm1, %v4588_v4, 0.0 }
 0xe69   : > { %2024 = vadd.xlane.f32.xlu0 %v2023_v6  ;;  %3814 = vmatpush3.bf16.msra.mxu0 %v2056_v17 }
 0xe6a   : > { %3839 = vmatprep.subr.bf16.mxu0 %v4178_v58 }
 0xef6   : > { %v2025_v7 = vpop.xlane.xlu0 %2024 }
 0xef7   : > { %v2026_v8 = vmul.f32 0.03125, %v2025_v7  ;;  %v3632_v7 = vld [vmem:[%s4922_s10] ss:$0 sm:$0xff]  ;;  %s4925_s10 = sld [smem:[#allocation7_spill]] }
 0xef9   : > { %v2027_v9 = vsub.f32 %v4588_v4, %v2026_v8 }
 0xefb   : > { %v2028_v10 = vmul.f32 %v2027_v9, %v2027_v9 }
 0xefd   : > { %v2029_v11 = vsel %vm1411_vm1, %v2028_v10, 0.0  ;;  %v3634_v30 = vld [vmem:[%s4925_s10] ss:$0 sm:$0xff]  ;;  %s4929_s10 = sld [smem:[#allocation11_spill]] }
 0xefe   : > { %2030 = vadd.xlane.f32.xlu1 %v2029_v11 }
 0xf8b   : > { %v2031_v18 = vpop.xlane.xlu1 %2030 }
 0xf8c   : > { %v2032_v19 = vmul.f32 0.03125, %v2031_v18 }
 0xf8e   : > { %v2033_v20 = vadd.f32 1e-05, %v2032_v19  ;;  %v2219_v19 = vld [vmem:[%s4923_s22] sm:$0xff] }
 0xf90   : > { %4063 = vrsqrt.f32 %v2033_v20  ;;  %v2220_v20 = vld [vmem:[%s4923_s22 + $0x8] sm:$0xff] }
 0xf9a   : > { %v4064_v21 = vpop.eup %4063 }
 0xf9b   : > { %v2035_v23 = vmul.f32 %v4064_v21, %v2027_v9  ;;  %v2221_v21 = vld [vmem:[%s4923_s22 + $0x10] sm:$0xff] }
 0xf9d   : > { %v2042_v25 = vmul.f32 %v3628_v22, %v2035_v23  ;;  %v2222_v22 = vld [vmem:[%s4923_s22 + $0x18] sm:$0xff] }
 0xf9e   : > { %v2225_v23 = vpack.c.bf16 %v2222_v22, %v2221_v21  ;;  %v2407_v21 = vld [vmem:[%s4931_s1 + $0x10] sm:$0xff]  ;;  %v2408_v22 = vld [vmem:[%s4931_s1 + $0x18] sm:$0xff] }
 0xf9f   : > { %v2049_v26 = vadd.f32 %v3629_v24, %v2042_v25 }
 0xfa1   : > { %v2054_v27 = vpack.c.bf16 %v2049_v26, %v2049_v26 }
 0xfa3   : > { %3816 = vmatmul.mubr.msk.bf16.vlgmr.msra.gmra.mrb[8].mxu0 %vm1459_vm3, %v2054_v27 }
 0xfa4   : > { %3843 = vmatprep.mubr.msk.bf16.mxu0 %vm4179_vm2, %v4178_v58 }
0x1076   : > { %v2101_v54 = vpop.f32.mrb[8].mxu0 }
0x1077   : > { %v2102_v55 = vadd.f32 %v3630_v53, %v2101_v54  ;;  %v3817_v56 = vpop.f32.mrb[9].mxu0 }
0x1078   : > { %v2104_v57 = vpop.f32.mrb[10].mxu0 }
0x1079   : > { %v2107_v59 = vmul.f32 %v2102_v55, %v2102_v55  ;;  %v3818_v60 = vpop.f32.mrb[11].mxu0  ;;  %v2342_v57 = vld [vmem:[%s1299_s7] sm:$0xff]  ;;  %s4933_s7 = sld [smem:[#allocation14_spill]] }
0x107a   : > { %v2344_v60 = vrot.slane %v2342_v57, 4 }
0x107b   : > { %v2108_v61 = vmul.f32 %v2107_v59, %v2102_v55  ;;  %v3637_v59 = vld [vmem:[%s4929_s10] ss:$0 sm:$0xff]  ;;  %s4932_s10 = sld [smem:[#allocation13_spill]] }
0x107d   : > { %v2109_v62 = vmul.f32 0.044715, %v2108_v61 }
0x107f   : > { %v2110_v63 = vadd.f32 %v2109_v62, %v2102_v55 }
0x1081   : > { %v2111_v0 = vmul.f32 0.7978846, %v2110_v63 }
0x1083   : > { %4065 = vtanh.f32 %v2111_v0  ;;  %v2348_v0 = vld [vmem:[%s4930_s11] sm:$0xff] }
0x108d   : > { %v4066_v1 = vpop.eup %4065 }
0x108e   : > { %v2113_v2 = vadd.f32 1.0, %v4066_v1  ;;  %v2349_v1 = vld [vmem:[%s4930_s11 + $0x8] sm:$0xf] }
0x1090   : > { %v2114_v3 = vmul.f32 0.5, %v2113_v2 }
0x1092   : > { %v2115_v37 = vmul.f32 %v2114_v3, %v2102_v55 }
0x1094   : > { %v2132_v5 = vpack.c.bf16 %v2115_v37, %v2115_v37 }
0x1096   : > { %3836 = vmatmul.mubr.bf16.vlgmr.msra.gmra.mrb[36].mxu1 %v2132_v5 }
0x1097   : > { %3871 = vmatprep.mubr.msk.bf16.mxu1 %vm4179_vm2, %v4178_v58 }
0x1169   : > { %v2175_v6 = vpop.f32.mrb[36].mxu1 }
0x116a   : > { %v2181_v8 = vadd.f32 %v2175_v6, %v4588_v4  ;;  %v3837_v9 = vpop.f32.mrb[37].mxu1  ;;  %v2224_v4 = vpack.c.bf16 %v2220_v20, %v2219_v19  ;;  %v4664_v6 = vadd.f32 %v2349_v1, %v2344_v60  ;;  %v2405_v19 = vld [vmem:[%s4931_s1] sm:$0xff]  ;;  %v2406_v20 = vld [vmem:[%s4931_s1 + $0x8] sm:$0xff]  ;;  %s4938_s1 = smov 104  }
0x116b   : > { %v2178_v10 = vpop.f32.mrb[38].mxu1 }
0x116c   : > { %v3838_v11 = vpop.f32.mrb[39].mxu1  ;;  %v2189_v12 = vadd.f32 %v3632_v7, %v2181_v8  ;;  %3840 = vmatpush3.bf16.msra.mxu0 %v2224_v4  ;;  %v2366_v8 = vsel %vm1411_vm1, %v4664_v6, 0.0  ;;  %v2416_v4 = vpack.c.bf16 %v2406_v20, %v2405_v19 }
0x116d   : > { %3841 = vmatprep.subr.bf16.mxu0 %v4178_v58 }
0x116e   : > { %v2192_v14 = vsel %vm1411_vm1, %v2189_v12, 0.0 }
0x116f   : > { %2193 = vadd.xlane.f32.xlu0 %v2192_v14 }
0x1170   : > { %3842 = vmatpush3.bf16.msra.mxu0 %v2225_v23  ;;  %v2417_v23 = vpack.c.bf16 %v2408_v22, %v2407_v21 }
0x1171   : > { %3847 = vmatprep.subr.bf16.mxu0 %v4178_v58 }
0x11fc   : > { %v2194_v15 = vpop.xlane.xlu0 %2193 }
0x11fd   : > { %v2195_v47 = vmul.f32 0.03125, %v2194_v15 }
0x11ff   : > { %v2196_v16 = vsub.f32 %v2189_v12, %v2195_v47 }
0x1201   : > { %v2197_v17 = vmul.f32 %v2196_v16, %v2196_v16 }
0x1203   : > { %v2198_v18 = vsel %vm1411_vm1, %v2197_v17, 0.0 }
0x1204   : > { %2199 = vadd.xlane.f32.xlu0 %v2198_v18 }
0x1291   : > { %v2200_v24 = vpop.xlane.xlu0 %2199 }
0x1292   : > { %v2201_v25 = vmul.f32 0.03125, %v2200_v24 }
0x1294   : > { %v2202_v26 = vadd.f32 1e-05, %v2201_v25 }
0x1296   : > { %4067 = vrsqrt.f32 %v2202_v26 }
0x12a0   : > { %v4068_v27 = vpop.eup %4067 }
0x12a1   : > { %v2204_v29 = vmul.f32 %v4068_v27, %v2196_v16 }
0x12a3   : > { %v2211_v31 = vmul.f32 %v3633_v28, %v2204_v29 }
0x12a5   : > { %v2218_v32 = vadd.f32 %v3634_v30, %v2211_v31 }
0x12a7   : > { %v2223_v33 = vpack.c.bf16 %v2218_v32, %v2218_v32  ;;  %v3639_v32 = vld [vmem:[%s4932_s10] ss:$0 sm:$0xff]  ;;  %s4935_s10 = smov 120  }
0x12a9   : > { %3844 = vmatmul.mubr.msk.bf16.vlgmr.msra.gmra.mrb[12].mxu0 %vm1459_vm3, %v2223_v33 }
0x12aa   : > { %3851 = vmatprep.mubr.msk.bf16.mxu0 %vm4179_vm2, %v4178_v58  ;;  %3848 = vmatpush3.bf16.msra.mxu0 %v2290_v36  ;;  %v3640_v36 = vld [vmem:[%s4933_s7] ss:$0 sm:$0xff]  ;;  %s4937_s7 = smov 112  }
0x12ab   : > { %3849 = vmatprep.subr.bf16.mxu0 %v4178_v58 }
0x12ae   : > { %3850 = vmatpush3.bf16.msra.mxu0 %v2291_v13 }
0x12af   : > { %3855 = vmatprep.subr.bf16.mxu0 %v4178_v58 }
0x137c   : > { %v2270_v41 = vpop.f32.mrb[12].mxu0 }
0x137d   : > { %v2271_v42 = vadd.f32 %v3635_v40, %v2270_v41  ;;  %v3845_v43 = vpop.f32.mrb[13].mxu0  ;;  %v3641_v41 = vld [vmem:[%s4934_s28] ss:$0 sm:$0xff]  ;;  %s4936_s28 = smov 72  }
0x137e   : > { %v2273_v44 = vpop.f32.mrb[14].mxu0 }
0x137f   : > { %v2276_v45 = vmul.f32 %v2271_v42, %v2271_v42  ;;  %v3846_v46 = vpop.f32.mrb[15].mxu0 }
0x1381   : > { %v2277_v48 = vmul.f32 %v2276_v45, %v2271_v42 }
0x1383   : > { %v2278_v49 = vmul.f32 0.044715, %v2277_v48 }
0x1385   : > { %v2279_v50 = vadd.f32 %v2278_v49, %v2271_v42 }
0x1387   : > { %v2280_v51 = vmul.f32 0.7978846, %v2279_v50 }
0x1389   : > { %4069 = vtanh.f32 %v2280_v51 }
0x1393   : > { %v4070_v52 = vpop.eup %4069 }
0x1394   : > { %v2282_v53 = vadd.f32 1.0, %v4070_v52 }
0x1396   : > { %v2283_v54 = vmul.f32 0.5, %v2282_v53 }
0x1398   : > { %v2284_v55 = vmul.f32 %v2283_v54, %v2271_v42 }
0x139a   : > { %v2289_v56 = vpack.c.bf16 %v2284_v55, %v2284_v55 }
0x139c   : > { %3852 = vmatmul.mubr.msk.bf16.vlgmr.msra.gmra.mrb[16].mxu0 %vm1459_vm3, %v2289_v56 }
0x139d   : > { %3859 = vmatprep.mubr.msk.bf16.mxu0 %vm4179_vm2, %v4178_v58  ;;  %3856 = vmatpush3.bf16.msra.mxu0 %v2416_v4 }
0x139e   : > { %3857 = vmatprep.subr.bf16.mxu0 %v4178_v58 }
0x13a1   : > { %3858 = vmatpush3.bf16.msra.mxu0 %v2417_v23 }
0x13a2   : > { %3863 = vmatprep.subr.bf16.mxu0 %v4178_v58 }
0x146f   : > { %v2336_v61 = vpop.f32.mrb[16].mxu0 }
0x1470   : > { %v2337_v62 = vadd.f32 %v3637_v59, %v2336_v61  ;;  %v3853_v63 = vpop.f32.mrb[17].mxu0 }
0x1471   : > { %v2339_v2 = vpop.f32.mrb[18].mxu0 }
0x1472   : > { %v2347_v3 = vsel %vm2346_vm10, %v2337_v62, %v2344_v60  ;;  %v3854_v37 = vpop.f32.mrb[19].mxu0  ;;  %v2352_v62 = vlaneseq }
0x1473   : > { %v4662_v5 = vadd.f32 %v2348_v0, %v2347_v3  ;;  %v4194_v3 = vmov -1e+30  }
0x1474   : > { %v2353_v63 = vshrl.u32 %v2352_v62, 7  ;;  %v4723_v0 = vand.u32 127, %v2352_v62 }
0x1475   : > { %v2363_v7 = vsel %vm1459_vm3, %v4662_v5, 0.0 }
0x1476   : > { %2364 = vadd.xlane.f32.xlu0 %v2363_v7  ;;  %v2354_v1 = vadd.s32 8, %v2353_v63  ;;  %vm2357_vm11 = vcmp.le.s32.totalorder %v4723_v0, %v2353_v63 }
0x1477   : > { %v2359_v37 = vsel %vm2357_vm11, 0.0, %v4194_v3 }
0x1478   : > { %vm2358_vm12 = vcmp.le.s32.totalorder %v4723_v0, %v2354_v1 }
0x147a   : > { %2367 = vadd.xlane.f32.xlu0 %v2366_v8 }
0x1503   : > { %v2365_v9 = vpop.xlane.xlu0 %2364 }
0x1504   : > { %v2369_v10 = vmul.f32 0.03125, %v2365_v9 }
0x1506   : > { %v2371_v11 = vsub.f32 %v4662_v5, %v2369_v10  ;;  %v2360_v10 = vsel %vm2358_vm12, 0.0, %v4194_v3 }
0x1507   : > { %v2368_v12 = vpop.xlane.xlu0 %2367 }
0x1508   : > { %v2370_v14 = vmul.f32 0.03125, %v2368_v12  ;;  %v2373_v15 = vmul.f32 %v2371_v11, %v2371_v11 }
0x150a   : > { %v2372_v47 = vsub.f32 %v4664_v6, %v2370_v14  ;;  %v2375_v16 = vsel %vm1459_vm3, %v2373_v15, 0.0 }
0x150b   : > { %2376 = vadd.xlane.f32.xlu0 %v2375_v16 }
0x150c   : > { %v2374_v17 = vmul.f32 %v2372_v47, %v2372_v47 }
0x150e   : > { %v2378_v18 = vsel %vm1411_vm1, %v2374_v17, 0.0 }
0x150f   : > { %2379 = vadd.xlane.f32.xlu0 %v2378_v18 }
0x1598   : > { %v2377_v24 = vpop.xlane.xlu0 %2376 }
0x1599   : > { %v2381_v25 = vmul.f32 0.03125, %v2377_v24 }
0x159b   : > { %v2383_v26 = vadd.f32 1e-05, %v2381_v25 }
0x159c   : > { %v2380_v27 = vpop.xlane.xlu0 %2379 }
0x159d   : > { %4071 = vrsqrt.f32 %v2383_v26  ;;  %v2382_v28 = vmul.f32 0.03125, %v2380_v27 }
0x159f   : > { %v2384_v29 = vadd.f32 1e-05, %v2382_v28 }
0x15a1   : > { %4073 = vrsqrt.f32 %v2384_v29 }
0x15a7   : > { %v4072_v30 = vpop.eup %4071 }
0x15a8   : > { %v2387_v31 = vmul.f32 %v4072_v30, %v2371_v11 }
0x15aa   : > { %v2395_v34 = vmul.f32 %v3639_v32, %v2387_v31 }
0x15ab   : > { %v4074_v33 = vpop.eup %4073 }
0x15ac   : > { %v2388_v35 = vmul.f32 %v4074_v33, %v2372_v47  ;;  %v2403_v39 = vadd.f32 %v3640_v36, %v2395_v34 }
0x15ae   : > { %v2396_v38 = vmul.f32 %v3639_v32, %v2388_v35 }
0x15b0   : > { %v2404_v13 = vadd.f32 %v3640_v36, %v2396_v38 }
0x15b2   : > { %v2415_v40 = vpack.c.bf16 %v2404_v13, %v2403_v39 }
0x15b4   : > { %3860 = vmatmul.mubr.msk.bf16.vlgmr.msra.gmra.mrb[20].mxu0 %vm1459_vm3, %v2415_v40 }
0x15b5   : > { %3865 = vmatprep.mubr.msk.bf16.mxu0 %vm4179_vm2, %v4178_v58 }
0x1687   : > { %v2461_v42 = vpop.f32.mrb[20].mxu0 }
0x1688   : > { %v3861_v43 = vpop.f32.mrb[21].mxu0  ;;  %v2462_v45 = vadd.f32 %v3641_v41, %v2461_v42 }
0x1689   : > { %v2464_v44 = vpop.f32.mrb[22].mxu0 }
0x168a   : > { %v2465_v46 = vadd.f32 %v3641_v41, %v2464_v44  ;;  %v3862_v48 = vpop.f32.mrb[23].mxu0 }
0x168c   : > { %v4686_v49 = vpack.c.bf16 %v2465_v46, %v2462_v45 }
0x168e   : > { %2600 = vrot.lane.b32.xlu1 %v4686_v49, %s4182_s26  ;;  %2470 = vrot.lane.b32.xlu0 %v4686_v49, %s4181_s23  ;;  %s4939_s23 = smov 64   ;;  %s4940_s26 = smov 48  }
0x1692   : > { %2727 = vrot.lane.b32.xlu1 %v4686_v49, %s4185_s2  ;;  %2598 = vrot.lane.b32.xlu0 %v4686_v49, %s4935_s10  ;;  %s4941_s2 = smov 40   ;;  %s4943_s10 = sld [smem:[#allocation17_spill]] }
0x1696   : > { %2854 = vrot.lane.b32.xlu1 %v4686_v49, %s4936_s28  ;;  %2725 = vrot.lane.b32.xlu0 %v4686_v49, %s4937_s7  ;;  %s4944_s28 = smov 8   ;;  %s4945_s7 = smov 16  }
0x169a   : > { %2852 = vrot.lane.b32.xlu0 %v4686_v49, %s4938_s1  ;;  %s4942_s1 = smov 56  }
0x1700   : > { %v2471_v50 = vpop.permute.xlu0 %2470  ;;  %v2601_v52 = vpop.permute.xlu1 %2600 }
0x1701   : > { %v2476_v51 = vsel %vm1507_vm4, %v2471_v50, 0  ;;  %v2606_v53 = vsel %vm1507_vm4, %v2601_v52, 0 }
0x1702   : > { %3864 = vmatpush3.bf16.xpose.msra.mxu0 %v2476_v51 }
0x1703   : > { %3875 = vmatprep.subr.bf16.mxu0 %v4178_v58 }
0x1704   : > { %v2728_v54 = vpop.permute.xlu1 %2727  ;;  %v2599_v55 = vpop.permute.xlu0 %2598 }
0x1705   : > { %v2733_v56 = vsel %vm1507_vm4, %v2728_v54, 0 }
0x1708   : > { %v2855_v57 = vpop.permute.xlu1 %2854  ;;  %v2726_v59 = vpop.permute.xlu0 %2725 }
0x1709   : > { %3866 = vmatmul.mubr.msk.bf16.vlgmr.msra.gmra.mrb[24].mxu0 %vm1507_vm4, %v4686_v49  ;;  %v2860_v60 = vsel %vm1507_vm4, %v2855_v57, 0 }
0x170a   : > { %3876 = vmatpush3.bf16.xpose.msra.mxu0 %v2606_v53  ;;  %3877 = vmatprep.mubr.msk.bf16.mxu0 %vm4179_vm2, %v4178_v58 }
0x170b   : > { %3887 = vmatprep.subr.bf16.mxu0 %v4178_v58 }
0x170c   : > { %v2853_v61 = vpop.permute.xlu0 %2852 }
0x1711   : > { %3878 = vmatmul.mubr.msk.bf16.vlgmr.msra.gmra.mrb[28].mxu0 %vm1507_vm4, %v2599_v55 }
0x1712   : > { %3888 = vmatpush3.bf16.xpose.msra.mxu0 %v2733_v56  ;;  %3889 = vmatprep.mubr.msk.bf16.mxu0 %vm4179_vm2, %v4178_v58 }
0x1713   : > { %3899 = vmatprep.subr.bf16.mxu0 %v4178_v58 }
0x1719   : > { %3890 = vmatmul.mubr.msk.bf16.vlgmr.msra.gmra.mrb[32].mxu0 %vm1507_vm4, %v2726_v59 }
0x171a   : > { %3900 = vmatpush3.bf16.xpose.msra.mxu0 %v2860_v60  ;;  %3901 = vmatprep.mubr.msk.bf16.mxu0 %vm4179_vm2, %v4178_v58 }
0x171b   : > { %3911 = vmatprep.subr.bf16.mxu0 %v4178_v58 }
0x1721   : > { %3902 = vmatmul.mubr.msk.bf16.vlgmr.msra.gmra.mrb[36].mxu0 %vm1507_vm4, %v2853_v61 }
0x1722   : > { %3915 = vmatprep.mubr.msk.bf16.mxu0 %vm4179_vm2, %v4178_v58 }
0x17dc   : > { %v2512_v2 = vpop.f32.mrb[24].mxu0 }
0x17dd   : > { %v2519_v7 = vmul.f32 0.35355338, %v2512_v2  ;;  %v3867_v8 = vpop.f32.mrb[25].mxu0 }
0x17de   : > { %v2515_v9 = vpop.f32.mrb[26].mxu0 }
0x17df   : > { %v2520_v11 = vmul.f32 0.35355338, %v2515_v9  ;;  %v3868_v12 = vpop.f32.mrb[27].mxu0  ;;  %v2521_v14 = vadd.f32 %v2519_v7, %v2359_v37 }
0x17e1   : > { %v2524_v15 = vsel %vm2523_vm13, %v2521_v14, -inf  ;;  %v2522_v47 = vadd.f32 %v2520_v11, %v2360_v10 }
0x17e2   : > { %2525 = vmax.xlane.f32.xlu1 %v2524_v15 }
0x17e3   : > { %v2528_v16 = vsel %vm2527_vm14, %v2522_v47, -inf }
0x17e4   : > { %2529 = vmax.xlane.f32.xlu0 %v2528_v16  ;;  %v2642_v17 = vpop.f32.mrb[28].mxu0 }
0x17e5   : > { %v2649_v18 = vmul.f32 0.35355338, %v2642_v17  ;;  %v3879_v19 = vpop.f32.mrb[29].mxu0 }
0x17e6   : > { %v2645_v20 = vpop.f32.mrb[30].mxu0 }
0x17e7   : > { %v2650_v4 = vmul.f32 0.35355338, %v2645_v20  ;;  %v3880_v21 = vpop.f32.mrb[31].mxu0  ;;  %v2651_v22 = vadd.f32 %v2649_v18, %v2359_v37 }
0x17e9   : > { %v2653_v23 = vsel %vm2523_vm13, %v2651_v22, -inf  ;;  %v2652_v24 = vadd.f32 %v2650_v4, %v2360_v10 }
0x17ea   : > { %2654 = vmax.xlane.f32.xlu0 %v2653_v23 }
0x17eb   : > { %v2656_v28 = vsel %vm2527_vm14, %v2652_v24, -inf }
0x17ec   : > { %v2769_v25 = vpop.f32.mrb[32].mxu0 }
0x17ed   : > { %v2776_v26 = vmul.f32 0.35355338, %v2769_v25  ;;  %v3891_v27 = vpop.f32.mrb[33].mxu0 }
0x17ee   : > { %2657 = vmax.xlane.f32.xlu0 %v2656_v28  ;;  %v2772_v29 = vpop.f32.mrb[34].mxu0 }
0x17ef   : > { %v2777_v30 = vmul.f32 0.35355338, %v2772_v29  ;;  %v3892_v31 = vpop.f32.mrb[35].mxu0  ;;  %v2778_v32 = vadd.f32 %v2776_v26, %v2359_v37 }
0x17f1   : > { %v2780_v33 = vsel %vm2523_vm13, %v2778_v32, -inf  ;;  %v2779_v34 = vadd.f32 %v2777_v30, %v2360_v10 }
0x17f2   : > { %2781 = vmax.xlane.f32.xlu1 %v2780_v33 }
0x17f3   : > { %v2783_v35 = vsel %vm2527_vm14, %v2779_v34, -inf }
0x17f4   : > { %2784 = vmax.xlane.f32.xlu0 %v2783_v35  ;;  %v2896_v36 = vpop.f32.mrb[36].mxu0 }
0x17f5   : > { %v2903_v38 = vmul.f32 0.35355338, %v2896_v36  ;;  %v3903_v39 = vpop.f32.mrb[37].mxu0 }
0x17f6   : > { %v2899_v13 = vpop.f32.mrb[38].mxu0 }
0x17f7   : > { %v2904_v40 = vmul.f32 0.35355338, %v2899_v13  ;;  %v3904_v41 = vpop.f32.mrb[39].mxu0  ;;  %v2905_v42 = vadd.f32 %v2903_v38, %v2359_v37 }
0x17f9   : > { %v2907_v43 = vsel %vm2523_vm13, %v2905_v42, -inf  ;;  %v2906_v44 = vadd.f32 %v2904_v40, %v2360_v10 }
0x17fa   : > { %2908 = vmax.xlane.f32.xlu1 %v2907_v43 }
0x17fb   : > { %v2910_v45 = vsel %vm2527_vm14, %v2906_v44, -inf }
0x17fc   : > { %2911 = vmax.xlane.f32.xlu0 %v2910_v45 }
0x180b   : > { %2548 = vrot.lane.b32.xlu1 %v4686_v49, %s4939_s23  ;;  %s4946_s23 = smov 24  }
0x186f   : > { %v2526_v46 = vpop.xlane.xlu1 %2525 }
0x1870   : > { %v2531_v48 = vsub.f32 %v2521_v14, %v2526_v46 }
0x1871   : > { %v2530_v50 = vpop.xlane.xlu0 %2529 }
0x1872   : > { %v2533_v51 = vmul.f32 1.442695, %v2531_v48  ;;  %v2532_v52 = vsub.f32 %v2522_v47, %v2530_v50 }
0x1874   : > { %4075 = vpow2.f32 %v2533_v51  ;;  %v2535_v53 = vmul.f32 1.442695, %v2532_v52 }
0x1876   : > { %4077 = vpow2.f32 %v2535_v53 }
0x1877   : > { %v2655_v54 = vpop.xlane.xlu0 %2654 }
0x1878   : > { %v2659_v55 = vsub.f32 %v2651_v22, %v2655_v54 }
0x187a   : > { %v2661_v56 = vmul.f32 1.442695, %v2659_v55 }
0x187b   : > { %v2658_v57 = vpop.xlane.xlu0 %2657 }
0x187c   : > { %4079 = vpow2.f32 %v2661_v56  ;;  %v2660_v59 = vsub.f32 %v2652_v24, %v2658_v57 }
0x187e   : > { %v4076_v60 = vpop.eup %4075  ;;  %v2663_v61 = vmul.f32 1.442695, %v2660_v59 }
0x187f   : > { %v2782_v62 = vpop.xlane.xlu1 %2781  ;;  %v2537_v63 = vsel %vm2523_vm13, %v4076_v60, 0.0 }
0x1880   : > { %v4078_v1 = vpop.eup %4077  ;;  %4081 = vpow2.f32 %v2663_v61  ;;  %v2786_v2 = vsub.f32 %v2778_v32, %v2782_v62  ;;  %2538 = vadd.xlane.f32.xlu1 %v2537_v63 }
0x1881   : > { %v2785_v3 = vpop.xlane.xlu0 %2784  ;;  %v2540_v37 = vsel %vm2527_vm14, %v4078_v1, 0.0 }
0x1882   : > { %v2788_v7 = vmul.f32 1.442695, %v2786_v2  ;;  %v2787_v8 = vsub.f32 %v2779_v34, %v2785_v3  ;;  %2541 = vadd.xlane.f32.xlu0 %v2540_v37 }
0x1884   : > { %4083 = vpow2.f32 %v2788_v7  ;;  %v2790_v9 = vmul.f32 1.442695, %v2787_v8 }
0x1886   : > { %v4080_v10 = vpop.eup %4079  ;;  %4085 = vpow2.f32 %v2790_v9 }
0x1887   : > { %v2909_v11 = vpop.xlane.xlu1 %2908  ;;  %v2665_v12 = vsel %vm2523_vm13, %v4080_v10, 0.0 }
0x1888   : > { %v2913_v14 = vsub.f32 %v2905_v42, %v2909_v11  ;;  %2666 = vadd.xlane.f32.xlu1 %v2665_v12  ;;  %v2410_v11 = vld [vmem:[%s4943_s10] sm:$0xff]  ;;  %v2411_v12 = vld [vmem:[%s4943_s10 + $0x8] sm:$0xff] }
0x1889   : > { %v2912_v15 = vpop.xlane.xlu0 %2911 }
0x188a   : > { %v4082_v47 = vpop.eup %4081  ;;  %v2915_v16 = vmul.f32 1.442695, %v2913_v14  ;;  %v2914_v17 = vsub.f32 %v2906_v44, %v2912_v15 }
0x188b   : > { %v2549_v18 = vpop.permute.xlu1 %2548  ;;  %v2668_v19 = vsel %vm2527_vm14, %v4082_v47, 0.0 }
0x188c   : > { %4087 = vpow2.f32 %v2915_v16  ;;  %v2917_v20 = vmul.f32 1.442695, %v2914_v17  ;;  %v2555_v4 = vsel %vm2553_vm15, %v2549_v18, 0  ;;  %2669 = vadd.xlane.f32.xlu0 %v2668_v19  ;;  %v2412_v17 = vld [vmem:[%s4943_s10 + $0x10] sm:$0xff]  ;;  %v2413_v18 = vld [vmem:[%s4943_s10 + $0x18] sm:$0xff] }
0x188d   : > { %3870 = vmatpush3.bf16.msra.mxu1 %v2555_v4 }
0x188e   : > { %v4084_v21 = vpop.eup %4083  ;;  %4089 = vpow2.f32 %v2917_v20  ;;  %3881 = vmatprep.subr.bf16.mxu1 %v4178_v58  ;;  %v3011_v20 = vpack.c.bf16 %v2413_v18, %v2412_v17 }
0x188f   : > { %v2792_v22 = vsel %vm2523_vm13, %v4084_v21, 0.0 }
0x1890   : > { %v4086_v23 = vpop.eup %4085  ;;  %2793 = vadd.xlane.f32.xlu1 %v2792_v22 }
0x1891   : > { %v2795_v24 = vsel %vm2527_vm14, %v4086_v23, 0.0 }
0x1892   : > { %2796 = vadd.xlane.f32.xlu0 %v2795_v24 }
0x1896   : > { %v4088_v25 = vpop.eup %4087 }
0x1897   : > { %v2919_v26 = vsel %vm2523_vm13, %v4088_v25, 0.0 }
0x1898   : > { %v4090_v27 = vpop.eup %4089  ;;  %2920 = vadd.xlane.f32.xlu1 %v2919_v26 }
0x1899   : > { %v2922_v28 = vsel %vm2527_vm14, %v4090_v27, 0.0 }
0x189a   : > { %2923 = vadd.xlane.f32.xlu0 %v2922_v28 }
0x18a9   : > { %2803 = vrot.lane.b32.xlu1 %v4686_v49, %s4940_s26  ;;  %s4947_s26 = sld [smem:[#allocation18_spill]] }
0x18ad   : > { %2930 = vrot.lane.b32.xlu1 %v4686_v49, %s4941_s2  ;;  %s4948_s2 = sld [smem:[#allocation21_spill]] }
0x18b0   : > { %2676 = vrot.lane.b32.xlu0 %v4686_v49, %s4942_s1  ;;  %s4949_s1 = sld [smem:[#allocation19_spill]] }
0x18b6   : > { %v3653_v18 = vld [vmem:[%s4949_s1] ss:$0 sm:$0xff]  ;;  %s4954_s1 = sld [smem:[#allocation25_spill]] }
0x190d   : > { %v2539_v29 = vpop.xlane.xlu1 %2538 }
0x190e   : > { %4091 = vrcp.f32 %v2539_v29 }
0x190f   : > { %v2542_v30 = vpop.xlane.xlu0 %2541 }
0x1910   : > { %4093 = vrcp.f32 %v2542_v30 }
0x1915   : > { %v2667_v36 = vpop.xlane.xlu1 %2666 }
0x1918   : > { %v4092_v31 = vpop.eup %4091 }
0x1919   : > { %v2670_v33 = vpop.xlane.xlu0 %2669  ;;  %v2545_v34 = vmul.f32 %v4092_v31, %v4076_v60 }
0x191a   : > { %v4094_v32 = vpop.eup %4093  ;;  %4095 = vrcp.f32 %v2670_v33 }
0x191b   : > { %v2546_v35 = vmul.f32 %v4094_v32, %v4078_v1  ;;  %4097 = vrcp.f32 %v2667_v36 }
0x191d   : > { %v2547_v38 = vpack.c.bf16 %v2546_v35, %v2545_v34  ;;  %v2794_v49 = vpop.xlane.xlu1 %2793 }
0x191f   : > { %3872 = vmatmul.mubr.msk.bf16.vlgmr.msra.gmra.mrb[40].mxu1 %vm2523_vm13, %v2547_v38  ;;  %v2797_v39 = vpop.xlane.xlu0 %2796 }
0x1920   : > { %3883 = vmatprep.mubr.msk.bf16.mxu1 %vm4179_vm2, %v4178_v58  ;;  %4099 = vrcp.f32 %v2797_v39 }
0x1921   : > { %4101 = vrcp.f32 %v2794_v49 }
0x1924   : > { %v4096_v13 = vpop.eup %4095 }
0x1925   : > { %v2921_v40 = vpop.xlane.xlu1 %2920  ;;  %v4098_v42 = vpop.eup %4097  ;;  %v2674_v43 = vmul.f32 %v4096_v13, %v4082_v47  ;;  %v3010_v47 = vpack.c.bf16 %v2411_v12, %v2410_v11 }
0x1926   : > { %v2673_v45 = vmul.f32 %v4098_v42, %v4080_v10 }
0x1927   : > { %v2924_v41 = vpop.xlane.xlu0 %2923  ;;  %3912 = vmatpush3.bf16.msra.mxu0 %v3010_v47 }
0x1928   : > { %4103 = vrcp.f32 %v2924_v41  ;;  %v2675_v50 = vpack.c.bf16 %v2674_v43, %v2673_v45  ;;  %3913 = vmatprep.subr.bf16.mxu0 %v4178_v58  ;;  %v3651_v43 = vld [vmem:[%s4947_s26] ss:$0 sm:$0xff]  ;;  %s4953_s26 = sld [smem:[#allocation24_spill]] }
0x1929   : > { %v2804_v48 = vpop.permute.xlu1 %2803  ;;  %4105 = vrcp.f32 %v2921_v40 }
0x192a   : > { %v4100_v51 = vpop.eup %4099  ;;  %v2809_v52 = vsel %vm2553_vm15, %v2804_v48, 0 }
0x192b   : > { %v2677_v44 = vpop.permute.xlu0 %2676  ;;  %v4102_v53 = vpop.eup %4101  ;;  %v2801_v54 = vmul.f32 %v4100_v51, %v4086_v23  ;;  %3914 = vmatpush3.bf16.msra.mxu0 %v3011_v20 }
0x192c   : > { %v2682_v46 = vsel %vm2553_vm15, %v2677_v44, 0  ;;  %v2800_v55 = vmul.f32 %v4102_v53, %v4084_v21  ;;  %3927 = vmatprep.subr.bf16.mxu0 %v4178_v58 }
0x192d   : > { %3882 = vmatpush3.bf16.msra.mxu1 %v2682_v46  ;;  %v2931_v56 = vpop.permute.xlu1 %2930 }
0x192e   : > { %3893 = vmatprep.subr.bf16.mxu1 %v4178_v58  ;;  %v2802_v57 = vpack.c.bf16 %v2801_v54, %v2800_v55  ;;  %v2936_v60 = vsel %vm2553_vm15, %v2931_v56, 0 }
0x1930   : > { %3884 = vmatmul.mubr.msk.bf16.vlgmr.msra.gmra.mrb[44].mxu1 %vm2523_vm13, %v2675_v50 }
0x1931   : > { %3894 = vmatpush3.bf16.msra.mxu1 %v2809_v52  ;;  %3895 = vmatprep.mubr.msk.bf16.mxu1 %vm4179_vm2, %v4178_v58 }
0x1932   : > { %3905 = vmatprep.subr.bf16.mxu1 %v4178_v58  ;;  %v4104_v59 = vpop.eup %4103 }
0x1933   : > { %v4106_v61 = vpop.eup %4105  ;;  %v2928_v62 = vmul.f32 %v4104_v59, %v4090_v27 }
0x1934   : > { %v2927_v63 = vmul.f32 %v4106_v61, %v4088_v25 }
0x1936   : > { %v2929_v1 = vpack.c.bf16 %v2928_v62, %v2927_v63 }
0x1938   : > { %3896 = vmatmul.mubr.msk.bf16.vlgmr.msra.gmra.mrb[48].mxu1 %vm2523_vm13, %v2802_v57 }
0x1939   : > { %3906 = vmatpush3.bf16.msra.mxu1 %v2936_v60  ;;  %3907 = vmatprep.mubr.msk.bf16.mxu1 %vm4179_vm2, %v4178_v58 }
0x193a   : > { %3919 = vmatprep.subr.bf16.mxu1 %v4178_v58 }
0x1940   : > { %3908 = vmatmul.mubr.msk.bf16.vlgmr.msra.gmra.mrb[52].mxu1 %vm2523_vm13, %v2929_v1 }
0x1941   : > { %3923 = vmatprep.mubr.msk.bf16.mxu1 %vm4179_vm2, %v4178_v58 }
0x19f2   : > { %v2591_v2 = vpop.f32.mrb[40].mxu1 }
0x19f3   : > { %v3873_v3 = vpop.f32.mrb[41].mxu1 }
0x19f4   : > { %v2594_v37 = vpop.f32.mrb[42].mxu1  ;;  %v3109_v3 = vld [vmem:[%s4948_s2 + $0x8] sm:$0xff] }
0x19f5   : > { %v3874_v7 = vpop.f32.mrb[43].mxu1 }
0x19f6   : > { %v3110_v7 = vld [vmem:[%s4948_s2 + $0x10] sm:$0xff] }
0x1a03   : > { %v2718_v8 = vpop.f32.mrb[44].mxu1 }
0x1a04   : > { %v3885_v9 = vpop.f32.mrb[45].mxu1 }
0x1a05   : > { %v2721_v10 = vpop.f32.mrb[46].mxu1 }
0x1a06   : > { %v4027_v14 = vpack.i.bf16 %v2721_v10, %v2718_v8  ;;  %v3886_v15 = vpop.f32.mrb[47].mxu1  ;;  %v3111_v8 = vld [vmem:[%s4948_s2 + $0x18] sm:$0xff] }
0x1a07   : > { %v3114_v9 = vpack.c.bf16 %v3111_v8, %v3110_v7 }
0x1a08   : > { %4028 = vrot.lane.b32.xlu1 %v4027_v14, %s4944_s28  ;;  %s4950_s28 = sld [smem:[#allocation20_spill]] }
0x1a0b   : > { %v2845_v16 = vpop.f32.mrb[48].mxu1 }
0x1a0c   : > { %v3897_v19 = vpop.f32.mrb[49].mxu1 }
0x1a0d   : > { %v2848_v4 = vpop.f32.mrb[50].mxu1 }
0x1a0e   : > { %v4032_v21 = vpack.i.bf16 %v2848_v4, %v2845_v16  ;;  %v3898_v22 = vpop.f32.mrb[51].mxu1 }
0x1a10   : > { %4033 = vrot.lane.b32.xlu0 %v4032_v21, %s4945_s7  ;;  %s4951_s7 = sld [smem:[#allocation23_spill]]  ;;  %v3654_v21 = vld [vmem:[%s4950_s28] ss:$0 sm:$0xff]  ;;  %s4955_s28 = sld [smem:[#allocation26_spill]] }
0x1a13   : > { %v2972_v23 = vpop.f32.mrb[52].mxu1 }
0x1a14   : > { %v3909_v24 = vpop.f32.mrb[53].mxu1 }
0x1a15   : > { %v2975_v25 = vpop.f32.mrb[54].mxu1 }
0x1a16   : > { %v4037_v26 = vpack.i.bf16 %v2975_v25, %v2972_v23  ;;  %v3910_v27 = vpop.f32.mrb[55].mxu1 }
0x1a17   : > { %v3185_v27 = vld [vmem:[%s4951_s7 + $0x8] sm:$0xff] }
0x1a18   : > { %4038 = vrot.lane.b32.xlu1 %v4037_v26, %s4946_s23  ;;  %v3184_v26 = vld [vmem:[%s4951_s7] sm:$0xff]  ;;  %s4952_s23 = sld [smem:[#allocation22_spill]] }
0x1a7a   : > { %v4029_v28 = vpop.permute.xlu1 %4028 }
0x1a7b   : > { %v4031_v30 = vunpack.i.h.bf16 %v4029_v28  ;;  %v4030_v31 = vunpack.i.l.bf16 %v4029_v28  ;;  %v3201_v28 = vpack.c.bf16 %v3185_v27, %v3184_v26 }
0x1a7d   : > { %v3004_v35 = vsel %vm1507_vm4, %v2594_v37, %v4031_v30  ;;  %v3003_v36 = vsel %vm1507_vm4, %v2591_v2, %v4030_v31  ;;  %v3108_v2 = vld [vmem:[%s4948_s2] sm:$0xff]  ;;  %v3187_v30 = vld [vmem:[%s4951_s7 + $0x18] sm:$0xff] }
0x1a7e   : > { %v3113_v37 = vpack.c.bf16 %v3109_v3, %v3108_v2 }
0x1a80   : > { %3920 = vmatpush3.bf16.msra.mxu1 %v3113_v37 }
0x1a81   : > { %3921 = vmatprep.subr.bf16.mxu1 %v4178_v58 }
0x1a82   : > { %v4034_v29 = vpop.permute.xlu0 %4033 }
0x1a83   : > { %v4036_v32 = vunpack.i.h.bf16 %v4034_v29  ;;  %v4035_v33 = vunpack.i.l.bf16 %v4034_v29  ;;  %v3186_v29 = vld [vmem:[%s4951_s7 + $0x10] sm:$0xff] }
0x1a84   : > { %3922 = vmatpush3.bf16.msra.mxu1 %v3114_v9  ;;  %v3202_v31 = vpack.c.bf16 %v3187_v30, %v3186_v29 }
0x1a85   : > { %v3006_v49 = vsel %vm1964_vm8, %v3004_v35, %v4036_v32  ;;  %v3005_v13 = vsel %vm1964_vm8, %v3003_v36, %v4035_v33  ;;  %3947 = vmatprep.subr.bf16.mxu1 %v4178_v58  ;;  %v3188_v32 = vld [vmem:[%s4951_s7 + $0x20] sm:$0xff]  ;;  %v3189_v33 = vld [vmem:[%s4951_s7 + $0x28] sm:$0xff]  ;;  %v3190_v35 = vld [vmem:[%s4951_s7 + $0x30] sm:$0xff] }
0x1a86   : > { %v3191_v36 = vld [vmem:[%s4951_s7 + $0x38] sm:$0xff] }
0x1a8a   : > { %v4039_v34 = vpop.permute.xlu1 %4038 }
0x1a8b   : > { %v4041_v38 = vunpack.i.h.bf16 %v4039_v34  ;;  %v4040_v39 = vunpack.i.l.bf16 %v4039_v34  ;;  %v3203_v34 = vpack.c.bf16 %v3189_v33, %v3188_v32 }
0x1a8d   : > { %v3008_v40 = vsel %vm1966_vm9, %v3006_v49, %v4041_v38  ;;  %v3007_v41 = vsel %vm1966_vm9, %v3005_v13, %v4040_v39  ;;  %v3204_v38 = vpack.c.bf16 %v3191_v36, %v3190_v35  ;;  %v3192_v39 = vld [vmem:[%s4951_s7 + $0x40] sm:$0xff]  ;;  %v3193_v49 = vld [vmem:[%s4951_s7 + $0x48] sm:$0xff] }
0x1a8e   : > { %v3009_v42 = vpack.c.bf16 %v3008_v40, %v3007_v41  ;;  %v3205_v13 = vpack.c.bf16 %v3193_v49, %v3192_v39  ;;  %v3194_v40 = vld [vmem:[%s4951_s7 + $0x50] sm:$0xff]  ;;  %v3195_v41 = vld [vmem:[%s4951_s7 + $0x58] sm:$0xff]  ;;  %v3305_v35 = vld [vmem:[%s4398_s9] sm:$0xff] }
0x1a8f   : > { %v3306_v36 = vld [vmem:[%s4398_s9 + $0x8] sm:$0xff]  ;;  %v3307_v39 = vld [vmem:[%s4398_s9 + $0x10] sm:$0xff]  ;;  %v3308_v49 = vld [vmem:[%s4398_s9 + $0x18] sm:$0xff] }
0x1a90   : > { %3916 = vmatmul.mubr.msk.bf16.vlgmr.msra.gmra.mrb[40].mxu0 %vm1459_vm3, %v3009_v42  ;;  %v3206_v42 = vpack.c.bf16 %v3195_v41, %v3194_v40 }
0x1a91   : > { %3943 = vmatprep.mubr.msk.bf16.mxu0 %vm4179_vm2, %v4178_v58  ;;  %3928 = vmatpush3.bf16.msra.mxu0 %v3201_v28 }
0x1a92   : > { %3929 = vmatprep.subr.bf16.mxu0 %v4178_v58 }
0x1a95   : > { %3930 = vmatpush3.bf16.msra.mxu0 %v3202_v31 }
0x1a96   : > { %3931 = vmatprep.subr.bf16.mxu0 %v4178_v58 }
0x1a99   : > { %3932 = vmatpush3.bf16.msra.mxu0 %v3203_v34 }
0x1a9a   : > { %3933 = vmatprep.subr.bf16.mxu0 %v4178_v58 }
0x1a9d   : > { %3934 = vmatpush3.bf16.msra.mxu0 %v3204_v38  ;;  %v3310_v38 = vpack.c.bf16 %v3306_v36, %v3305_v35 }
0x1a9e   : > { %3935 = vmatprep.subr.bf16.mxu0 %v4178_v58 }
0x1aa1   : > { %3936 = vmatpush3.bf16.msra.mxu0 %v3205_v13  ;;  %v3311_v13 = vpack.c.bf16 %v3308_v49, %v3307_v39 }
0x1aa2   : > { %3937 = vmatprep.subr.bf16.mxu0 %v4178_v58 }
0x1aa5   : > { %3938 = vmatpush3.bf16.msra.mxu0 %v3206_v42 }
0x1aa6   : > { %3939 = vmatprep.subr.bf16.mxu0 %v4178_v58 }
0x1b63   : > { %v3055_v44 = vpop.f32.mrb[40].mxu0 }
0x1b64   : > { %v3056_v45 = vadd.f32 %v3651_v43, %v3055_v44  ;;  %v3917_v46 = vpop.f32.mrb[41].mxu0  ;;  %v3197_v44 = vld [vmem:[%s4951_s7 + $0x68] sm:$0xff] }
0x1b65   : > { %v3058_v48 = vpop.f32.mrb[42].mxu0  ;;  %v3198_v46 = vld [vmem:[%s4951_s7 + $0x70] sm:$0xff] }
0x1b66   : > { %v4791_v50 = vadd.f32 %v3056_v45, %v4662_v5  ;;  %v3059_v51 = vadd.f32 %v3651_v43, %v3058_v48  ;;  %v3918_v52 = vpop.f32.mrb[43].mxu0  ;;  %v3196_v43 = vld [vmem:[%s4951_s7 + $0x60] sm:$0xff]  ;;  %v3199_v48 = vld [vmem:[%s4951_s7 + $0x78] sm:$0xff] }
0x1b67   : > { %v3207_v45 = vpack.c.bf16 %v3197_v44, %v3196_v43  ;;  %v3655_v52 = vld [vmem:[%s4952_s23] ss:$0 sm:$0xff]  ;;  %s4956_s23 = sld [smem:[#allocation3_spill]] }
0x1b68   : > { %v4794_v53 = vadd.f32 %v3059_v51, %v4664_v6  ;;  %v3066_v54 = vsel %vm1459_vm3, %v4791_v50, 0.0  ;;  %v3208_v51 = vpack.c.bf16 %v3199_v48, %v3198_v46  ;;  %v3658_v48 = vld [vmem:[%s4954_s1] ss:$0 sm:$0xff] }
0x1b69   : > { %3067 = vadd.xlane.f32.xlu0 %v3066_v54  ;;  %3940 = vmatpush3.bf16.msra.mxu0 %v3207_v45 }
0x1b6a   : > { %v3069_v55 = vsel %vm1411_vm1, %v4794_v53, 0.0  ;;  %3941 = vmatprep.subr.bf16.mxu0 %v4178_v58 }
0x1b6b   : > { %3070 = vadd.xlane.f32.xlu1 %v3069_v55 }
0x1b6d   : > { %3942 = vmatpush3.bf16.msra.mxu0 %v3208_v51 }
0x1bf6   : > { %v3068_v56 = vpop.xlane.xlu0 %3067 }
0x1bf7   : > { %v3072_v57 = vmul.f32 0.03125, %v3068_v56 }
0x1bf8   : > { %v3071_v5 = vpop.xlane.xlu1 %3070 }
0x1bf9   : > { %v3074_v59 = vsub.f32 %v4791_v50, %v3072_v57  ;;  %v3073_v60 = vmul.f32 0.03125, %v3071_v5 }
0x1bfb   : > { %v3075_v6 = vsub.f32 %v4794_v53, %v3073_v60  ;;  %v3076_v61 = vmul.f32 %v3074_v59, %v3074_v59 }
0x1bfd   : > { %v3078_v62 = vsel %vm1459_vm3, %v3076_v61, 0.0  ;;  %v3077_v63 = vmul.f32 %v3075_v6, %v3075_v6 }
0x1bfe   : > { %3079 = vadd.xlane.f32.xlu0 %v3078_v62 }
0x1bff   : > { %v3081_v1 = vsel %vm1411_vm1, %v3077_v63, 0.0 }
0x1c02   : > { %3082 = vadd.xlane.f32.xlu0 %v3081_v1 }
0x1c8b   : > { %v3080_v10 = vpop.xlane.xlu0 %3079 }
0x1c8c   : > { %v3084_v11 = vmul.f32 0.03125, %v3080_v10 }
0x1c8e   : > { %v3086_v12 = vadd.f32 1e-05, %v3084_v11 }
0x1c8f   : > { %v3083_v14 = vpop.xlane.xlu0 %3082 }
0x1c90   : > { %4107 = vrsqrt.f32 %v3086_v12  ;;  %v3085_v15 = vmul.f32 0.03125, %v3083_v14 }
0x1c92   : > { %v3087_v47 = vadd.f32 1e-05, %v3085_v15 }
0x1c94   : > { %4109 = vrsqrt.f32 %v3087_v47 }
0x1c9a   : > { %v4108_v16 = vpop.eup %4107 }
0x1c9b   : > { %v3090_v17 = vmul.f32 %v4108_v16, %v3074_v59 }
0x1c9d   : > { %v3098_v20 = vmul.f32 %v3653_v18, %v3090_v17 }
0x1c9e   : > { %v4110_v19 = vpop.eup %4109 }
0x1c9f   : > { %v3091_v4 = vmul.f32 %v4110_v19, %v3075_v6  ;;  %v3106_v23 = vadd.f32 %v3654_v21, %v3098_v20 }
0x1ca1   : > { %v3099_v22 = vmul.f32 %v3653_v18, %v3091_v4  ;;  %v3657_v18 = vld [vmem:[%s4953_s26] ss:$0 sm:$0xff]  ;;  %s3669_s26 = sshll.u32 %s4958_s16, 4  ;;  %s1308_s16 = scalar_lea.vmem %s4408_s4, %s4436_s0 }
0x1ca2   : > { %s1304_s1 = scalar_lea.vmem %s4956_s23, %s3669_s26  ;;  %s1312_s23 = scalar_lea.vmem %s4413_s13, %s4436_s0 }
0x1ca3   : > { %v3107_v24 = vadd.f32 %v3654_v21, %v3099_v22 }
0x1ca5   : > { %v3112_v25 = vpack.c.bf16 %v3107_v24, %v3106_v23 }
0x1ca7   : > { %3924 = vmatmul.mubr.msk.bf16.vlgmr.msra.gmra.mrb[56].mxu1 %vm1459_vm3, %v3112_v25 }
0x1ca8   : > { %3951 = vmatprep.mubr.msk.bf16.mxu1 %vm4179_vm2, %v4178_v58  ;;  %3948 = vmatpush3.bf16.msra.mxu1 %v3310_v38 }
0x1ca9   : > { %3949 = vmatprep.subr.bf16.mxu1 %v4178_v58 }
0x1cac   : > { %3950 = vmatpush3.bf16.msra.mxu1 %v3311_v13 }
0x1d7a   : > { %v3159_v54 = vpop.f32.mrb[56].mxu1 }
0x1d7b   : > { %v3160_v55 = vadd.f32 %v3655_v52, %v3159_v54  ;;  %v3925_v56 = vpop.f32.mrb[57].mxu1 }
0x1d7c   : > { %v3162_v57 = vpop.f32.mrb[58].mxu1  ;;  %v3659_v56 = vld [vmem:[%s4955_s28] ss:$0 sm:$0xff] }
0x1d7d   : > { %v3166_v5 = vmul.f32 %v3160_v55, %v3160_v55  ;;  %v3163_v59 = vadd.f32 %v3655_v52, %v3162_v57  ;;  %v3926_v60 = vpop.f32.mrb[59].mxu1 }
0x1d7f   : > { %v3168_v6 = vmul.f32 %v3166_v5, %v3160_v55  ;;  %v3167_v61 = vmul.f32 %v3163_v59, %v3163_v59 }
0x1d81   : > { %v3170_v62 = vmul.f32 0.044715, %v3168_v6  ;;  %v3169_v63 = vmul.f32 %v3167_v61, %v3163_v59  ;;  %v3660_v6 = vld [vmem:[%s4403_s20] ss:$0 sm:$0xff] }
0x1d83   : > { %v3172_v1 = vadd.f32 %v3170_v62, %v3160_v55  ;;  %v3171_v2 = vmul.f32 0.044715, %v3169_v63 }
0x1d85   : > { %v3174_v3 = vmul.f32 0.7978846, %v3172_v1  ;;  %v3173_v37 = vadd.f32 %v3171_v2, %v3163_v59 }
0x1d87   : > { %4111 = vtanh.f32 %v3174_v3  ;;  %v3175_v7 = vmul.f32 0.7978846, %v3173_v37 }
0x1d89   : > { %4113 = vtanh.f32 %v3175_v7 }
0x1d91   : > { %v4112_v8 = vpop.eup %4111 }
0x1d92   : > { %v3178_v9 = vadd.f32 1.0, %v4112_v8  ;;  %v3364_v8 = vld [vmem:[%s1304_s1 + $0x8] sm:$0x7] }
0x1d93   : > { %v4114_v10 = vpop.eup %4113  ;;  %vm3411_vm5 = vcmp.ge.s32.totalorder %v3364_v8, 0 }
0x1d94   : > { %v3180_v11 = vmul.f32 0.5, %v3178_v9  ;;  %v3179_v12 = vadd.f32 1.0, %v4114_v10  ;;  %v3363_v9 = vld [vmem:[%s1304_s1] sm:$0xff]  ;;  %v3665_v35 = vsel %vm3411_vm5, 1.0, %v4178_v58 }
0x1d95   : > { %vm3410_vm4 = vcmp.ge.s32.totalorder %v3363_v9, 0 }
0x1d96   : > { %v3181_v14 = vmul.f32 0.5, %v3179_v12  ;;  %v3182_v15 = vmul.f32 %v3180_v11, %v3160_v55 }
0x1d98   : > { %v3183_v47 = vmul.f32 %v3181_v14, %v3163_v59 }
0x1d9a   : > { %v3200_v16 = vpack.c.bf16 %v3183_v47, %v3182_v15 }
0x1d9c   : > { %3944 = vmatmul.mubr.bf16.vlgmr.msra.gmra.mrb[44].mxu0 %v3200_v16 }
0x1e6f   : > { %v3243_v17 = vpop.f32.mrb[44].mxu0 }
0x1e70   : > { %v3250_v19 = vadd.f32 %v3243_v17, %v4791_v50  ;;  %v3945_v20 = vpop.f32.mrb[45].mxu0 }
0x1e71   : > { %v3246_v4 = vpop.f32.mrb[46].mxu0 }
0x1e72   : > { %v3251_v21 = vadd.f32 %v3246_v4, %v4794_v53  ;;  %v3946_v22 = vpop.f32.mrb[47].mxu0  ;;  %v3259_v23 = vadd.f32 %v3657_v18, %v3250_v19 }
0x1e74   : > { %v3263_v24 = vsel %vm1459_vm3, %v3259_v23, 0.0  ;;  %v3260_v25 = vadd.f32 %v3657_v18, %v3251_v21 }
0x1e75   : > { %3264 = vadd.xlane.f32.xlu0 %v3263_v24 }
0x1e76   : > { %v3266_v26 = vsel %vm1411_vm1, %v3260_v25, 0.0 }
0x1e77   : > { %3267 = vadd.xlane.f32.xlu1 %v3266_v26 }
0x1f02   : > { %v3265_v27 = vpop.xlane.xlu0 %3264 }
0x1f03   : > { %v3269_v28 = vmul.f32 0.03125, %v3265_v27 }
0x1f04   : > { %v3268_v50 = vpop.xlane.xlu1 %3267 }
0x1f05   : > { %v3271_v29 = vsub.f32 %v3259_v23, %v3269_v28  ;;  %v3270_v30 = vmul.f32 0.03125, %v3268_v50 }
0x1f07   : > { %v3272_v31 = vsub.f32 %v3260_v25, %v3270_v30  ;;  %v3273_v53 = vmul.f32 %v3271_v29, %v3271_v29 }
0x1f09   : > { %v3275_v32 = vsel %vm1459_vm3, %v3273_v53, 0.0  ;;  %v3274_v33 = vmul.f32 %v3272_v31, %v3272_v31 }
0x1f0a   : > { %3276 = vadd.xlane.f32.xlu0 %v3275_v32  ;;  %v3664_v32 = vsel %vm3410_vm4, 1.0, %v4178_v58 }
0x1f0b   : > { %v3278_v34 = vsel %vm1411_vm1, %v3274_v33, 0.0  ;;  %vm3368_vm1 = vcmask 518144  }
0x1f0c   : > { %3279 = vadd.xlane.f32.xlu1 %v3278_v34 }
0x1f97   : > { %v3277_v40 = vpop.xlane.xlu0 %3276 }
0x1f98   : > { %v3281_v41 = vmul.f32 0.03125, %v3277_v40 }
0x1f99   : > { %v3280_v42 = vpop.xlane.xlu1 %3279 }
0x1f9a   : > { %v3283_v43 = vadd.f32 1e-05, %v3281_v41  ;;  %v3282_v44 = vmul.f32 0.03125, %v3280_v42  ;;  %v3435_v42 = vsel %vm3422_vm6, %v3665_v35, 0.0 }
0x1f9c   : > { %4115 = vrsqrt.f32 %v3283_v43  ;;  %v3284_v45 = vadd.f32 1e-05, %v3282_v44 }
0x1f9e   : > { %4117 = vrsqrt.f32 %v3284_v45 }
0x1fa6   : > { %v4116_v46 = vpop.eup %4115 }
0x1fa7   : > { %v3287_v51 = vmul.f32 %v4116_v46, %v3271_v29 }
0x1fa8   : > { %v4118_v52 = vpop.eup %4117 }
0x1fa9   : > { %v3295_v54 = vmul.f32 %v3658_v48, %v3287_v51  ;;  %v3288_v55 = vmul.f32 %v4118_v52, %v3272_v31 }
0x1fab   : > { %v3296_v57 = vmul.f32 %v3658_v48, %v3288_v55  ;;  %v3303_v5 = vadd.f32 %v3659_v56, %v3295_v54 }
0x1fad   : > { %v3304_v59 = vadd.f32 %v3659_v56, %v3296_v57 }
0x1faf   : > { %v3309_v60 = vpack.c.bf16 %v3304_v59, %v3303_v5 }
0x1fb1   : > { %3952 = vmatmul.mubr.msk.bf16.vlgmr.msra.gmra.mrb[60].mxu1 %vm1459_vm3, %v3309_v60 }
0x2084   : > { %v3356_v61 = vpop.f32.mrb[60].mxu1 }
0x2085   : > { %v3357_v62 = vadd.f32 %v3660_v6, %v3356_v61  ;;  %v3953_v63 = vpop.f32.mrb[61].mxu1 }
0x2086   : > { %v3359_v1 = vpop.f32.mrb[62].mxu1 }
0x2087   : > { %v3360_v2 = vadd.f32 %v3660_v6, %v3359_v1  ;;  %v3954_v3 = vpop.f32.mrb[63].mxu1  ;;  %v3365_v37 = vsel %vm1363_vm0, %v3357_v62, -inf }
0x2088   : > { %3366 = vmax.xlane.f32.xlu0 %v3365_v37 }
0x2089   : > { %v3369_v7 = vsel %vm3368_vm1, %v3360_v2, -inf }
0x208a   : > { %3370 = vmax.xlane.f32.xlu1 %v3369_v7 }
0x209b   : > { %3394 = vperm.xlu1 %4043, %v3364_v8  }
0x209e   : > { %3391 = vperm.xlu0 %4042, %v3363_v9  }
0x2115   : > { %v3367_v10 = vpop.xlane.xlu0 %3366 }
0x2116   : > { %v3372_v11 = vsub.f32 %v3357_v62, %v3367_v10 }
0x2117   : > { %v3371_v12 = vpop.xlane.xlu1 %3370 }
0x2118   : > { %v3374_v14 = vmul.f32 1.442695, %v3372_v11  ;;  %v3373_v15 = vsub.f32 %v3360_v2, %v3371_v12 }
0x211a   : > { %4119 = vpow2.f32 %v3374_v14  ;;  %v3376_v47 = vmul.f32 1.442695, %v3373_v15 }
0x211b   : > { %v3395_v17 = vpop.permute.xlu1 %3394 }
0x211c   : > { %4121 = vpow2.f32 %v3376_v47  ;;  %vm3397_vm3 = vcmp.eq.s32.totalorder %v4723_v0, %v3395_v17 }
0x211d   : > { %v3392_v16 = vpop.permute.xlu0 %3391  ;;  %v3663_v22 = vsel %vm3397_vm3, 1.0, %v4178_v58 }
0x211e   : > { %vm3396_vm2 = vcmp.eq.s32.totalorder %v4723_v0, %v3392_v16  ;;  %v3403_v25 = vmul.f32 %v3663_v22, %v3360_v2 }
0x211f   : > { %v3662_v18 = vsel %vm3396_vm2, 1.0, %v4178_v58 }
0x2120   : > { %v3402_v4 = vmul.f32 %v3662_v18, %v3357_v62  ;;  %v3407_v26 = vsel %vm3368_vm1, %v3403_v25, 0.0 }
0x2122   : > { %v3404_v24 = vsel %vm1363_vm0, %v3402_v4, 0.0 }
0x2124   : > { %v4120_v19 = vpop.eup %4119 }
0x2125   : > { %v3378_v20 = vsel %vm1363_vm0, %v4120_v19, 0.0  ;;  %vm3420_vm0 = vcmask 7168  }
0x2126   : > { %v4122_v21 = vpop.eup %4121  ;;  %3379 = vadd.xlane.f32.xlu1 %v3378_v20  ;;  %v3434_v41 = vsel %vm3420_vm0, %v3664_v32, 0.0 }
0x2127   : > { %v3381_v23 = vsel %vm3368_vm1, %v4122_v21, 0.0  ;;  %v3436_v44 = vadd.f32 %v3435_v42, %v3434_v41 }
0x2128   : > { %3382 = vadd.xlane.f32.xlu0 %v3381_v23 }
0x212a   : > { %3405 = vadd.xlane.f32.xlu1 %v3404_v24 }
0x212e   : > { %3408 = vadd.xlane.f32.xlu1 %v3407_v26 }
0x21b3   : > { %v3380_v27 = vpop.xlane.xlu1 %3379 }
0x21b4   : > { %4123 = vlog2.f32 %v3380_v27 }
0x21b5   : > { %v3383_v0 = vpop.xlane.xlu0 %3382 }
0x21b6   : > { %4125 = vlog2.f32 %v3383_v0 }
0x21b7   : > { %v3406_v50 = vpop.xlane.xlu1 %3405 }
0x21bb   : > { %v3409_v36 = vpop.xlane.xlu1 %3408 }
0x21be   : > { %v4124_v28 = vpop.eup %4123 }
0x21bf   : > { %v3385_v29 = vmul.f32 0.6931472, %v4124_v28 }
0x21c0   : > { %v4126_v30 = vpop.eup %4125 }
0x21c1   : > { %v3387_v31 = vmul.f32 0.6931472, %v4126_v30  ;;  %v3388_v53 = vadd.f32 %v3385_v29, %v3367_v10 }
0x21c3   : > { %v3416_v33 = vsub.f32 %v3388_v53, %v3406_v50  ;;  %v3389_v34 = vadd.f32 %v3387_v31, %v3371_v12 }
0x21c5   : > { %v3418_v38 = vmul.f32 %v3664_v32, %v3416_v33  ;;  %v3417_v39 = vsub.f32 %v3389_v34, %v3409_v36 }
0x21c7   : > { %v3419_v49 = vmul.f32 %v3665_v35, %v3417_v39  ;;  %v3421_v13 = vsel %vm3420_vm0, %v3418_v38, 0.0 }
0x21c9   : > { %v3423_v40 = vsel %vm3422_vm6, %v3419_v49, 0.0 }
0x21ca   : > { %v3424_v43 = vadd.f32 %v3423_v40, %v3421_v13 }
0x21cc   : > { %3425 = vadd.xlane.f32.xlu1 %v3424_v43 }
0x21d0   : > { %3437 = vadd.xlane.f32.xlu1 %v3436_v44 }
0x2259   : > { %v3426_v45 = vpop.xlane.xlu1 %3425 }
0x225a   : > { %v3427_v46 = vrot.slane %v3426_v45, 4 }
0x225c   : > { %v3428_v48 = vadd.f32 %v3427_v46, %v3426_v45 }
0x225d   : > { %v3438_v58 = vpop.xlane.xlu1 %3437 }
0x225e   : > { %v3429_v51 = vrot.slane %v3428_v48, 2  ;;  %v3439_v52 = vrot.slane %v3438_v58, 4 }
0x2260   : > { %v3440_v54 = vadd.f32 %v3439_v52, %v3438_v58  ;;  %v3430_v55 = vadd.f32 %v3429_v51, %v3428_v48 }
0x2262   : > { %v3441_v56 = vrot.slane %v3440_v54, 2  ;;  %v3431_v57 = vrot.slane %v3430_v55, 1 }
0x2264   : > { %v3442_v5 = vadd.f32 %v3441_v56, %v3440_v54  ;;  %v3432_v59 = vadd.f32 %v3431_v57, %v3430_v55 }
0x2266   : > { %3955 = vpush %v3432_v59  ;;  %v3443_v60 = vrot.slane %v3442_v5, 1 }
0x2268   : > { %v3444_v6 = vadd.f32 %v3443_v60, %v3442_v5 }
0x226a   : > { %3957 = vpush %v3444_v6 }
0x2297   : > { %s3956_s28 = spop %3955 }
0x2298   : > { %v3446_v61 = vstv %s3956_s28 }
0x2299   : > { %3447 = vst [vmem:[%s1308_s16] sm:$0xff] %v3446_v61 }
0x229b   : > { %s3958_s26 = spop %3957 }
0x229c   : > { %v3448_v62 = vstv %s3958_s26 }
0x229d   : > { %3449 = vst [vmem:[%s1312_s23] sm:$0xff] %v3448_v62 }
0x229e PF: > { %s96_s15 = sadd.s32 1, %s4133_s15  }
0x229f   : > { %p93_p4 = scmp.ge.s32.totalorder %s96_s15, 4  }
0x22a1   :  { %95 = sbr.rel (!%p93_p4) target bundleno = 74 (0x4a), region = 274 }

</bundles_post_ra>
